<compile_context>
chip_gen: v6e
topology: v6e:2x2x1
jax: 0.10.0
libtpu: 0.0.40
codegen_flags: <defaults>
</compile_context>

<pallas_src>
import math

import numpy as np
import jax
import jax.numpy as jnp
from jax.experimental import pallas as pl
from jax.experimental.pallas import tpu as pltpu


_COMPILER_PARAMS = pltpu.CompilerParams(
    dimension_semantics=("parallel",),
    vmem_limit_bytes=48 * 1024 * 1024,
)


# ----------------------------------------------------------------------------
# In-kernel helpers
# ----------------------------------------------------------------------------
def _conv3x3_bn_relu(pad_ref, w_ref, s_ref, b_ref, H, W):
    """3x3 'same' conv (input pre-padded in VMEM) + folded BN + ReLU.

    pad_ref : (H+2, W+2, C_in) f32 VMEM scratch with zero borders.
    w_ref   : (9, C_in, C_out) bf16 weights, tap-major (ky*3 + kx).
    s_ref   : (1, C_out) f32 folded BN scale.
    b_ref   : (1, C_out) f32 folded BN shift.
    Returns (H, W, C_out) float32.
    """
    c_in = pad_ref.shape[-1]
    c_out = w_ref.shape[-1]
    acc = jnp.zeros((H * W, c_out), jnp.float32)
    for ky in range(3):
        for kx in range(3):
            t = ky * 3 + kx
            patch = pad_ref[ky:ky + H, kx:kx + W, :]
            patch = patch.reshape(H * W, c_in).astype(jnp.bfloat16)
            acc = acc + jnp.dot(patch, w_ref[t],
                                preferred_element_type=jnp.float32)
    y = acc * s_ref[...] + b_ref[...]
    return jnp.maximum(y, 0.0).reshape(H, W, c_out)


def _double_conv_from_pad1(w1_ref, s1_ref, b1_ref, w2_ref, s2_ref, b2_ref,
                           out_ref, pad1_ref, pad2_ref):
    """Runs both convs, assuming pad1_ref already holds the padded input."""
    H, W = out_ref.shape[1], out_ref.shape[2]
    h1 = _conv3x3_bn_relu(pad1_ref, w1_ref, s1_ref, b1_ref, H, W)
    pad2_ref[...] = jnp.zeros_like(pad2_ref)
    pad2_ref[1:H + 1, 1:W + 1, :] = h1
    h2 = _conv3x3_bn_relu(pad2_ref, w2_ref, s2_ref, b2_ref, H, W)
    out_ref[0] = h2.astype(out_ref.dtype)


# ----------------------------------------------------------------------------
# Pallas kernels (one batch element per grid step)
# ----------------------------------------------------------------------------
def _double_conv_kernel(x_ref, w1_ref, s1_ref, b1_ref, w2_ref, s2_ref, b2_ref,
                        out_ref, pad1_ref, pad2_ref):
    H, W = out_ref.shape[1], out_ref.shape[2]
    pad1_ref[...] = jnp.zeros_like(pad1_ref)
    pad1_ref[1:H + 1, 1:W + 1, :] = x_ref[0].astype(pad1_ref.dtype)
    _double_conv_from_pad1(w1_ref, s1_ref, b1_ref, w2_ref, s2_ref, b2_ref,
                           out_ref, pad1_ref, pad2_ref)


def _down_kernel(x_ref, w1_ref, s1_ref, b1_ref, w2_ref, s2_ref, b2_ref,
                 out_ref, pad1_ref, pad2_ref):
    """Fused 2x2 maxpool + DoubleConv.  x_ref: (1, 2H, 2W, C_in)."""
    H, W = out_ref.shape[1], out_ref.shape[2]
    c_in = x_ref.shape[3]
    x = x_ref[0]                                        # (2H, 2W, C_in)
    x = jnp.max(x.reshape(H, 2, 2 * W, c_in), axis=1)   # pool rows
    x = jnp.max(x.reshape(H, W, 2, c_in), axis=2)       # pool cols
    pad1_ref[...] = jnp.zeros_like(pad1_ref)
    pad1_ref[1:H + 1, 1:W + 1, :] = x.astype(pad1_ref.dtype)
    _double_conv_from_pad1(w1_ref, s1_ref, b1_ref, w2_ref, s2_ref, b2_ref,
                           out_ref, pad1_ref, pad2_ref)


def _up_kernel(skip_ref, up_ref, w1_ref, s1_ref, b1_ref, w2_ref, s2_ref,
               b2_ref, out_ref, pad1_ref, pad2_ref):
    """Fused channel-concat([skip, upsampled]) + DoubleConv."""
    H, W = out_ref.shape[1], out_ref.shape[2]
    c_skip = skip_ref.shape[3]
    c_up = up_ref.shape[3]
    pad1_ref[...] = jnp.zeros_like(pad1_ref)
    pad1_ref[1:H + 1, 1:W + 1, 0:c_skip] = skip_ref[0].astype(pad1_ref.dtype)
    pad1_ref[1:H + 1, 1:W + 1, c_skip:c_skip + c_up] = (
        up_ref[0].astype(pad1_ref.dtype))
    _double_conv_from_pad1(w1_ref, s1_ref, b1_ref, w2_ref, s2_ref, b2_ref,
                           out_ref, pad1_ref, pad2_ref)


def _outconv_kernel(x_ref, w_ref, b_ref, out_ref):
    """1x1 conv with bias."""
    H, W = x_ref.shape[1], x_ref.shape[2]
    c_in = x_ref.shape[3]
    n_cls = w_ref.shape[-1]
    x = x_ref[0].reshape(H * W, c_in)
    y = jnp.dot(x, w_ref[...], preferred_element_type=jnp.float32)
    y = y + b_ref[...]
    out_ref[0] = y.reshape(H, W, n_cls).astype(out_ref.dtype)


# ----------------------------------------------------------------------------
# pallas_call wrappers
# ----------------------------------------------------------------------------
def _const_spec(p):
    nd = p.ndim
    return pl.BlockSpec(p.shape, lambda n, _nd=nd: (0,) * _nd)


def _param_specs(params):
    return [_const_spec(p) for p in params]


def _prep(params):
    """HWIO (3,3,Cin,Cout) weights -> tap-major (9,Cin,Cout) for the kernels."""
    w1, s1, b1, w2, s2, b2 = params
    return (w1.reshape(9, w1.shape[2], w1.shape[3]), s1, b1,
            w2.reshape(9, w2.shape[2], w2.shape[3]), s2, b2)


def double_conv_block(x, params):
    p = _prep(params)
    w1, _, _, w2, _, _ = p
    N, H, W, c_in = x.shape
    c_mid, c_out = w1.shape[-1], w2.shape[-1]
    return pl.pallas_call(
        _double_conv_kernel,
        out_shape=jax.ShapeDtypeStruct((N, H, W, c_out), jnp.bfloat16),
        grid=(N,),
        in_specs=[pl.BlockSpec((1, H, W, c_in), lambda n: (n, 0, 0, 0))]
                 + _param_specs(p),
        out_specs=pl.BlockSpec((1, H, W, c_out), lambda n: (n, 0, 0, 0)),
        scratch_shapes=[pltpu.VMEM((H + 2, W + 2, c_in), jnp.float32),
                        pltpu.VMEM((H + 2, W + 2, c_mid), jnp.float32)],
        compiler_params=_COMPILER_PARAMS,
    )(x, *p)


def down_block(x, params):
    p = _prep(params)
    w1, _, _, w2, _, _ = p
    N, H2, W2, c_in = x.shape
    H, W = H2 // 2, W2 // 2
    c_mid, c_out = w1.shape[-1], w2.shape[-1]
    return pl.pallas_call(
        _down_kernel,
        out_shape=jax.ShapeDtypeStruct((N, H, W, c_out), jnp.bfloat16),
        grid=(N,),
        in_specs=[pl.BlockSpec((1, H2, W2, c_in), lambda n: (n, 0, 0, 0))]
                 + _param_specs(p),
        out_specs=pl.BlockSpec((1, H, W, c_out), lambda n: (n, 0, 0, 0)),
        scratch_shapes=[pltpu.VMEM((H + 2, W + 2, c_in), jnp.float32),
                        pltpu.VMEM((H + 2, W + 2, c_mid), jnp.float32)],
        compiler_params=_COMPILER_PARAMS,
    )(x, *p)


def up_block(skip, up, params):
    p = _prep(params)
    w1, _, _, w2, _, _ = p
    N, H, W, c_skip = skip.shape
    c_up = up.shape[-1]
    c_mid, c_out = w1.shape[-1], w2.shape[-1]
    return pl.pallas_call(
        _up_kernel,
        out_shape=jax.ShapeDtypeStruct((N, H, W, c_out), jnp.bfloat16),
        grid=(N,),
        in_specs=[pl.BlockSpec((1, H, W, c_skip), lambda n: (n, 0, 0, 0)),
                  pl.BlockSpec((1, H, W, c_up), lambda n: (n, 0, 0, 0))]
                 + _param_specs(p),
        out_specs=pl.BlockSpec((1, H, W, c_out), lambda n: (n, 0, 0, 0)),
        scratch_shapes=[pltpu.VMEM((H + 2, W + 2, c_skip + c_up), jnp.float32),
                        pltpu.VMEM((H + 2, W + 2, c_mid), jnp.float32)],
        compiler_params=_COMPILER_PARAMS,
    )(skip, up, *p)


def out_conv(x, w, b):
    N, H, W, c_in = x.shape
    n_cls = w.shape[-1]
    return pl.pallas_call(
        _outconv_kernel,
        out_shape=jax.ShapeDtypeStruct((N, H, W, n_cls), jnp.float32),
        grid=(N,),
        in_specs=[pl.BlockSpec((1, H, W, c_in), lambda n: (n, 0, 0, 0)),
                  pl.BlockSpec(w.shape, lambda n: (0, 0)),
                  pl.BlockSpec(b.shape, lambda n: (0, 0))],
        out_specs=pl.BlockSpec((1, H, W, n_cls), lambda n: (n, 0, 0, 0)),
        compiler_params=_COMPILER_PARAMS,
    )(x, w, b)


# ----------------------------------------------------------------------------
# Plain-JAX glue: bilinear x2 upsample (align_corners=True) + optional pad
# ----------------------------------------------------------------------------
def _interp_matrix(size_in, size_out):
    a = np.zeros((size_out, size_in), np.float32)
    if size_in == 1:
        a[:, 0] = 1.0
        return a
    scale = (size_in - 1) / (size_out - 1)
    for i in range(size_out):
        src = i * scale
        i0 = min(int(np.floor(src)), size_in - 2)
        frac = src - i0
        a[i, i0] += 1.0 - frac
        a[i, i0 + 1] += frac
    return a


def upsample2x(x, target_hw):
    """PyTorch Upsample(scale_factor=2, bilinear, align_corners=True) + F.pad."""
    N, H, W, C = x.shape
    a_h = jnp.asarray(_interp_matrix(H, 2 * H))
    a_w = jnp.asarray(_interp_matrix(W, 2 * W))
    y = jnp.einsum('ph,nhwc,qw->npqc', a_h, x.astype(jnp.float32), a_w)
    th, tw = target_hw
    dy, dx = th - 2 * H, tw - 2 * W
    if dy or dx:
        y = jnp.pad(y, ((0, 0), (dy // 2, dy - dy // 2),
                        (dx // 2, dx - dx // 2), (0, 0)))
    return y.astype(jnp.bfloat16)


# ----------------------------------------------------------------------------
# UNet (bilinear=True) built from the fused Pallas blocks
# ----------------------------------------------------------------------------
class UNetPallas:
    def __init__(self, n_channels, n_classes, key):
        self.n_channels, self.n_classes = n_channels, n_classes
        kit = iter(jax.random.split(key, 32))

        def conv_w(c_in, c_out):
            bound = 1.0 / math.sqrt(9 * c_in)
            w = jax.random.uniform(next(kit), (3, 3, c_in, c_out),
                                   jnp.float32, -bound, bound)
            return w.astype(jnp.bfloat16)                 # HWIO

        def bn(c):
            eps = 1e-5   # PyTorch BatchNorm2d defaults, inference mode, folded.
            scale = jnp.full((1, c), 1.0 / math.sqrt(1.0 + eps), jnp.float32)
            shift = jnp.zeros((1, c), jnp.float32)
            return scale, shift

        def dconv(c_in, c_out, c_mid=None):
            c_mid = c_out if c_mid is None else c_mid
            w1 = conv_w(c_in, c_mid); s1, b1 = bn(c_mid)
            w2 = conv_w(c_mid, c_out); s2, b2 = bn(c_out)
            return (w1, s1, b1, w2, s2, b2)

        self.inc = dconv(n_channels, 64)
        self.down1 = dconv(64, 128)
        self.down2 = dconv(128, 256)
        self.down3 = dconv(256, 512)
        self.down4 = dconv(512, 512)               # 1024 // factor, factor=2
        self.up1 = dconv(512 + 512, 256, 512)      # DoubleConv(1024, 256, 512)
        self.up2 = dconv(256 + 256, 128, 256)
        self.up3 = dconv(128 + 128, 64, 128)
        self.up4 = dconv(64 + 64, 64, 64)
        bound = 1.0 / math.sqrt(64)
        self.outc_w = jax.random.uniform(next(kit), (64, n_classes),
                                         jnp.float32, -bound, bound
                                         ).astype(jnp.bfloat16)
        self.outc_b = jax.random.uniform(next(kit), (1, n_classes),
                                         jnp.float32, -bound, bound)

    def __call__(self, x_nchw):
        x = jnp.transpose(x_nchw, (0, 2, 3, 1))            # NCHW -> NHWC
        x1 = double_conv_block(x, self.inc)
        x2 = down_block(x1, self.down1)
        x3 = down_block(x2, self.down2)
        x4 = down_block(x3, self.down3)
        x5 = down_block(x4, self.down4)
        u = up_block(x4, upsample2x(x5, x4.shape[1:3]), self.up1)
        u = up_block(x3, upsample2x(u, x3.shape[1:3]), self.up2)
        u = up_block(x2, upsample2x(u, x2.shape[1:3]), self.up3)
        u = up_block(x1, upsample2x(u, x1.shape[1:3]), self.up4)
        logits = out_conv(u, self.outc_w, self.outc_b)
        return jnp.transpose(logits, (0, 3, 1, 2))         # NHWC -> NCHW


# ----------------------------------------------------------------------------
# Pure-JAX reference (same bf16 quantization points) for correctness check
# ----------------------------------------------------------------------------
def _ref_conv_bn_relu(x, w_hwio, scale, shift):
    y = jax.lax.conv_general_dilated(
        x.astype(jnp.bfloat16), w_hwio, window_strides=(1, 1),
        padding=((1, 1), (1, 1)),
        dimension_numbers=('NHWC', 'HWIO', 'NHWC'),
        preferred_element_type=jnp.float32)
    y = y * scale.reshape(1, 1, 1, -1) + shift.reshape(1, 1, 1, -1)
    return jnp.maximum(y, 0.0)


def _ref_double_conv(x, params):
    w1, s1, b1, w2, s2, b2 = params
    h = _ref_conv_bn_relu(x, w1, s1, b1)
    h = _ref_conv_bn_relu(h, w2, s2, b2)
    return h.astype(jnp.bfloat16)


def _ref_maxpool2(x):
    N, H, W, C = x.shape
    return jnp.max(x.reshape(N, H // 2, 2, W // 2, 2, C), axis=(2, 4))


def unet_reference(x_nchw, m):
    x = jnp.transpose(x_nchw, (0, 2, 3, 1))
    x1 = _ref_double_conv(x, m.inc)
    x2 = _ref_double_conv(_ref_maxpool2(x1), m.down1)
    x3 = _ref_double_conv(_ref_maxpool2(x2), m.down2)
    x4 = _ref_double_conv(_ref_maxpool2(x3), m.down3)
    x5 = _ref_double_conv(_ref_maxpool2(x4), m.down4)

    def up(skip, low, params):
        u = upsample2x(low, skip.shape[1:3])
        return _ref_double_conv(jnp.concatenate([skip, u], axis=-1), params)

    u = up(x4, x5, m.up1)
    u = up(x3, u, m.up2)
    u = up(x2, u, m.up3)
    u = up(x1, u, m.up4)
    N, H, W, _ = u.shape
    logits = jnp.dot(u.reshape(-1, 64), m.outc_w,
                     preferred_element_type=jnp.float32) + m.outc_b
    logits = logits.reshape(N, H, W, -1)
    return jnp.transpose(logits, (0, 3, 1, 2))


if __name__ == "__main__":
    key = jax.random.PRNGKey(0)
    k_x, k_p = jax.random.split(key)

    N, C_in, H, W = 2, 4, 16, 16
    n_classes = 2
    x = jax.random.normal(k_x, (N, C_in, H, W), dtype=jnp.float32)

    model = UNetPallas(C_in, n_classes, k_p)

    out = jax.block_until_ready(model(x))
    assert out.shape == (N, n_classes, H, W), out.shape

    ref = jax.block_until_ready(unet_reference(x, model))
    max_err = float(jnp.max(jnp.abs(out - ref)))
    assert jnp.allclose(out, ref, rtol=5e-2, atol=5e-2), max_err

    print("KERNEL_OK")
</pallas_src>

<mosaic_0001>
module attributes {stable_mosaic.version = 11 : i64} {
  func.func @_double_conv_kernel(%arg0: i32, %arg1: memref<1x16x16x4xf32, #tpu.memory_space<vmem>>, %arg2: memref<9x4x64xbf16, #tpu.memory_space<vmem>>, %arg3: memref<1x64xf32, #tpu.memory_space<vmem>>, %arg4: memref<1x64xf32, #tpu.memory_space<vmem>>, %arg5: memref<9x64x64xbf16, #tpu.memory_space<vmem>>, %arg6: memref<1x64xf32, #tpu.memory_space<vmem>>, %arg7: memref<1x64xf32, #tpu.memory_space<vmem>>, %arg8: memref<1x16x16x64xbf16, #tpu.memory_space<vmem>>, %arg9: memref<18x18x4xf32, #tpu.memory_space<vmem>>, %arg10: memref<18x18x64xf32, #tpu.memory_space<vmem>>) attributes {dimension_semantics = [#tpu.dimension_semantics<parallel>], iteration_bounds = array<i64: 2>, scalar_prefetch = 0 : i64, scratch_operands = 2 : i64, tpu.core_type = #tpu.core_type<tc>, window_params = [{transform_indices = @transform_0, window_bounds = array<i64: 1, 16, 16, 4>}, {pipeline_mode = #tpu.pipeline_mode<synchronous>, transform_indices = @transform_1, window_bounds = array<i64: 9, 4, 64>}, {pipeline_mode = #tpu.pipeline_mode<synchronous>, transform_indices = @transform_2, window_bounds = array<i64: 1, 64>}, {pipeline_mode = #tpu.pipeline_mode<synchronous>, transform_indices = @transform_3, window_bounds = array<i64: 1, 64>}, {pipeline_mode = #tpu.pipeline_mode<synchronous>, transform_indices = @transform_4, window_bounds = array<i64: 9, 64, 64>}, {pipeline_mode = #tpu.pipeline_mode<synchronous>, transform_indices = @transform_5, window_bounds = array<i64: 1, 64>}, {pipeline_mode = #tpu.pipeline_mode<synchronous>, transform_indices = @transform_6, window_bounds = array<i64: 1, 64>}, {transform_indices = @transform_7, window_bounds = array<i64: 1, 16, 16, 64>}]} {
    %cst = arith.constant 0.000000e+00 : f32
    %0 = vector.broadcast %cst : f32 to vector<18x18x4xf32>
    %c0 = arith.constant 0 : index
    %c0_0 = arith.constant 0 : index
    %c0_1 = arith.constant 0 : index
    %1 = vector.load %arg9[%c0, %c0_0, %c0_1] : memref<18x18x4xf32, #tpu.memory_space<vmem>>, vector<18x18x4xf32>
    tpu.vector_store %arg9[%c0, %c0_0, %c0_1], %0 {strides = array<i32>} : memref<18x18x4xf32, #tpu.memory_space<vmem>>, vector<18x18x4xf32>,
    %c0_2 = arith.constant 0 : index
    %c0_3 = arith.constant 0 : index
    %c0_4 = arith.constant 0 : index
    %c0_5 = arith.constant 0 : index
    %2 = vector.load %arg1[%c0_2, %c0_3, %c0_4, %c0_5] : memref<1x16x16x4xf32, #tpu.memory_space<vmem>>, vector<1x16x16x4xf32>
    %3 = vector.shape_cast %2 : vector<1x16x16x4xf32> to vector<16x16x4xf32>
    %c1 = arith.constant 1 : index
    %c1_6 = arith.constant 1 : index
    %c0_7 = arith.constant 0 : index
    %4 = vector.load %arg9[%c1, %c1_6, %c0_7] : memref<18x18x4xf32, #tpu.memory_space<vmem>>, vector<16x16x4xf32>
    tpu.vector_store %arg9[%c1, %c1_6, %c0_7], %3 {strides = array<i32>} : memref<18x18x4xf32, #tpu.memory_space<vmem>>, vector<16x16x4xf32>,
    %cst_8 = arith.constant 0.000000e+00 : f32
    %5 = vector.broadcast %cst_8 : f32 to vector<256x64xf32>
    %c0_9 = arith.constant 0 : index
    %c0_10 = arith.constant 0 : index
    %c0_11 = arith.constant 0 : index
    %6 = vector.load %arg9[%c0_9, %c0_10, %c0_11] : memref<18x18x4xf32, #tpu.memory_space<vmem>>, vector<16x16x4xf32>
    %7 = vector.shape_cast %6 : vector<16x16x4xf32> to vector<256x4xf32>
    %8 = arith.truncf %7 : vector<256x4xf32> to vector<256x4xbf16>
    %c0_12 = arith.constant 0 : index
    %c0_13 = arith.constant 0 : index
    %c0_14 = arith.constant 0 : index
    %9 = vector.load %arg2[%c0_12, %c0_13, %c0_14] : memref<9x4x64xbf16, #tpu.memory_space<vmem>>, vector<1x4x64xbf16>
    %10 = vector.shape_cast %9 : vector<1x4x64xbf16> to vector<4x64xbf16>
    %cst_15 = arith.constant dense<0.000000e+00> : vector<256x64xf32>
    %11 = tpu.matmul %8, %10, %cst_15 {dimension_numbers = #tpu.dot_dimension_numbers<[1], [0], [0], [1], [0, 0, 1, 1], [], []>} : vector<256x4xbf16>, vector<4x64xbf16>, vector<256x64xf32> -> vector<256x64xf32>
    %12 = arith.addf %5, %11 : vector<256x64xf32>
    %c0_16 = arith.constant 0 : index
    %c1_17 = arith.constant 1 : index
    %c0_18 = arith.constant 0 : index
    %13 = vector.load %arg9[%c0_16, %c1_17, %c0_18] : memref<18x18x4xf32, #tpu.memory_space<vmem>>, vector<16x16x4xf32>
    %14 = vector.shape_cast %13 : vector<16x16x4xf32> to vector<256x4xf32>
    %15 = arith.truncf %14 : vector<256x4xf32> to vector<256x4xbf16>
    %c1_19 = arith.constant 1 : index
    %c0_20 = arith.constant 0 : index
    %c0_21 = arith.constant 0 : index
    %16 = vector.load %arg2[%c1_19, %c0_20, %c0_21] : memref<9x4x64xbf16, #tpu.memory_space<vmem>>, vector<1x4x64xbf16>
    %17 = vector.shape_cast %16 : vector<1x4x64xbf16> to vector<4x64xbf16>
    %cst_22 = arith.constant dense<0.000000e+00> : vector<256x64xf32>
    %18 = tpu.matmul %15, %17, %cst_22 {dimension_numbers = #tpu.dot_dimension_numbers<[1], [0], [0], [1], [0, 0, 1, 1], [], []>} : vector<256x4xbf16>, vector<4x64xbf16>, vector<256x64xf32> -> vector<256x64xf32>
    %19 = arith.addf %12, %18 : vector<256x64xf32>
    %c0_23 = arith.constant 0 : index
    %c2 = arith.constant 2 : index
    %c0_24 = arith.constant 0 : index
    %20 = vector.load %arg9[%c0_23, %c2, %c0_24] : memref<18x18x4xf32, #tpu.memory_space<vmem>>, vector<16x16x4xf32>
    %21 = vector.shape_cast %20 : vector<16x16x4xf32> to vector<256x4xf32>
    %22 = arith.truncf %21 : vector<256x4xf32> to vector<256x4xbf16>
    %c2_25 = arith.constant 2 : index
    %c0_26 = arith.constant 0 : index
    %c0_27 = arith.constant 0 : index
    %23 = vector.load %arg2[%c2_25, %c0_26, %c0_27] : memref<9x4x64xbf16, #tpu.memory_space<vmem>>, vector<1x4x64xbf16>
    %24 = vector.shape_cast %23 : vector<1x4x64xbf16> to vector<4x64xbf16>
    %cst_28 = arith.constant dense<0.000000e+00> : vector<256x64xf32>
    %25 = tpu.matmul %22, %24, %cst_28 {dimension_numbers = #tpu.dot_dimension_numbers<[1], [0], [0], [1], [0, 0, 1, 1], [], []>} : vector<256x4xbf16>, vector<4x64xbf16>, vector<256x64xf32> -> vector<256x64xf32>
    %26 = arith.addf %19, %25 : vector<256x64xf32>
    %c1_29 = arith.constant 1 : index
    %c0_30 = arith.constant 0 : index
    %c0_31 = arith.constant 0 : index
    %27 = vector.load %arg9[%c1_29, %c0_30, %c0_31] : memref<18x18x4xf32, #tpu.memory_space<vmem>>, vector<16x16x4xf32>
    %28 = vector.shape_cast %27 : vector<16x16x4xf32> to vector<256x4xf32>
    %29 = arith.truncf %28 : vector<256x4xf32> to vector<256x4xbf16>
    %c3 = arith.constant 3 : index
    %c0_32 = arith.constant 0 : index
    %c0_33 = arith.constant 0 : index
    %30 = vector.load %arg2[%c3, %c0_32, %c0_33] : memref<9x4x64xbf16, #tpu.memory_space<vmem>>, vector<1x4x64xbf16>
    %31 = vector.shape_cast %30 : vector<1x4x64xbf16> to vector<4x64xbf16>
    %cst_34 = arith.constant dense<0.000000e+00> : vector<256x64xf32>
    %32 = tpu.matmul %29, %31, %cst_34 {dimension_numbers = #tpu.dot_dimension_numbers<[1], [0], [0], [1], [0, 0, 1, 1], [], []>} : vector<256x4xbf16>, vector<4x64xbf16>, vector<256x64xf32> -> vector<256x64xf32>
    %33 = arith.addf %26, %32 : vector<256x64xf32>
    %c1_35 = arith.constant 1 : index
    %c1_36 = arith.constant 1 : index
    %c0_37 = arith.constant 0 : index
    %34 = vector.load %arg9[%c1_35, %c1_36, %c0_37] : memref<18x18x4xf32, #tpu.memory_space<vmem>>, vector<16x16x4xf32>
    %35 = vector.shape_cast %34 : vector<16x16x4xf32> to vector<256x4xf32>
    %36 = arith.truncf %35 : vector<256x4xf32> to vector<256x4xbf16>
    %c4 = arith.constant 4 : index
    %c0_38 = arith.constant 0 : index
    %c0_39 = arith.constant 0 : index
    %37 = vector.load %arg2[%c4, %c0_38, %c0_39] : memref<9x4x64xbf16, #tpu.memory_space<vmem>>, vector<1x4x64xbf16>
    %38 = vector.shape_cast %37 : vector<1x4x64xbf16> to vector<4x64xbf16>
    %cst_40 = arith.constant dense<0.000000e+00> : vector<256x64xf32>
    %39 = tpu.matmul %36, %38, %cst_40 {dimension_numbers = #tpu.dot_dimension_numbers<[1], [0], [0], [1], [0, 0, 1, 1], [], []>} : vector<256x4xbf16>, vector<4x64xbf16>, vector<256x64xf32> -> vector<256x64xf32>
    %40 = arith.addf %33, %39 : vector<256x64xf32>
    %c1_41 = arith.constant 1 : index
    %c2_42 = arith.constant 2 : index
    %c0_43 = arith.constant 0 : index
    %41 = vector.load %arg9[%c1_41, %c2_42, %c0_43] : memref<18x18x4xf32, #tpu.memory_space<vmem>>, vector<16x16x4xf32>
    %42 = vector.shape_cast %41 : vector<16x16x4xf32> to vector<256x4xf32>
    %43 = arith.truncf %42 : vector<256x4xf32> to vector<256x4xbf16>
    %c5 = arith.constant 5 : index
    %c0_44 = arith.constant 0 : index
    %c0_45 = arith.constant 0 : index
    %44 = vector.load %arg2[%c5, %c0_44, %c0_45] : memref<9x4x64xbf16, #tpu.memory_space<vmem>>, vector<1x4x64xbf16>
    %45 = vector.shape_cast %44 : vector<1x4x64xbf16> to vector<4x64xbf16>
    %cst_46 = arith.constant dense<0.000000e+00> : vector<256x64xf32>
    %46 = tpu.matmul %43, %45, %cst_46 {dimension_numbers = #tpu.dot_dimension_numbers<[1], [0], [0], [1], [0, 0, 1, 1], [], []>} : vector<256x4xbf16>, vector<4x64xbf16>, vector<256x64xf32> -> vector<256x64xf32>
    %47 = arith.addf %40, %46 : vector<256x64xf32>
    %c2_47 = arith.constant 2 : index
    %c0_48 = arith.constant 0 : index
    %c0_49 = arith.constant 0 : index
    %48 = vector.load %arg9[%c2_47, %c0_48, %c0_49] : memref<18x18x4xf32, #tpu.memory_space<vmem>>, vector<16x16x4xf32>
    %49 = vector.shape_cast %48 : vector<16x16x4xf32> to vector<256x4xf32>
    %50 = arith.truncf %49 : vector<256x4xf32> to vector<256x4xbf16>
    %c6 = arith.constant 6 : index
    %c0_50 = arith.constant 0 : index
    %c0_51 = arith.constant 0 : index
    %51 = vector.load %arg2[%c6, %c0_50, %c0_51] : memref<9x4x64xbf16, #tpu.memory_space<vmem>>, vector<1x4x64xbf16>
    %52 = vector.shape_cast %51 : vector<1x4x64xbf16> to vector<4x64xbf16>
    %cst_52 = arith.constant dense<0.000000e+00> : vector<256x64xf32>
    %53 = tpu.matmul %50, %52, %cst_52 {dimension_numbers = #tpu.dot_dimension_numbers<[1], [0], [0], [1], [0, 0, 1, 1], [], []>} : vector<256x4xbf16>, vector<4x64xbf16>, vector<256x64xf32> -> vector<256x64xf32>
    %54 = arith.addf %47, %53 : vector<256x64xf32>
    %c2_53 = arith.constant 2 : index
    %c1_54 = arith.constant 1 : index
    %c0_55 = arith.constant 0 : index
    %55 = vector.load %arg9[%c2_53, %c1_54, %c0_55] : memref<18x18x4xf32, #tpu.memory_space<vmem>>, vector<16x16x4xf32>
    %56 = vector.shape_cast %55 : vector<16x16x4xf32> to vector<256x4xf32>
    %57 = arith.truncf %56 : vector<256x4xf32> to vector<256x4xbf16>
    %c7 = arith.constant 7 : index
    %c0_56 = arith.constant 0 : index
    %c0_57 = arith.constant 0 : index
    %58 = vector.load %arg2[%c7, %c0_56, %c0_57] : memref<9x4x64xbf16, #tpu.memory_space<vmem>>, vector<1x4x64xbf16>
    %59 = vector.shape_cast %58 : vector<1x4x64xbf16> to vector<4x64xbf16>
    %cst_58 = arith.constant dense<0.000000e+00> : vector<256x64xf32>
    %60 = tpu.matmul %57, %59, %cst_58 {dimension_numbers = #tpu.dot_dimension_numbers<[1], [0], [0], [1], [0, 0, 1, 1], [], []>} : vector<256x4xbf16>, vector<4x64xbf16>, vector<256x64xf32> -> vector<256x64xf32>
    %61 = arith.addf %54, %60 : vector<256x64xf32>
    %c2_59 = arith.constant 2 : index
    %c2_60 = arith.constant 2 : index
    %c0_61 = arith.constant 0 : index
    %62 = vector.load %arg9[%c2_59, %c2_60, %c0_61] : memref<18x18x4xf32, #tpu.memory_space<vmem>>, vector<16x16x4xf32>
    %63 = vector.shape_cast %62 : vector<16x16x4xf32> to vector<256x4xf32>
    %64 = arith.truncf %63 : vector<256x4xf32> to vector<256x4xbf16>
    %c8 = arith.constant 8 : index
    %c0_62 = arith.constant 0 : index
    %c0_63 = arith.constant 0 : index
    %65 = vector.load %arg2[%c8, %c0_62, %c0_63] : memref<9x4x64xbf16, #tpu.memory_space<vmem>>, vector<1x4x64xbf16>
    %66 = vector.shape_cast %65 : vector<1x4x64xbf16> to vector<4x64xbf16>
    %cst_64 = arith.constant dense<0.000000e+00> : vector<256x64xf32>
    %67 = tpu.matmul %64, %66, %cst_64 {dimension_numbers = #tpu.dot_dimension_numbers<[1], [0], [0], [1], [0, 0, 1, 1], [], []>} : vector<256x4xbf16>, vector<4x64xbf16>, vector<256x64xf32> -> vector<256x64xf32>
    %68 = arith.addf %61, %67 : vector<256x64xf32>
    %c0_65 = arith.constant 0 : index
    %c0_66 = arith.constant 0 : index
    %69 = vector.load %arg3[%c0_65, %c0_66] : memref<1x64xf32, #tpu.memory_space<vmem>>, vector<1x64xf32>
    %70 = vector.broadcast %69 : vector<1x64xf32> to vector<256x64xf32>
    %71 = arith.mulf %68, %70 : vector<256x64xf32>
    %c0_67 = arith.constant 0 : index
    %c0_68 = arith.constant 0 : index
    %72 = vector.load %arg4[%c0_67, %c0_68] : memref<1x64xf32, #tpu.memory_space<vmem>>, vector<1x64xf32>
    %73 = vector.broadcast %72 : vector<1x64xf32> to vector<256x64xf32>
    %74 = arith.addf %71, %73 : vector<256x64xf32>
    %cst_69 = arith.constant 0.000000e+00 : f32
    %75 = vector.broadcast %cst_69 : f32 to vector<256x64xf32>
    %76 = arith.maximumf %74, %75 : vector<256x64xf32>
    %77 = vector.shape_cast %76 : vector<256x64xf32> to vector<16x16x64xf32>
    %cst_70 = arith.constant 0.000000e+00 : f32
    %78 = vector.broadcast %cst_70 : f32 to vector<18x18x64xf32>
    %c0_71 = arith.constant 0 : index
    %c0_72 = arith.constant 0 : index
    %c0_73 = arith.constant 0 : index
    %79 = vector.load %arg10[%c0_71, %c0_72, %c0_73] : memref<18x18x64xf32, #tpu.memory_space<vmem>>, vector<18x18x64xf32>
    tpu.vector_store %arg10[%c0_71, %c0_72, %c0_73], %78 {strides = array<i32>} : memref<18x18x64xf32, #tpu.memory_space<vmem>>, vector<18x18x64xf32>,
    %c1_74 = arith.constant 1 : index
    %c1_75 = arith.constant 1 : index
    %c0_76 = arith.constant 0 : index
    %80 = vector.load %arg10[%c1_74, %c1_75, %c0_76] : memref<18x18x64xf32, #tpu.memory_space<vmem>>, vector<16x16x64xf32>
    tpu.vector_store %arg10[%c1_74, %c1_75, %c0_76], %77 {strides = array<i32>} : memref<18x18x64xf32, #tpu.memory_space<vmem>>, vector<16x16x64xf32>,
    %cst_77 = arith.constant 0.000000e+00 : f32
    %81 = vector.broadcast %cst_77 : f32 to vector<256x64xf32>
    %c0_78 = arith.constant 0 : index
    %c0_79 = arith.constant 0 : index
    %c0_80 = arith.constant 0 : index
    %82 = vector.load %arg10[%c0_78, %c0_79, %c0_80] : memref<18x18x64xf32, #tpu.memory_space<vmem>>, vector<16x16x64xf32>
    %83 = vector.shape_cast %82 : vector<16x16x64xf32> to vector<256x64xf32>
    %84 = arith.truncf %83 : vector<256x64xf32> to vector<256x64xbf16>
    %c0_81 = arith.constant 0 : index
    %c0_82 = arith.constant 0 : index
    %c0_83 = arith.constant 0 : index
    %85 = vector.load %arg5[%c0_81, %c0_82, %c0_83] : memref<9x64x64xbf16, #tpu.memory_space<vmem>>, vector<1x64x64xbf16>
    %86 = vector.shape_cast %85 : vector<1x64x64xbf16> to vector<64x64xbf16>
    %cst_84 = arith.constant dense<0.000000e+00> : vector<256x64xf32>
    %87 = tpu.matmul %84, %86, %cst_84 {dimension_numbers = #tpu.dot_dimension_numbers<[1], [0], [0], [1], [0, 0, 1, 1], [], []>} : vector<256x64xbf16>, vector<64x64xbf16>, vector<256x64xf32> -> vector<256x64xf32>
    %88 = arith.addf %81, %87 : vector<256x64xf32>
    %c0_85 = arith.constant 0 : index
    %c1_86 = arith.constant 1 : index
    %c0_87 = arith.constant 0 : index
    %89 = vector.load %arg10[%c0_85, %c1_86, %c0_87] : memref<18x18x64xf32, #tpu.memory_space<vmem>>, vector<16x16x64xf32>
    %90 = vector.shape_cast %89 : vector<16x16x64xf32> to vector<256x64xf32>
    %91 = arith.truncf %90 : vector<256x64xf32> to vector<256x64xbf16>
    %c1_88 = arith.constant 1 : index
    %c0_89 = arith.constant 0 : index
    %c0_90 = arith.constant 0 : index
    %92 = vector.load %arg5[%c1_88, %c0_89, %c0_90] : memref<9x64x64xbf16, #tpu.memory_space<vmem>>, vector<1x64x64xbf16>
    %93 = vector.shape_cast %92 : vector<1x64x64xbf16> to vector<64x64xbf16>
    %cst_91 = arith.constant dense<0.000000e+00> : vector<256x64xf32>
    %94 = tpu.matmul %91, %93, %cst_91 {dimension_numbers = #tpu.dot_dimension_numbers<[1], [0], [0], [1], [0, 0, 1, 1], [], []>} : vector<256x64xbf16>, vector<64x64xbf16>, vector<256x64xf32> -> vector<256x64xf32>
    %95 = arith.addf %88, %94 : vector<256x64xf32>
    %c0_92 = arith.constant 0 : index
    %c2_93 = arith.constant 2 : index
    %c0_94 = arith.constant 0 : index
    %96 = vector.load %arg10[%c0_92, %c2_93, %c0_94] : memref<18x18x64xf32, #tpu.memory_space<vmem>>, vector<16x16x64xf32>
    %97 = vector.shape_cast %96 : vector<16x16x64xf32> to vector<256x64xf32>
    %98 = arith.truncf %97 : vector<256x64xf32> to vector<256x64xbf16>
    %c2_95 = arith.constant 2 : index
    %c0_96 = arith.constant 0 : index
    %c0_97 = arith.constant 0 : index
    %99 = vector.load %arg5[%c2_95, %c0_96, %c0_97] : memref<9x64x64xbf16, #tpu.memory_space<vmem>>, vector<1x64x64xbf16>
    %100 = vector.shape_cast %99 : vector<1x64x64xbf16> to vector<64x64xbf16>
    %cst_98 = arith.constant dense<0.000000e+00> : vector<256x64xf32>
    %101 = tpu.matmul %98, %100, %cst_98 {dimension_numbers = #tpu.dot_dimension_numbers<[1], [0], [0], [1], [0, 0, 1, 1], [], []>} : vector<256x64xbf16>, vector<64x64xbf16>, vector<256x64xf32> -> vector<256x64xf32>
    %102 = arith.addf %95, %101 : vector<256x64xf32>
    %c1_99 = arith.constant 1 : index
    %c0_100 = arith.constant 0 : index
    %c0_101 = arith.constant 0 : index
    %103 = vector.load %arg10[%c1_99, %c0_100, %c0_101] : memref<18x18x64xf32, #tpu.memory_space<vmem>>, vector<16x16x64xf32>
    %104 = vector.shape_cast %103 : vector<16x16x64xf32> to vector<256x64xf32>
    %105 = arith.truncf %104 : vector<256x64xf32> to vector<256x64xbf16>
    %c3_102 = arith.constant 3 : index
    %c0_103 = arith.constant 0 : index
    %c0_104 = arith.constant 0 : index
    %106 = vector.load %arg5[%c3_102, %c0_103, %c0_104] : memref<9x64x64xbf16, #tpu.memory_space<vmem>>, vector<1x64x64xbf16>
    %107 = vector.shape_cast %106 : vector<1x64x64xbf16> to vector<64x64xbf16>
    %cst_105 = arith.constant dense<0.000000e+00> : vector<256x64xf32>
    %108 = tpu.matmul %105, %107, %cst_105 {dimension_numbers = #tpu.dot_dimension_numbers<[1], [0], [0], [1], [0, 0, 1, 1], [], []>} : vector<256x64xbf16>, vector<64x64xbf16>, vector<256x64xf32> -> vector<256x64xf32>
    %109 = arith.addf %102, %108 : vector<256x64xf32>
    %c1_106 = arith.constant 1 : index
    %c1_107 = arith.constant 1 : index
    %c0_108 = arith.constant 0 : index
    %110 = vector.load %arg10[%c1_106, %c1_107, %c0_108] : memref<18x18x64xf32, #tpu.memory_space<vmem>>, vector<16x16x64xf32>
    %111 = vector.shape_cast %110 : vector<16x16x64xf32> to vector<256x64xf32>
    %112 = arith.truncf %111 : vector<256x64xf32> to vector<256x64xbf16>
    %c4_109 = arith.constant 4 : index
    %c0_110 = arith.constant 0 : index
    %c0_111 = arith.constant 0 : index
    %113 = vector.load %arg5[%c4_109, %c0_110, %c0_111] : memref<9x64x64xbf16, #tpu.memory_space<vmem>>, vector<1x64x64xbf16>
    %114 = vector.shape_cast %113 : vector<1x64x64xbf16> to vector<64x64xbf16>
    %cst_112 = arith.constant dense<0.000000e+00> : vector<256x64xf32>
    %115 = tpu.matmul %112, %114, %cst_112 {dimension_numbers = #tpu.dot_dimension_numbers<[1], [0], [0], [1], [0, 0, 1, 1], [], []>} : vector<256x64xbf16>, vector<64x64xbf16>, vector<256x64xf32> -> vector<256x64xf32>
    %116 = arith.addf %109, %115 : vector<256x64xf32>
    %c1_113 = arith.constant 1 : index
    %c2_114 = arith.constant 2 : index
    %c0_115 = arith.constant 0 : index
    %117 = vector.load %arg10[%c1_113, %c2_114, %c0_115] : memref<18x18x64xf32, #tpu.memory_space<vmem>>, vector<16x16x64xf32>
    %118 = vector.shape_cast %117 : vector<16x16x64xf32> to vector<256x64xf32>
    %119 = arith.truncf %118 : vector<256x64xf32> to vector<256x64xbf16>
    %c5_116 = arith.constant 5 : index
    %c0_117 = arith.constant 0 : index
    %c0_118 = arith.constant 0 : index
    %120 = vector.load %arg5[%c5_116, %c0_117, %c0_118] : memref<9x64x64xbf16, #tpu.memory_space<vmem>>, vector<1x64x64xbf16>
    %121 = vector.shape_cast %120 : vector<1x64x64xbf16> to vector<64x64xbf16>
    %cst_119 = arith.constant dense<0.000000e+00> : vector<256x64xf32>
    %122 = tpu.matmul %119, %121, %cst_119 {dimension_numbers = #tpu.dot_dimension_numbers<[1], [0], [0], [1], [0, 0, 1, 1], [], []>} : vector<256x64xbf16>, vector<64x64xbf16>, vector<256x64xf32> -> vector<256x64xf32>
    %123 = arith.addf %116, %122 : vector<256x64xf32>
    %c2_120 = arith.constant 2 : index
    %c0_121 = arith.constant 0 : index
    %c0_122 = arith.constant 0 : index
    %124 = vector.load %arg10[%c2_120, %c0_121, %c0_122] : memref<18x18x64xf32, #tpu.memory_space<vmem>>, vector<16x16x64xf32>
    %125 = vector.shape_cast %124 : vector<16x16x64xf32> to vector<256x64xf32>
    %126 = arith.truncf %125 : vector<256x64xf32> to vector<256x64xbf16>
    %c6_123 = arith.constant 6 : index
    %c0_124 = arith.constant 0 : index
    %c0_125 = arith.constant 0 : index
    %127 = vector.load %arg5[%c6_123, %c0_124, %c0_125] : memref<9x64x64xbf16, #tpu.memory_space<vmem>>, vector<1x64x64xbf16>
    %128 = vector.shape_cast %127 : vector<1x64x64xbf16> to vector<64x64xbf16>
    %cst_126 = arith.constant dense<0.000000e+00> : vector<256x64xf32>
    %129 = tpu.matmul %126, %128, %cst_126 {dimension_numbers = #tpu.dot_dimension_numbers<[1], [0], [0], [1], [0, 0, 1, 1], [], []>} : vector<256x64xbf16>, vector<64x64xbf16>, vector<256x64xf32> -> vector<256x64xf32>
    %130 = arith.addf %123, %129 : vector<256x64xf32>
    %c2_127 = arith.constant 2 : index
    %c1_128 = arith.constant 1 : index
    %c0_129 = arith.constant 0 : index
    %131 = vector.load %arg10[%c2_127, %c1_128, %c0_129] : memref<18x18x64xf32, #tpu.memory_space<vmem>>, vector<16x16x64xf32>
    %132 = vector.shape_cast %131 : vector<16x16x64xf32> to vector<256x64xf32>
    %133 = arith.truncf %132 : vector<256x64xf32> to vector<256x64xbf16>
    %c7_130 = arith.constant 7 : index
    %c0_131 = arith.constant 0 : index
    %c0_132 = arith.constant 0 : index
    %134 = vector.load %arg5[%c7_130, %c0_131, %c0_132] : memref<9x64x64xbf16, #tpu.memory_space<vmem>>, vector<1x64x64xbf16>
    %135 = vector.shape_cast %134 : vector<1x64x64xbf16> to vector<64x64xbf16>
    %cst_133 = arith.constant dense<0.000000e+00> : vector<256x64xf32>
    %136 = tpu.matmul %133, %135, %cst_133 {dimension_numbers = #tpu.dot_dimension_numbers<[1], [0], [0], [1], [0, 0, 1, 1], [], []>} : vector<256x64xbf16>, vector<64x64xbf16>, vector<256x64xf32> -> vector<256x64xf32>
    %137 = arith.addf %130, %136 : vector<256x64xf32>
    %c2_134 = arith.constant 2 : index
    %c2_135 = arith.constant 2 : index
    %c0_136 = arith.constant 0 : index
    %138 = vector.load %arg10[%c2_134, %c2_135, %c0_136] : memref<18x18x64xf32, #tpu.memory_space<vmem>>, vector<16x16x64xf32>
    %139 = vector.shape_cast %138 : vector<16x16x64xf32> to vector<256x64xf32>
    %140 = arith.truncf %139 : vector<256x64xf32> to vector<256x64xbf16>
    %c8_137 = arith.constant 8 : index
    %c0_138 = arith.constant 0 : index
    %c0_139 = arith.constant 0 : index
    %141 = vector.load %arg5[%c8_137, %c0_138, %c0_139] : memref<9x64x64xbf16, #tpu.memory_space<vmem>>, vector<1x64x64xbf16>
    %142 = vector.shape_cast %141 : vector<1x64x64xbf16> to vector<64x64xbf16>
    %cst_140 = arith.constant dense<0.000000e+00> : vector<256x64xf32>
    %143 = tpu.matmul %140, %142, %cst_140 {dimension_numbers = #tpu.dot_dimension_numbers<[1], [0], [0], [1], [0, 0, 1, 1], [], []>} : vector<256x64xbf16>, vector<64x64xbf16>, vector<256x64xf32> -> vector<256x64xf32>
    %144 = arith.addf %137, %143 : vector<256x64xf32>
    %c0_141 = arith.constant 0 : index
    %c0_142 = arith.constant 0 : index
    %145 = vector.load %arg6[%c0_141, %c0_142] : memref<1x64xf32, #tpu.memory_space<vmem>>, vector<1x64xf32>
    %146 = vector.broadcast %145 : vector<1x64xf32> to vector<256x64xf32>
    %147 = arith.mulf %144, %146 : vector<256x64xf32>
    %c0_143 = arith.constant 0 : index
    %c0_144 = arith.constant 0 : index
    %148 = vector.load %arg7[%c0_143, %c0_144] : memref<1x64xf32, #tpu.memory_space<vmem>>, vector<1x64xf32>
    %149 = vector.broadcast %148 : vector<1x64xf32> to vector<256x64xf32>
    %150 = arith.addf %147, %149 : vector<256x64xf32>
    %cst_145 = arith.constant 0.000000e+00 : f32
    %151 = vector.broadcast %cst_145 : f32 to vector<256x64xf32>
    %152 = arith.maximumf %150, %151 : vector<256x64xf32>
    %153 = vector.shape_cast %152 : vector<256x64xf32> to vector<16x16x64xf32>
    %154 = arith.truncf %153 : vector<16x16x64xf32> to vector<16x16x64xbf16>
    %c0_146 = arith.constant 0 : index
    %c0_147 = arith.constant 0 : index
    %c0_148 = arith.constant 0 : index
    %c0_149 = arith.constant 0 : index
    %155 = vector.load %arg8[%c0_146, %c0_147, %c0_148, %c0_149] : memref<1x16x16x64xbf16, #tpu.memory_space<vmem>>, vector<1x16x16x64xbf16>
    %156 = vector.shape_cast %155 : vector<1x16x16x64xbf16> to vector<16x16x64xbf16>
    %157 = vector.shape_cast %154 : vector<16x16x64xbf16> to vector<1x16x16x64xbf16>
    tpu.vector_store %arg8[%c0_146, %c0_147, %c0_148, %c0_149], %157 {strides = array<i32>} : memref<1x16x16x64xbf16, #tpu.memory_space<vmem>>, vector<1x16x16x64xbf16>,
    return
  }
  func.func @transform_0(%arg0: i32) -> (i32, i32, i32, i32) {
    %c0_i32 = arith.constant 0 : i32
    %c0_i32_0 = arith.constant 0 : i32
    %c0_i32_1 = arith.constant 0 : i32
    %c0_i32_2 = arith.constant 0 : i32
    return %arg0, %c0_i32, %c0_i32_0, %c0_i32_1 : i32, i32, i32, i32
  }
  func.func @transform_1(%arg0: i32) -> (i32, i32, i32) {
    %c0_i32 = arith.constant 0 : i32
    %c0_i32_0 = arith.constant 0 : i32
    %c0_i32_1 = arith.constant 0 : i32
    %c0_i32_2 = arith.constant 0 : i32
    return %c0_i32, %c0_i32_0, %c0_i32_1 : i32, i32, i32
  }
  func.func @transform_2(%arg0: i32) -> (i32, i32) {
    %c0_i32 = arith.constant 0 : i32
    %c0_i32_0 = arith.constant 0 : i32
    %c0_i32_1 = arith.constant 0 : i32
    return %c0_i32, %c0_i32_0 : i32, i32
  }
  func.func @transform_3(%arg0: i32) -> (i32, i32) {
    %c0_i32 = arith.constant 0 : i32
    %c0_i32_0 = arith.constant 0 : i32
    %c0_i32_1 = arith.constant 0 : i32
    return %c0_i32, %c0_i32_0 : i32, i32
  }
  func.func @transform_4(%arg0: i32) -> (i32, i32, i32) {
    %c0_i32 = arith.constant 0 : i32
    %c0_i32_0 = arith.constant 0 : i32
    %c0_i32_1 = arith.constant 0 : i32
    %c0_i32_2 = arith.constant 0 : i32
    return %c0_i32, %c0_i32_0, %c0_i32_1 : i32, i32, i32
  }
  func.func @transform_5(%arg0: i32) -> (i32, i32) {
    %c0_i32 = arith.constant 0 : i32
    %c0_i32_0 = arith.constant 0 : i32
    %c0_i32_1 = arith.constant 0 : i32
    return %c0_i32, %c0_i32_0 : i32, i32
  }
  func.func @transform_6(%arg0: i32) -> (i32, i32) {
    %c0_i32 = arith.constant 0 : i32
    %c0_i32_0 = arith.constant 0 : i32
    %c0_i32_1 = arith.constant 0 : i32
    return %c0_i32, %c0_i32_0 : i32, i32
  }
  func.func @transform_7(%arg0: i32) -> (i32, i32, i32, i32) {
    %c0_i32 = arith.constant 0 : i32
    %c0_i32_0 = arith.constant 0 : i32
    %c0_i32_1 = arith.constant 0 : i32
    %c0_i32_2 = arith.constant 0 : i32
    return %arg0, %c0_i32, %c0_i32_0, %c0_i32_1 : i32, i32, i32, i32
  }
}

</mosaic_0001>

<bundles_post_ra>
// kernel: tpu_custom_call.1
= control target key start
LH: loop header
LB: loop body
LE: loop exit
PB: predicated region body
PF: predicated region fallthrough
CT: control target
= control target key end

     0   :  { %12 = vsyncpa [#allocation5], 0  ;;  %s10724_s0 = inlined_call_operand.vmem [shape: f32[2,16,16,4], index: 0, kind: input, shape index: {}]   ;;  %s10725_s1 = inlined_call_operand.vmem [shape: bf16[9,4,64], index: 1, kind: input, shape index: {}]   ;;  %s10726_s2 = inlined_call_operand.vmem [shape: f32[1,64], index: 2, kind: input, shape index: {}]   ;;  %s10727_s3 = inlined_call_operand.vmem [shape: f32[1,64], index: 3, kind: input, shape index: {}]   ;;  %s10728_s4 = inlined_call_operand.vmem [shape: bf16[9,64,64], index: 4, kind: input, shape index: {}]   ;;  %s10729_s5 = inlined_call_operand.vmem [shape: f32[1,64], index: 5, kind: input, shape index: {}]   ;;  %s10730_s6 = inlined_call_operand.vmem [shape: f32[1,64], index: 6, kind: input, shape index: {}]   ;;  %s10731_s7 = inlined_call_operand.hbm [shape: bf16[2,16,16,64], index: 7, kind: output, shape index: {}]  }
   0x1   :  { %14 = vsyncpa [#allocation5 + $0x1], 0  ;;  %s8032_s24 = smov 0   ;;  %s8034_s25 = smov 0  }
   0x2   :  { %s8036_s26 = smov 0   ;;  %s8038_s27 = smov 0  }
   0x3 LB: > { %s8053_s28 = sadd.s32 4294967295, %s7986_s27   ;;  %s6362_s29 = sadd.s32 4294967294, %s7986_s27   ;;  %s7986_s27 = sphi %s8038_s27, %s11005_s27   ;;  %s7982_s26 = sphi %s8036_s26, %s11004_s26   ;;  %s7978_s25 = sphi %s8034_s25, %s11003_s25   ;;  %s7974_s24 = sphi %s8032_s24, %s11002_s24  }
   0x4   : > { %s8057_s30 = sadd.s32 1, %s7986_s27   ;;  %s179_s8 = sadd.s32 1, %s7982_s26 }
   0x5   : > { %s176_s9 = ssub.s32 %s7986_s27, %s8057_s30  ;;  %p189_p0 = scmp.ne.s32.totalorder %s7982_s26, %s7978_s25 }
   0x6   : > { %p177_p1 = scmp.eq.s32.totalorder %s176_s9, 0  ;;  %p190_p2 = scmp.eq.s32.totalorder %s8053_s28, 1 }
   0x7   : > { %p195_p3 = scmp.ne.s32.totalorder %s7978_s25, %s7974_s24  ;;  %p196_p4 = scmp.eq.s32.totalorder %s6362_s29, 1 }
   0x8   : > { %s8068_s10 = scalar_select %p177_p1, %s7982_s26, %s179_s8  }
   0x9   : > { %p8070_p5 = por %p190_p2, %p189_p0  ;;  %p8074_p6 = por %p196_p4, %p195_p3 }
   0xa   : > { %p6365_p7 = scmp.ge.s32.totalorder %s7986_s27, 1  ;;  %p240_p8 = scmp.lt.s32.totalorder %s7986_s27, 3 }
   0xc   : > { %p241_p9 = pnand %p6365_p7, %p240_p8 }
   0xe   : > { %244 = sbr.rel (%p241_p9) target bundleno = 1068 (0x42c), region = 48 }
  0x13   : > { %v6369_v0 = vld [vmem:[%s10725_s1 + $0x2] sm:$0x3]  ;;  %vm546_vm0 = vcmask 1041408   ;;  %v447_v1 = vld [vmem:[%s10725_s1] sm:$0x3]  ;;  %vm278_vm1 = vcmask 31744  }
  0x14   : > { %7839 = vmatprep.subr.msk.bf16.mxu0 %vm546_vm0, %v6369_v0  ;;  %v548_v2 = vsel %vm546_vm0, %v6369_v0, 0  ;;  %7840 = vmatprep.subr.msk.bf16.mxu1 %vm546_vm0, %v447_v1  ;;  %v760_v3 = vsel %vm546_vm0, %v447_v1, 0  ;;  %vm281_vm2 = vcmask 25600   ;;  %v8093_v4 = vld [vmem:[%s10725_s1 + $0x4] sm:$0x3]  ;;  %v7988_v5 = vmov 0.0  }
  0x15   : > { %7174 = vmatpush3.bf16.msra.mxu0 %v548_v2  ;;  %7208 = vmatpush3.bf16.msra.mxu1 %v760_v3  ;;  %279 = vst.msk [vmem:[#allocation2] sm:$0xff] %vm278_vm1, %v7988_v5  ;;  %280 = vst.msk [vmem:[#allocation2 + $0x8] sm:$0xff] %vm278_vm1, %v7988_v5  ;;  %p272_p10 = scmp.lt.s32.totalorder %s8053_s28, 1  ;;  %v8207_v6 = vld [vmem:[%s10725_s1 + $0x6] sm:$0x3]  ;;  %v1022_v38 = vsel %vm546_vm0, %v8093_v4, 0 }
  0x16   : > { %282 = vst.msk [vmem:[#allocation2 + $0x10] sm:$0x3] %vm281_vm2, %v7988_v5  ;;  %285 = vst.msk [vmem:[#allocation2 + $0x28] sm:$0x3] %vm281_vm2, %v7988_v5  ;;  %7841 = vmatprep.subr.msk.bf16.mxu0 %vm546_vm0, %v8093_v4  ;;  %7842 = vmatprep.subr.msk.bf16.mxu1 %vm546_vm0, %v8207_v6  ;;  %v1316_v46 = vsel %vm546_vm0, %v8207_v6, 0  ;;  %vm3092_vm3 = vcmask 523264  }
  0x17   : > { %283 = vst.msk [vmem:[#allocation2 + $0x18] sm:$0xff] %vm278_vm1, %v7988_v5  ;;  %284 = vst.msk [vmem:[#allocation2 + $0x20] sm:$0xff] %vm278_vm1, %v7988_v5  ;;  %s273_s21 = scalar_select %p272_p10, %s8053_s28, 1  ;;  %v8278_v47 = vld [vmem:[%s10725_s1 + $0x8] sm:$0x3]  ;;  %vm3095_vm4 = vcmask 517120  }
  0x18   : > { %286 = vst.msk [vmem:[#allocation2 + $0x30] sm:$0xff] %vm278_vm1, %v7988_v5  ;;  %287 = vst.msk [vmem:[#allocation2 + $0x38] sm:$0xff] %vm278_vm1, %v7988_v5  ;;  %s269_s16 = sand.u32 1, %s7978_s25   ;;  %vm6253_vm5 = vcmask 519168   ;;  %s7989_s13 = smov [#allocation4]  }
  0x19   : > { %288 = vst.msk [vmem:[#allocation2 + $0x40] sm:$0x3] %vm281_vm2, %v7988_v5  ;;  %291 = vst.msk [vmem:[#allocation2 + $0x58] sm:$0x3] %vm281_vm2, %v7988_v5  ;;  %s6806_s22 = sshll.u32 %s273_s21, 8  ;;  %s6366_s19 = sshll.u32 %s269_s16, 7 }
  0x1a   : > { %289 = vst.msk [vmem:[#allocation2 + $0x48] sm:$0xff] %vm278_vm1, %v7988_v5  ;;  %290 = vst.msk [vmem:[#allocation2 + $0x50] sm:$0xff] %vm278_vm1, %v7988_v5  ;;  %s8217_s8 = scalar_lea.vmem %s10724_s0, %s6806_s22  ;;  %s10452_s20 = scalar_lea.vmem [#allocation4], %s6366_s19 }
  0x1b   : > { %292 = vst.msk [vmem:[#allocation2 + $0x60] sm:$0xff] %vm278_vm1, %v7988_v5  ;;  %293 = vst.msk [vmem:[#allocation2 + $0x68] sm:$0xff] %vm278_vm1, %v7988_v5  ;;  %v334_v7 = vld [vmem:[%s8217_s8] sm:$0xff]  ;;  %v335_v8 = vld [vmem:[%s8217_s8 + $0x8] sm:$0xff]  ;;  %s6839_s21 = sshll.u32 %s8053_s28, 11  ;;  %s6300_s22 = sshll.u32 %s10452_s20, 4  ;;  %s10676_s22 = int_to_ptr.vmem [resolvable:$true] %s6300_s22 }
  0x1c   : > { %294 = vst.msk [vmem:[#allocation2 + $0x70] sm:$0x3] %vm281_vm2, %v7988_v5  ;;  %297 = vst.msk [vmem:[#allocation2 + $0x88] sm:$0x3] %vm281_vm2, %v7988_v5  ;;  %v336_v9 = vld [vmem:[%s8217_s8 + $0x10] sm:$0xff]  ;;  %v448_v10 = vld [vmem:[#allocation2 + $0x1] sm:$0xff] }
  0x1d   : > { %295 = vst.msk [vmem:[#allocation2 + $0x78] sm:$0xff] %vm278_vm1, %v7988_v5  ;;  %296 = vst.msk [vmem:[#allocation2 + $0x80] sm:$0xff] %vm278_vm1, %v7988_v5  ;;  %v449_v11 = vld [vmem:[#allocation2 + $0x9] sm:$0xff]  ;;  %v399_v12 = vld [vmem:[#allocation2] sm:$0xff]  ;;  %s10684_s28 = scalar_lea.sflag [#allocation5], %s269_s16  ;;  %s7926_s9 = scalar_lea.vmem %s10676_s22, 2048 }
  0x1e   : > { %298 = vst.msk [vmem:[#allocation2 + $0x90] sm:$0xff] %vm278_vm1, %v7988_v5  ;;  %299 = vst.msk [vmem:[#allocation2 + $0x98] sm:$0xff] %vm278_vm1, %v7988_v5  ;;  %v480_v13 = vpack.c.bf16 %v449_v11, %v448_v10  ;;  %v400_v14 = vld [vmem:[#allocation2 + $0x8] sm:$0xff]  ;;  %v337_v15 = vld [vmem:[%s8217_s8 + $0x18] sm:$0xff]  ;;  %p7927_p11 = scmp.ne.s32.totalorder %s10676_s22, %s7926_s9  ;;  %s7930_s14 = sshll.u32 %s7989_s13, 4  ;;  %s7931_s14 = int_to_ptr.vmem [resolvable:$false] %s7930_s14 }
  0x1f   : > { %300 = vst.msk [vmem:[#allocation2 + $0xa0] sm:$0x3] %vm281_vm2, %v7988_v5  ;;  %303 = vst.msk [vmem:[#allocation2 + $0xb8] sm:$0x3] %vm281_vm2, %v7988_v5  ;;  %v338_v16 = vld [vmem:[%s8217_s8 + $0x20] sm:$0xff]  ;;  %v431_v17 = vpack.c.bf16 %v400_v14, %v399_v12  ;;  %v339_v18 = vld [vmem:[%s8217_s8 + $0x28] sm:$0xff]  ;;  %p7933_p0 = scmp.lt.s32.totalorder %s10676_s22, %s7931_s14 }
  0x20   : > { %301 = vst.msk [vmem:[#allocation2 + $0xa8] sm:$0xff] %vm278_vm1, %v7988_v5  ;;  %302 = vst.msk [vmem:[#allocation2 + $0xb0] sm:$0xff] %vm278_vm1, %v7988_v5  ;;  %v340_v19 = vld [vmem:[%s8217_s8 + $0x30] sm:$0xff]  ;;  %v341_v20 = vld [vmem:[%s8217_s8 + $0x38] sm:$0xff]  ;;  %7175 = vmatprep.mubr.msk.bf16.mxu0 %vm278_vm1, %v480_v13  ;;  %p7928_p12 = pnand %p7927_p11, %p8070_p5  ;;  %s7932_s15 = scalar_lea.vmem %s7931_s14, 4096 }
  0x21   : > { %304 = vst.msk [vmem:[#allocation2 + $0xc0] sm:$0xff] %vm278_vm1, %v7988_v5  ;;  %305 = vst.msk [vmem:[#allocation2 + $0xc8] sm:$0xff] %vm278_vm1, %v7988_v5  ;;  %v342_v21 = vld [vmem:[%s8217_s8 + $0x40] sm:$0xff]  ;;  %v343_v22 = vld [vmem:[%s8217_s8 + $0x48] sm:$0xff]  ;;  %7209 = vmatprep.mubr.msk.bf16.mxu1 %vm278_vm1, %v431_v17  ;;  %p7934_p1 = scmp.lt.s32.totalorder %s7932_s15, %s7926_s9 }
  0x22   : > { %306 = vst.msk [vmem:[#allocation2 + $0xd0] sm:$0x3] %vm281_vm2, %v7988_v5  ;;  %309 = vst.msk [vmem:[#allocation2 + $0xe8] sm:$0x3] %vm281_vm2, %v7988_v5  ;;  %v344_v23 = vld [vmem:[%s8217_s8 + $0x50] sm:$0xff]  ;;  %v345_v24 = vld [vmem:[%s8217_s8 + $0x58] sm:$0xff]  ;;  %p7929_p13 = pneg %p7928_p12 }
  0x23   : > { %307 = vst.msk [vmem:[#allocation2 + $0xd8] sm:$0xff] %vm278_vm1, %v7988_v5  ;;  %308 = vst.msk [vmem:[#allocation2 + $0xe0] sm:$0xff] %vm278_vm1, %v7988_v5  ;;  %v346_v25 = vld [vmem:[%s8217_s8 + $0x60] sm:$0xff]  ;;  %v347_v26 = vld [vmem:[%s8217_s8 + $0x68] sm:$0xff]  ;;  %p7935_p2 = por %p7934_p1, %p7933_p0 }
  0x24   : > { %310 = vst.msk [vmem:[#allocation2 + $0xf0] sm:$0xff] %vm278_vm1, %v7988_v5  ;;  %311 = vst.msk [vmem:[#allocation2 + $0xf8] sm:$0xff] %vm278_vm1, %v7988_v5  ;;  %v348_v27 = vld [vmem:[%s8217_s8 + $0x70] sm:$0xff]  ;;  %v349_v28 = vld [vmem:[%s8217_s8 + $0x78] sm:$0xff] }
  0x25   : > { %312 = vst.msk [vmem:[#allocation2 + $0x100] sm:$0x3] %vm281_vm2, %v7988_v5  ;;  %315 = vst.msk [vmem:[#allocation2 + $0x118] sm:$0x3] %vm281_vm2, %v7988_v5  ;;  %v350_v29 = vld [vmem:[%s8217_s8 + $0x80] sm:$0xff]  ;;  %v351_v30 = vld [vmem:[%s8217_s8 + $0x88] sm:$0xff]  ;;  %p7936_p3 = pnand %p7935_p2, %p7929_p13 }
  0x26   : > { %313 = vst.msk [vmem:[#allocation2 + $0x108] sm:$0xff] %vm278_vm1, %v7988_v5  ;;  %314 = vst.msk [vmem:[#allocation2 + $0x110] sm:$0xff] %vm278_vm1, %v7988_v5  ;;  %v352_v31 = vld [vmem:[%s8217_s8 + $0x90] sm:$0xff]  ;;  %v353_v32 = vld [vmem:[%s8217_s8 + $0x98] sm:$0xff] }
  0x27   : > { %316 = vst.msk [vmem:[#allocation2 + $0x120] sm:$0xff] %vm278_vm1, %v7988_v5  ;;  %317 = vst.msk [vmem:[#allocation2 + $0x128] sm:$0xff] %vm278_vm1, %v7988_v5  ;;  %v354_v4 = vld [vmem:[%s8217_s8 + $0xa0] sm:$0xff]  ;;  %v355_v6 = vld [vmem:[%s8217_s8 + $0xa8] sm:$0xff] }
  0x28   : > { %318 = vst.msk [vmem:[#allocation2 + $0x130] sm:$0x3] %vm281_vm2, %v7988_v5  ;;  %321 = vst.msk [vmem:[#allocation2 + $0x148] sm:$0x3] %vm281_vm2, %v7988_v5  ;;  %v359_v11 = vld [vmem:[%s8217_s8 + $0xc8] sm:$0xff]  ;;  %v360_v12 = vld [vmem:[%s8217_s8 + $0xd0] sm:$0xff] }
  0x29   : > { %319 = vst.msk [vmem:[#allocation2 + $0x138] sm:$0xff] %vm278_vm1, %v7988_v5  ;;  %320 = vst.msk [vmem:[#allocation2 + $0x140] sm:$0xff] %vm278_vm1, %v7988_v5  ;;  %v361_v13 = vld [vmem:[%s8217_s8 + $0xd8] sm:$0xff]  ;;  %v363_v17 = vld [vmem:[%s8217_s8 + $0xe8] sm:$0xff] }
  0x2a   : > { %322 = vst.msk [vmem:[#allocation2 + $0x150] sm:$0xff] %vm278_vm1, %v7988_v5  ;;  %323 = vst.msk [vmem:[#allocation2 + $0x158] sm:$0xff] %vm278_vm1, %v7988_v5 }
  0x2b   : > { %324 = vst.msk [vmem:[#allocation2 + $0x160] sm:$0x3] %vm281_vm2, %v7988_v5  ;;  %327 = vst.msk [vmem:[#allocation2 + $0x178] sm:$0x3] %vm281_vm2, %v7988_v5 }
  0x2c   : > { %325 = vst.msk [vmem:[#allocation2 + $0x168] sm:$0xff] %vm278_vm1, %v7988_v5  ;;  %326 = vst.msk [vmem:[#allocation2 + $0x170] sm:$0xff] %vm278_vm1, %v7988_v5 }
  0x2d   : > { %328 = vst.msk [vmem:[#allocation2 + $0x180] sm:$0xff] %vm278_vm1, %v7988_v5  ;;  %329 = vst.msk [vmem:[#allocation2 + $0x188] sm:$0xff] %vm278_vm1, %v7988_v5 }
  0x2e   : > { %330 = vst.msk [vmem:[#allocation2 + $0x190] sm:$0x3] %vm281_vm2, %v7988_v5  ;;  %333 = vst.msk [vmem:[#allocation2 + $0x1a8] sm:$0x3] %vm281_vm2, %v7988_v5 }
  0x2f   : > { %331 = vst.msk [vmem:[#allocation2 + $0x198] sm:$0xff] %vm278_vm1, %v7988_v5  ;;  %332 = vst.msk [vmem:[#allocation2 + $0x1a0] sm:$0xff] %vm278_vm1, %v7988_v5 }
  0x30   : > { %367 = vst.msk [vmem:[#allocation2 + $0x19] sm:$0xff] %vm278_vm1, %v334_v7  ;;  %368 = vst.msk [vmem:[#allocation2 + $0x21] sm:$0xff] %vm278_vm1, %v335_v8  ;;  %v356_v7 = vld [vmem:[%s8217_s8 + $0xb0] sm:$0xff]  ;;  %v357_v8 = vld [vmem:[%s8217_s8 + $0xb8] sm:$0xff] }
  0x31   : > { %369 = vst.msk [vmem:[#allocation2 + $0x31] sm:$0xff] %vm278_vm1, %v336_v9  ;;  %370 = vst.msk [vmem:[#allocation2 + $0x39] sm:$0xff] %vm278_vm1, %v337_v15  ;;  %v358_v9 = vld [vmem:[%s8217_s8 + $0xc0] sm:$0xff] }
  0x32   : > { %371 = vst.msk [vmem:[#allocation2 + $0x49] sm:$0xff] %vm278_vm1, %v338_v16  ;;  %372 = vst.msk [vmem:[#allocation2 + $0x51] sm:$0xff] %vm278_vm1, %v339_v18  ;;  %v362_v16 = vld [vmem:[%s8217_s8 + $0xe0] sm:$0xff] }
  0x33   : > { %373 = vst.msk [vmem:[#allocation2 + $0x61] sm:$0xff] %vm278_vm1, %v340_v19  ;;  %374 = vst.msk [vmem:[#allocation2 + $0x69] sm:$0xff] %vm278_vm1, %v341_v20 }
  0x34   : > { %375 = vst.msk [vmem:[#allocation2 + $0x79] sm:$0xff] %vm278_vm1, %v342_v21  ;;  %376 = vst.msk [vmem:[#allocation2 + $0x81] sm:$0xff] %vm278_vm1, %v343_v22 }
  0x35   : > { %377 = vst.msk [vmem:[#allocation2 + $0x91] sm:$0xff] %vm278_vm1, %v344_v23  ;;  %378 = vst.msk [vmem:[#allocation2 + $0x99] sm:$0xff] %vm278_vm1, %v345_v24 }
  0x36   : > { %379 = vst.msk [vmem:[#allocation2 + $0xa9] sm:$0xff] %vm278_vm1, %v346_v25  ;;  %380 = vst.msk [vmem:[#allocation2 + $0xb1] sm:$0xff] %vm278_vm1, %v347_v26 }
  0x37   : > { %381 = vst.msk [vmem:[#allocation2 + $0xc1] sm:$0xff] %vm278_vm1, %v348_v27  ;;  %382 = vst.msk [vmem:[#allocation2 + $0xc9] sm:$0xff] %vm278_vm1, %v349_v28  ;;  %v450_v33 = vld [vmem:[#allocation2 + $0x19] sm:$0xff]  ;;  %v451_v34 = vld [vmem:[#allocation2 + $0x21] sm:$0xff] }
  0x38   : > { %383 = vst.msk [vmem:[#allocation2 + $0xd9] sm:$0xff] %vm278_vm1, %v350_v29  ;;  %v401_v35 = vld [vmem:[#allocation2 + $0x18] sm:$0xff]  ;;  %384 = vst.msk [vmem:[#allocation2 + $0xe1] sm:$0xff] %vm278_vm1, %v351_v30  ;;  %v8261_v36 = vpack.c.bf16 %v451_v34, %v450_v33  ;;  %v402_v37 = vld [vmem:[#allocation2 + $0x20] sm:$0xff] }
  0x39   : > { %385 = vst.msk [vmem:[#allocation2 + $0xf1] sm:$0xff] %vm278_vm1, %v352_v31  ;;  %386 = vst.msk [vmem:[#allocation2 + $0xf9] sm:$0xff] %vm278_vm1, %v353_v32  ;;  %v452_v39 = vld [vmem:[#allocation2 + $0x31] sm:$0xff]  ;;  %v8265_v41 = vpack.c.bf16 %v402_v37, %v401_v35  ;;  %v453_v42 = vld [vmem:[#allocation2 + $0x39] sm:$0xff] }
  0x3a   : > { %v403_v40 = vld [vmem:[#allocation2 + $0x30] sm:$0xff]  ;;  %v404_v43 = vld [vmem:[#allocation2 + $0x38] sm:$0xff]  ;;  %7176 = vmatmul.mubr.msk.bf16.vlgmr.msra.gmra.mxu0 %vm278_vm1, %v8261_v36  ;;  %v8269_v44 = vpack.c.bf16 %v453_v42, %v452_v39  ;;  %v405_v50 = vld [vmem:[#allocation2 + $0x48] sm:$0xff]  ;;  %387 = vst.msk [vmem:[#allocation2 + $0x109] sm:$0xff] %vm278_vm1, %v354_v4 }
  0x3b   : > { %v8271_v45 = vpack.c.bf16 %v404_v43, %v403_v40  ;;  %7210 = vmatmul.mubr.msk.bf16.vlgmr.msra.gmra.mxu1 %vm278_vm1, %v8265_v41  ;;  %7242 = vmatpush3.bf16.msra.mxu0 %v1022_v38  ;;  %v454_v48 = vld [vmem:[#allocation2 + $0x49] sm:$0xff]  ;;  %v455_v49 = vld [vmem:[#allocation2 + $0x51] sm:$0xff]  ;;  %v456_v52 = vld [vmem:[#allocation2 + $0x61] sm:$0xff]  ;;  %388 = vst.msk [vmem:[#allocation2 + $0x111] sm:$0xff] %vm278_vm1, %v355_v6 }
  0x3c   : > { %7179 = vmatprep.mubr.msk.bf16.mxu0 %vm278_vm1, %v8269_v44  ;;  %v406_v51 = vld [vmem:[#allocation2 + $0x50] sm:$0xff]  ;;  %v407_v54 = vld [vmem:[#allocation2 + $0x60] sm:$0xff]  ;;  %v408_v55 = vld [vmem:[#allocation2 + $0x68] sm:$0xff]  ;;  %7276 = vmatpush3.bf16.msra.mxu1 %v1316_v46  ;;  %v8288_v56 = vpack.c.bf16 %v455_v49, %v454_v48  ;;  %389 = vst.msk [vmem:[#allocation2 + $0x121] sm:$0xff] %vm278_vm1, %v356_v7 }
  0x3d   : > { %7213 = vmatprep.mubr.msk.bf16.mxu1 %vm278_vm1, %v8271_v45  ;;  %v457_v53 = vld [vmem:[#allocation2 + $0x69] sm:$0xff]  ;;  %7843 = vmatprep.subr.msk.bf16.mxu0 %vm546_vm0, %v8278_v47  ;;  %v8290_v57 = vpack.c.bf16 %v406_v51, %v405_v50  ;;  %v8294_v59 = vpack.c.bf16 %v408_v55, %v407_v54  ;;  %v458_v60 = vld [vmem:[#allocation2 + $0x79] sm:$0xff]  ;;  %v459_v61 = vld [vmem:[#allocation2 + $0x81] sm:$0xff]  ;;  %390 = vst.msk [vmem:[#allocation2 + $0x129] sm:$0xff] %vm278_vm1, %v357_v8 }
  0x3e   : > { %v8292_v58 = vpack.c.bf16 %v457_v53, %v456_v52  ;;  %v409_v62 = vld [vmem:[#allocation2 + $0x78] sm:$0xff]  ;;  %v410_v63 = vld [vmem:[#allocation2 + $0x80] sm:$0xff]  ;;  %v411_v2 = vld [vmem:[#allocation2 + $0x90] sm:$0xff]  ;;  %v8311_v10 = vpack.c.bf16 %v459_v61, %v458_v60  ;;  %391 = vst.msk [vmem:[#allocation2 + $0x139] sm:$0xff] %vm278_vm1, %v358_v9 }
  0x3f   : > { %v460_v0 = vld [vmem:[#allocation2 + $0x91] sm:$0xff]  ;;  %v461_v1 = vld [vmem:[#allocation2 + $0x99] sm:$0xff]  ;;  %v8319_v14 = vpack.c.bf16 %v410_v63, %v409_v62  ;;  %392 = vst.msk [vmem:[#allocation2 + $0x141] sm:$0xff] %vm278_vm1, %v359_v11  ;;  %393 = vst.msk [vmem:[#allocation2 + $0x151] sm:$0xff] %vm278_vm1, %v360_v12 }
  0x40   : > { %v412_v3 = vld [vmem:[#allocation2 + $0x98] sm:$0xff]  ;;  %v8321_v15 = vpack.c.bf16 %v461_v1, %v460_v0  ;;  %394 = vst.msk [vmem:[#allocation2 + $0x159] sm:$0xff] %vm278_vm1, %v361_v13  ;;  %395 = vst.msk [vmem:[#allocation2 + $0x169] sm:$0xff] %vm278_vm1, %v362_v16  ;;  %v462_v19 = vld [vmem:[#allocation2 + $0xa9] sm:$0xff] }
  0x41   : > { %v8328_v18 = vpack.c.bf16 %v412_v3, %v411_v2  ;;  %396 = vst.msk [vmem:[#allocation2 + $0x171] sm:$0xff] %vm278_vm1, %v363_v17  ;;  %v463_v20 = vld [vmem:[#allocation2 + $0xb1] sm:$0xff]  ;;  %v413_v21 = vld [vmem:[#allocation2 + $0xa8] sm:$0xff]  ;;  %v415_v25 = vld [vmem:[#allocation2 + $0xc0] sm:$0xff] }
  0x42   : > { %7180 = vmatmul.mubr.msk.bf16.gmra.mxu0 %vm278_vm1, %v8288_v56  ;;  %v414_v22 = vld [vmem:[#allocation2 + $0xb0] sm:$0xff]  ;;  %v464_v23 = vld [vmem:[#allocation2 + $0xc1] sm:$0xff]  ;;  %v8340_v27 = vpack.c.bf16 %v463_v20, %v462_v19  ;;  %v466_v31 = vld [vmem:[#allocation2 + $0xd9] sm:$0xff]  ;;  %3100 = vst.msk [vmem:[#allocation3 + $0x30] sm:$0xff] %vm3092_vm3, %v7988_v5 }
  0x43   : > { %7214 = vmatmul.mubr.msk.bf16.gmra.mxu1 %vm278_vm1, %v8290_v57  ;;  %7183 = vmatprep.mubr.msk.bf16.mxu0 %vm278_vm1, %v8292_v58  ;;  %v465_v24 = vld [vmem:[#allocation2 + $0xc9] sm:$0xff]  ;;  %v8342_v28 = vpack.c.bf16 %v414_v22, %v413_v21  ;;  %v467_v32 = vld [vmem:[#allocation2 + $0xe1] sm:$0xff]  ;;  %v417_v33 = vld [vmem:[#allocation2 + $0xd8] sm:$0xff]  ;;  %3101 = vst.msk [vmem:[#allocation3 + $0x38] sm:$0xff] %vm3092_vm3, %v7988_v5 }
  0x44   : > { %7217 = vmatprep.mubr.msk.bf16.mxu1 %vm278_vm1, %v8294_v59  ;;  %v416_v26 = vld [vmem:[#allocation2 + $0xc8] sm:$0xff]  ;;  %v8344_v29 = vpack.c.bf16 %v465_v24, %v464_v23  ;;  %v418_v34 = vld [vmem:[#allocation2 + $0xe0] sm:$0xff]  ;;  %v468_v35 = vld [vmem:[#allocation2 + $0xf1] sm:$0xff]  ;;  %v8356_v40 = vpack.c.bf16 %v467_v32, %v466_v31  ;;  %3093 = vst.msk [vmem:[#allocation3] sm:$0xff] %vm3092_vm3, %v7988_v5 }
  0x45   : > { %v8346_v30 = vpack.c.bf16 %v416_v26, %v415_v25  ;;  %v469_v37 = vld [vmem:[#allocation2 + $0xf9] sm:$0xff]  ;;  %v419_v38 = vld [vmem:[#allocation2 + $0xf0] sm:$0xff]  ;;  %v8358_v42 = vpack.c.bf16 %v418_v34, %v417_v33  ;;  %v6453_v52 = vld [vmem:[%s10725_s1 + $0xa] sm:$0x3]  ;;  %3094 = vst.msk [vmem:[#allocation3 + $0x8] sm:$0xff] %vm3092_vm3, %v7988_v5 }
  0x46   : > { %v420_v39 = vld [vmem:[#allocation2 + $0xf8] sm:$0xff]  ;;  %v8360_v43 = vpack.c.bf16 %v469_v37, %v468_v35  ;;  %v470_v48 = vld [vmem:[#allocation2 + $0x109] sm:$0xff]  ;;  %v472_v55 = vld [vmem:[#allocation2 + $0x121] sm:$0xff]  ;;  %7844 = vmatprep.subr.msk.bf16.mxu1 %vm546_vm0, %v6453_v52  ;;  %3097 = vst.msk [vmem:[#allocation3 + $0x18] sm:$0xff] %vm3092_vm3, %v7988_v5 }
  0x47   : > { %v8362_v46 = vpack.c.bf16 %v420_v39, %v419_v38  ;;  %v471_v49 = vld [vmem:[#allocation2 + $0x111] sm:$0xff]  ;;  %v421_v53 = vld [vmem:[#allocation2 + $0x108] sm:$0xff]  ;;  %v423_v61 = vld [vmem:[#allocation2 + $0x120] sm:$0xff]  ;;  %v1610_v39 = vsel %vm546_vm0, %v8278_v47, 0  ;;  %3098 = vst.msk [vmem:[#allocation3 + $0x20] sm:$0xff] %vm3092_vm3, %v7988_v5 }
  0x48   : > { %v364_v50 = vld [vmem:[%s8217_s8 + $0xf0] sm:$0xff]  ;;  %v365_v51 = vld [vmem:[%s8217_s8 + $0xf8] sm:$0xff]  ;;  %v424_v62 = vld [vmem:[#allocation2 + $0x128] sm:$0xff]  ;;  %v8380_v63 = vpack.c.bf16 %v471_v49, %v470_v48  ;;  %v1904_v49 = vsel %vm546_vm0, %v6453_v52, 0  ;;  %3103 = vst.msk [vmem:[#allocation3 + $0x48] sm:$0xff] %vm3092_vm3, %v7988_v5  ;;  %s10674_s8 = scalar_lea.hbm %s10731_s7, %s6839_s21 }
  0x49   : > { %v422_v54 = vld [vmem:[#allocation2 + $0x110] sm:$0xff]  ;;  %397 = vst.msk [vmem:[#allocation2 + $0x181] sm:$0xff] %vm278_vm1, %v364_v50  ;;  %398 = vst.msk [vmem:[#allocation2 + $0x189] sm:$0xff] %vm278_vm1, %v365_v51  ;;  %v8386_v2 = vpack.c.bf16 %v424_v62, %v423_v61  ;;  %v474_v3 = vld [vmem:[#allocation2 + $0x139] sm:$0xff] }
  0x4a   : > { %7184 = vmatmul.mubr.msk.bf16.gmra.mxu0 %vm278_vm1, %v8311_v10  ;;  %v473_v60 = vld [vmem:[#allocation2 + $0x129] sm:$0xff]  ;;  %v8382_v0 = vpack.c.bf16 %v422_v54, %v421_v53  ;;  %v475_v4 = vld [vmem:[#allocation2 + $0x141] sm:$0xff]  ;;  %v425_v6 = vld [vmem:[#allocation2 + $0x138] sm:$0xff]  ;;  %3104 = vst.msk [vmem:[#allocation3 + $0x50] sm:$0xff] %vm3092_vm3, %v7988_v5 }
  0x4b   : > { %7218 = vmatmul.mubr.msk.bf16.gmra.mxu1 %vm278_vm1, %v8319_v14  ;;  %7187 = vmatprep.mubr.msk.bf16.mxu0 %vm278_vm1, %v8321_v15  ;;  %v8384_v1 = vpack.c.bf16 %v473_v60, %v472_v55  ;;  %v426_v7 = vld [vmem:[#allocation2 + $0x140] sm:$0xff]  ;;  %v476_v8 = vld [vmem:[#allocation2 + $0x151] sm:$0xff]  ;;  %v8396_v13 = vpack.c.bf16 %v475_v4, %v474_v3  ;;  %v478_v20 = vld [vmem:[#allocation2 + $0x169] sm:$0xff]  ;;  %3106 = vst.msk [vmem:[#allocation3 + $0x60] sm:$0xff] %vm3092_vm3, %v7988_v5 }
  0x4c   : > { %7221 = vmatprep.mubr.msk.bf16.mxu1 %vm278_vm1, %v8328_v18  ;;  %v477_v9 = vld [vmem:[#allocation2 + $0x159] sm:$0xff]  ;;  %v427_v11 = vld [vmem:[#allocation2 + $0x150] sm:$0xff]  ;;  %v8398_v16 = vpack.c.bf16 %v426_v7, %v425_v6  ;;  %v923_v22 = vld [vmem:[#allocation2 + $0x2] sm:$0xff]  ;;  %3107 = vst.msk [vmem:[#allocation3 + $0x68] sm:$0xff] %vm3092_vm3, %v7988_v5 }
  0x4d   : > { %v428_v12 = vld [vmem:[#allocation2 + $0x158] sm:$0xff]  ;;  %v8400_v17 = vpack.c.bf16 %v477_v9, %v476_v8  ;;  %v924_v23 = vld [vmem:[#allocation2 + $0xa] sm:$0xff]  ;;  %v926_v34 = vld [vmem:[#allocation2 + $0x22] sm:$0xff]  ;;  %3109 = vst.msk [vmem:[#allocation3 + $0x78] sm:$0xff] %vm3092_vm3, %v7988_v5 }
  0x4e   : > { %v8402_v19 = vpack.c.bf16 %v428_v12, %v427_v11  ;;  %v479_v21 = vld [vmem:[#allocation2 + $0x171] sm:$0xff]  ;;  %v429_v24 = vld [vmem:[#allocation2 + $0x168] sm:$0xff]  ;;  %v955_v32 = vpack.c.bf16 %v924_v23, %v923_v22  ;;  %v925_v33 = vld [vmem:[#allocation2 + $0x1a] sm:$0xff]  ;;  %3110 = vst.msk [vmem:[#allocation3 + $0x80] sm:$0xff] %vm3092_vm3, %v7988_v5 }
  0x4f   : > { %v430_v25 = vld [vmem:[#allocation2 + $0x170] sm:$0xff]  ;;  %v8412_v26 = vpack.c.bf16 %v479_v21, %v478_v20  ;;  %v928_v37 = vld [vmem:[#allocation2 + $0x3a] sm:$0xff]  ;;  %v8423_v38 = vpack.c.bf16 %v926_v34, %v925_v33  ;;  %v8435_v50 = vld [vmem:[%s10725_s1 + $0xc] sm:$0x3]  ;;  %3112 = vst.msk [vmem:[#allocation3 + $0x90] sm:$0xff] %vm3092_vm3, %v7988_v5 }
  0x50   : > { %v8414_v31 = vpack.c.bf16 %v430_v25, %v429_v24  ;;  %v927_v35 = vld [vmem:[#allocation2 + $0x32] sm:$0xff]  ;;  %v8442_v47 = vld [vmem:[%s10725_s1 + $0xe] sm:$0x3]  ;;  %v931_v52 = vld [vmem:[#allocation2 + $0x62] sm:$0xff]  ;;  %3113 = vst.msk [vmem:[#allocation3 + $0x98] sm:$0xff] %vm3092_vm3, %v7988_v5 }
  0x51   : > { %v8427_v48 = vpack.c.bf16 %v928_v37, %v927_v35  ;;  %v930_v51 = vld [vmem:[#allocation2 + $0x52] sm:$0xff]  ;;  %v932_v53 = vld [vmem:[#allocation2 + $0x6a] sm:$0xff]  ;;  %v933_v60 = vld [vmem:[#allocation2 + $0x7a] sm:$0xff]  ;;  %3115 = vst.msk [vmem:[#allocation3 + $0xa8] sm:$0xff] %vm3092_vm3, %v7988_v5 }
  0x52   : > { %7188 = vmatmul.mubr.msk.bf16.gmra.mxu0 %vm278_vm1, %v8340_v27  ;;  %v8454_v55 = vpack.c.bf16 %v932_v53, %v931_v52  ;;  %v934_v61 = vld [vmem:[#allocation2 + $0x82] sm:$0xff]  ;;  %v935_v62 = vld [vmem:[#allocation2 + $0x92] sm:$0xff]  ;;  %v936_v3 = vld [vmem:[#allocation2 + $0x9a] sm:$0xff]  ;;  %3116 = vst.msk [vmem:[#allocation3 + $0xb0] sm:$0xff] %vm3092_vm3, %v7988_v5 }
  0x53   : > { %7222 = vmatmul.mubr.msk.bf16.gmra.mxu1 %vm278_vm1, %v8342_v28  ;;  %7191 = vmatprep.mubr.msk.bf16.mxu0 %vm278_vm1, %v8344_v29  ;;  %v8464_v4 = vpack.c.bf16 %v934_v61, %v933_v60  ;;  %v8466_v6 = vpack.c.bf16 %v936_v3, %v935_v62  ;;  %v937_v7 = vld [vmem:[#allocation2 + $0xaa] sm:$0xff]  ;;  %v938_v8 = vld [vmem:[#allocation2 + $0xb2] sm:$0xff]  ;;  %v939_v9 = vld [vmem:[#allocation2 + $0xc2] sm:$0xff]  ;;  %3118 = vst.msk [vmem:[#allocation3 + $0xc0] sm:$0xff] %vm3092_vm3, %v7988_v5 }
  0x54   : > { %7225 = vmatprep.mubr.msk.bf16.mxu1 %vm278_vm1, %v8346_v30  ;;  %v940_v11 = vld [vmem:[#allocation2 + $0xca] sm:$0xff]  ;;  %v8476_v12 = vpack.c.bf16 %v938_v8, %v937_v7  ;;  %v941_v21 = vld [vmem:[#allocation2 + $0xda] sm:$0xff]  ;;  %v942_v22 = vld [vmem:[#allocation2 + $0xe2] sm:$0xff]  ;;  %3119 = vst.msk [vmem:[#allocation3 + $0xc8] sm:$0xff] %vm3092_vm3, %v7988_v5 }
  0x55   : > { %v8478_v20 = vpack.c.bf16 %v940_v11, %v939_v9  ;;  %v943_v23 = vld [vmem:[#allocation2 + $0xf2] sm:$0xff]  ;;  %v944_v24 = vld [vmem:[#allocation2 + $0xfa] sm:$0xff]  ;;  %v8488_v25 = vpack.c.bf16 %v942_v22, %v941_v21  ;;  %v945_v33 = vld [vmem:[#allocation2 + $0x10a] sm:$0xff]  ;;  %v2199_v21 = vsel %vm546_vm0, %v8435_v50, 0  ;;  %v2493_v22 = vsel %vm546_vm0, %v8442_v47, 0  ;;  %3121 = vst.msk [vmem:[#allocation3 + $0xd8] sm:$0xff] %vm3092_vm3, %v7988_v5 }
  0x56   : > { %v946_v34 = vld [vmem:[#allocation2 + $0x112] sm:$0xff]  ;;  %v947_v35 = vld [vmem:[#allocation2 + $0x122] sm:$0xff]  ;;  %v948_v37 = vld [vmem:[#allocation2 + $0x12a] sm:$0xff]  ;;  %3122 = vst.msk [vmem:[#allocation3 + $0xe0] sm:$0xff] %vm3092_vm3, %v7988_v5 }
  0x57   : > { %v951_v52 = vld [vmem:[#allocation2 + $0x152] sm:$0xff]  ;;  %v952_v53 = vld [vmem:[#allocation2 + $0x15a] sm:$0xff]  ;;  %v953_v62 = vld [vmem:[#allocation2 + $0x16a] sm:$0xff]  ;;  %3124 = vst.msk [vmem:[#allocation3 + $0xf0] sm:$0xff] %vm3092_vm3, %v7988_v5 }
  0x58   : > { %v969_v61 = vpack.c.bf16 %v952_v53, %v951_v52  ;;  %v954_v3 = vld [vmem:[#allocation2 + $0x172] sm:$0xff]  ;;  %v1247_v7 = vld [vmem:[#allocation2 + $0x180] sm:$0xff]  ;;  %v1248_v8 = vld [vmem:[#allocation2 + $0x188] sm:$0xff]  ;;  %3125 = vst.msk [vmem:[#allocation3 + $0xf8] sm:$0xff] %vm3092_vm3, %v7988_v5 }
  0x59   : > { %v970_v9 = vpack.c.bf16 %v954_v3, %v953_v62  ;;  %v8509_v11 = vpack.c.bf16 %v1248_v8, %v1247_v7  ;;  %3127 = vst.msk [vmem:[#allocation3 + $0x108] sm:$0xff] %vm3092_vm3, %v7988_v5  ;;  %3128 = vst.msk [vmem:[#allocation3 + $0x110] sm:$0xff] %vm3092_vm3, %v7988_v5 }
  0x5a   : > { %7192 = vmatmul.mubr.msk.bf16.gmra.mxu0 %vm278_vm1, %v8356_v40  ;;  %3130 = vst.msk [vmem:[#allocation3 + $0x120] sm:$0xff] %vm3092_vm3, %v7988_v5  ;;  %3131 = vst.msk [vmem:[#allocation3 + $0x128] sm:$0xff] %vm3092_vm3, %v7988_v5 }
  0x5b   : > { %7226 = vmatmul.mubr.msk.bf16.gmra.mxu1 %vm278_vm1, %v8358_v42  ;;  %7195 = vmatprep.mubr.msk.bf16.mxu0 %vm278_vm1, %v8360_v43  ;;  %3133 = vst.msk [vmem:[#allocation3 + $0x138] sm:$0xff] %vm3092_vm3, %v7988_v5  ;;  %3134 = vst.msk [vmem:[#allocation3 + $0x140] sm:$0xff] %vm3092_vm3, %v7988_v5 }
  0x5c   : > { %7229 = vmatprep.mubr.msk.bf16.mxu1 %vm278_vm1, %v8362_v46  ;;  %3136 = vst.msk [vmem:[#allocation3 + $0x150] sm:$0xff] %vm3092_vm3, %v7988_v5  ;;  %3137 = vst.msk [vmem:[#allocation3 + $0x158] sm:$0xff] %vm3092_vm3, %v7988_v5 }
  0x5d   : > { %3139 = vst.msk [vmem:[#allocation3 + $0x168] sm:$0xff] %vm3092_vm3, %v7988_v5  ;;  %3140 = vst.msk [vmem:[#allocation3 + $0x170] sm:$0xff] %vm3092_vm3, %v7988_v5 }
  0x5e   : > { %3142 = vst.msk [vmem:[#allocation3 + $0x180] sm:$0xff] %vm3092_vm3, %v7988_v5  ;;  %3143 = vst.msk [vmem:[#allocation3 + $0x188] sm:$0xff] %vm3092_vm3, %v7988_v5 }
  0x5f   : > { %3145 = vst.msk [vmem:[#allocation3 + $0x198] sm:$0xff] %vm3092_vm3, %v7988_v5  ;;  %3146 = vst.msk [vmem:[#allocation3 + $0x1a0] sm:$0xff] %vm3092_vm3, %v7988_v5 }
  0x60   : > { %3102 = vst.msk [vmem:[#allocation3 + $0x40] sm:$0x3] %vm3095_vm4, %v7988_v5  ;;  %3096 = vst.msk [vmem:[#allocation3 + $0x10] sm:$0x3] %vm3095_vm4, %v7988_v5 }
  0x61   : > { %3099 = vst.msk [vmem:[#allocation3 + $0x28] sm:$0x3] %vm3095_vm4, %v7988_v5  ;;  %3105 = vst.msk [vmem:[#allocation3 + $0x58] sm:$0x3] %vm3095_vm4, %v7988_v5 }
  0x62   : > { %7196 = vmatmul.mubr.msk.bf16.gmra.mxu0 %vm278_vm1, %v8380_v63  ;;  %3108 = vst.msk [vmem:[#allocation3 + $0x70] sm:$0x3] %vm3095_vm4, %v7988_v5  ;;  %3111 = vst.msk [vmem:[#allocation3 + $0x88] sm:$0x3] %vm3095_vm4, %v7988_v5 }
  0x63   : > { %7230 = vmatmul.mubr.msk.bf16.gmra.mxu1 %vm278_vm1, %v8382_v0  ;;  %7199 = vmatprep.mubr.msk.bf16.mxu0 %vm278_vm1, %v8384_v1  ;;  %3114 = vst.msk [vmem:[#allocation3 + $0xa0] sm:$0x3] %vm3095_vm4, %v7988_v5  ;;  %3117 = vst.msk [vmem:[#allocation3 + $0xb8] sm:$0x3] %vm3095_vm4, %v7988_v5 }
  0x64   : > { %7233 = vmatprep.mubr.msk.bf16.mxu1 %vm278_vm1, %v8386_v2  ;;  %3120 = vst.msk [vmem:[#allocation3 + $0xd0] sm:$0x3] %vm3095_vm4, %v7988_v5  ;;  %3123 = vst.msk [vmem:[#allocation3 + $0xe8] sm:$0x3] %vm3095_vm4, %v7988_v5 }
  0x65   : > { %3126 = vst.msk [vmem:[#allocation3 + $0x100] sm:$0x3] %vm3095_vm4, %v7988_v5  ;;  %3129 = vst.msk [vmem:[#allocation3 + $0x118] sm:$0x3] %vm3095_vm4, %v7988_v5 }
  0x66   : > { %3132 = vst.msk [vmem:[#allocation3 + $0x130] sm:$0x3] %vm3095_vm4, %v7988_v5  ;;  %3135 = vst.msk [vmem:[#allocation3 + $0x148] sm:$0x3] %vm3095_vm4, %v7988_v5 }
  0x67   : > { %3138 = vst.msk [vmem:[#allocation3 + $0x160] sm:$0x3] %vm3095_vm4, %v7988_v5  ;;  %3141 = vst.msk [vmem:[#allocation3 + $0x178] sm:$0x3] %vm3095_vm4, %v7988_v5 }
  0x68   : > { %3144 = vst.msk [vmem:[#allocation3 + $0x190] sm:$0x3] %vm3095_vm4, %v7988_v5  ;;  %3147 = vst.msk [vmem:[#allocation3 + $0x1a8] sm:$0x3] %vm3095_vm4, %v7988_v5  ;;  %v7896_v5 = vld [vmem:[%s10728_s4 + $0x8] sm:$0xff]  }
  0x6a   : > { %7200 = vmatmul.mubr.msk.bf16.gmra.mxu0 %vm278_vm1, %v8396_v13 }
  0x6b   : > { %7234 = vmatmul.mubr.msk.bf16.gmra.mxu1 %vm278_vm1, %v8398_v16  ;;  %7203 = vmatprep.mubr.msk.bf16.mxu0 %vm278_vm1, %v8400_v17 }
  0x6c   : > { %7237 = vmatprep.mubr.msk.bf16.mxu1 %vm278_vm1, %v8402_v19 }
  0x72   : > { %7204 = vmatmul.mubr.msk.bf16.gmra.mxu0 %vm278_vm1, %v8412_v26 }
  0x73   : > { %7238 = vmatmul.mubr.msk.bf16.gmra.mxu1 %vm278_vm1, %v8414_v31  ;;  %7243 = vmatprep.mubr.msk.bf16.mxu0 %vm278_vm1, %v955_v32  ;;  %v965_v32 = vpack.c.bf16 %v944_v24, %v943_v23  ;;  %v6504_v23 = vld [vmem:[%s10725_s1 + $0x10] sm:$0x3] }
  0x74   : > { %7277 = vmatprep.mubr.msk.bf16.mxu1 %vm278_vm1, %v8265_v41  ;;  %v929_v41 = vld [vmem:[#allocation2 + $0x4a] sm:$0xff] }
  0x75   : > { %v8450_v54 = vpack.c.bf16 %v930_v51, %v929_v41  ;;  %v949_v41 = vld [vmem:[#allocation2 + $0x13a] sm:$0xff]  ;;  %v950_v51 = vld [vmem:[#allocation2 + $0x142] sm:$0xff] }
  0x76   : > { %v968_v60 = vpack.c.bf16 %v950_v51, %v949_v41 }
  0x7a   : > { %7244 = vmatmul.mubr.msk.bf16.vlgmr.msra.gmra.mxu0 %vm278_vm1, %v8423_v38 }
  0x7b   : > { %7310 = vmatpush3.bf16.msra.mxu0 %v1610_v39  ;;  %7278 = vmatmul.mubr.msk.bf16.vlgmr.msra.gmra.mxu1 %vm278_vm1, %v8271_v45  ;;  %v966_v39 = vpack.c.bf16 %v946_v34, %v945_v33  ;;  %v2787_v33 = vsel %vm546_vm0, %v6504_v23, 0 }
  0x7c   : > { %7247 = vmatprep.mubr.msk.bf16.mxu0 %vm278_vm1, %v8427_v48  ;;  %7281 = vmatprep.mubr.msk.bf16.mxu1 %vm278_vm1, %v8290_v57 }
  0x7d   : > { %7344 = vmatpush3.bf16.msra.mxu1 %v1904_v49  ;;  %7845 = vmatprep.subr.msk.bf16.mxu0 %vm546_vm0, %v8435_v50  ;;  %v967_v49 = vpack.c.bf16 %v948_v37, %v947_v35  ;;  %v1835_v50 = vld [vmem:[#allocation2 + $0x182] sm:$0xff] }
  0x7e   : > { %7846 = vmatprep.subr.msk.bf16.mxu1 %vm546_vm0, %v8442_v47  ;;  %v1836_v47 = vld [vmem:[#allocation2 + $0x18a] sm:$0xff] }
  0x82   : > { %7248 = vmatmul.mubr.msk.bf16.gmra.mxu0 %vm278_vm1, %v8450_v54 }
  0x83   : > { %7282 = vmatmul.mubr.msk.bf16.gmra.mxu1 %vm278_vm1, %v8294_v59  ;;  %7251 = vmatprep.mubr.msk.bf16.mxu0 %vm278_vm1, %v8454_v55 }
  0x84   : > { %7285 = vmatprep.mubr.msk.bf16.mxu1 %vm278_vm1, %v8319_v14 }
  0x8a   : > { %7252 = vmatmul.mubr.msk.bf16.gmra.mxu0 %vm278_vm1, %v8464_v4 }
  0x8b   : > { %7286 = vmatmul.mubr.msk.bf16.gmra.mxu1 %vm278_vm1, %v8328_v18  ;;  %7255 = vmatprep.mubr.msk.bf16.mxu0 %vm278_vm1, %v8466_v6 }
  0x8c   : > { %7289 = vmatprep.mubr.msk.bf16.mxu1 %vm278_vm1, %v8342_v28 }
  0x92   : > { %7256 = vmatmul.mubr.msk.bf16.gmra.mxu0 %vm278_vm1, %v8476_v12 }
  0x93   : > { %7290 = vmatmul.mubr.msk.bf16.gmra.mxu1 %vm278_vm1, %v8346_v30  ;;  %7259 = vmatprep.mubr.msk.bf16.mxu0 %vm278_vm1, %v8478_v20 }
  0x94   : > { %7293 = vmatprep.mubr.msk.bf16.mxu1 %vm278_vm1, %v8358_v42 }
  0x9a   : > { %7260 = vmatmul.mubr.msk.bf16.gmra.mxu0 %vm278_vm1, %v8488_v25 }
  0x9b   : > { %7294 = vmatmul.mubr.msk.bf16.gmra.mxu1 %vm278_vm1, %v8362_v46  ;;  %7263 = vmatprep.mubr.msk.bf16.mxu0 %vm278_vm1, %v965_v32 }
  0x9c   : > { %7297 = vmatprep.mubr.msk.bf16.mxu1 %vm278_vm1, %v8382_v0 }
  0xa2   : > { %7264 = vmatmul.mubr.msk.bf16.gmra.mxu0 %vm278_vm1, %v966_v39 }
  0xa3   : > { %7298 = vmatmul.mubr.msk.bf16.gmra.mxu1 %vm278_vm1, %v8386_v2  ;;  %7267 = vmatprep.mubr.msk.bf16.mxu0 %vm278_vm1, %v967_v49 }
  0xa4   : > { %7301 = vmatprep.mubr.msk.bf16.mxu1 %vm278_vm1, %v8398_v16 }
  0xaa   : > { %7268 = vmatmul.mubr.msk.bf16.gmra.mxu0 %vm278_vm1, %v968_v60 }
  0xab   : > { %7302 = vmatmul.mubr.msk.bf16.gmra.mxu1 %vm278_vm1, %v8402_v19  ;;  %7271 = vmatprep.mubr.msk.bf16.mxu0 %vm278_vm1, %v969_v61 }
  0xac   : > { %7305 = vmatprep.mubr.msk.bf16.mxu1 %vm278_vm1, %v8414_v31 }
  0xb2   : > { %7272 = vmatmul.mubr.msk.bf16.gmra.mxu0 %vm278_vm1, %v970_v9 }
  0xb3   : > { %7306 = vmatmul.mubr.msk.bf16.gmra.mxu1 %vm278_vm1, %v8509_v11  ;;  %7311 = vmatprep.mubr.msk.bf16.mxu0 %vm278_vm1, %v8261_v36  ;;  %v1541_v36 = vld [vmem:[#allocation2 + $0x181] sm:$0xff] }
  0xb4   : > { %7345 = vmatprep.mubr.msk.bf16.mxu1 %vm278_vm1, %v8423_v38  ;;  %v1542_v38 = vld [vmem:[#allocation2 + $0x189] sm:$0xff] }
  0xb5   : > { %v8576_v24 = vpack.c.bf16 %v1542_v38, %v1541_v36 }
  0xba   : > { %7312 = vmatmul.mubr.msk.bf16.vlgmr.msra.gmra.mxu0 %vm278_vm1, %v8269_v44 }
  0xbb   : > { %7378 = vmatpush3.bf16.msra.mxu0 %v2199_v21  ;;  %7346 = vmatmul.mubr.msk.bf16.vlgmr.msra.gmra.mxu1 %vm278_vm1, %v8427_v48 }
  0xbc   : > { %7315 = vmatprep.mubr.msk.bf16.mxu0 %vm278_vm1, %v8288_v56  ;;  %7349 = vmatprep.mubr.msk.bf16.mxu1 %vm278_vm1, %v8450_v54 }
  0xbd   : > { %7412 = vmatpush3.bf16.msra.mxu1 %v2493_v22  ;;  %7847 = vmatprep.subr.msk.bf16.mxu0 %vm546_vm0, %v6504_v23 }
  0xc2   : > { %7316 = vmatmul.mubr.msk.bf16.gmra.mxu0 %vm278_vm1, %v8292_v58 }
  0xc3   : > { %7350 = vmatmul.mubr.msk.bf16.gmra.mxu1 %vm278_vm1, %v8454_v55  ;;  %7319 = vmatprep.mubr.msk.bf16.mxu0 %vm278_vm1, %v8311_v10 }
  0xc4   : > { %7353 = vmatprep.mubr.msk.bf16.mxu1 %vm278_vm1, %v8464_v4 }
  0xca   : > { %7320 = vmatmul.mubr.msk.bf16.gmra.mxu0 %vm278_vm1, %v8321_v15 }
  0xcb   : > { %7354 = vmatmul.mubr.msk.bf16.gmra.mxu1 %vm278_vm1, %v8466_v6  ;;  %7323 = vmatprep.mubr.msk.bf16.mxu0 %vm278_vm1, %v8340_v27 }
  0xcc   : > { %7357 = vmatprep.mubr.msk.bf16.mxu1 %vm278_vm1, %v8476_v12 }
  0xd2   : > { %7324 = vmatmul.mubr.msk.bf16.gmra.mxu0 %vm278_vm1, %v8344_v29 }
  0xd3   : > { %7358 = vmatmul.mubr.msk.bf16.gmra.mxu1 %vm278_vm1, %v8478_v20  ;;  %7327 = vmatprep.mubr.msk.bf16.mxu0 %vm278_vm1, %v8356_v40 }
  0xd4   : > { %7361 = vmatprep.mubr.msk.bf16.mxu1 %vm278_vm1, %v8488_v25 }
  0xda   : > { %7328 = vmatmul.mubr.msk.bf16.gmra.mxu0 %vm278_vm1, %v8360_v43 }
  0xdb   : > { %7362 = vmatmul.mubr.msk.bf16.gmra.mxu1 %vm278_vm1, %v965_v32  ;;  %7331 = vmatprep.mubr.msk.bf16.mxu0 %vm278_vm1, %v8380_v63  ;;  %v8578_v32 = vpack.c.bf16 %v1836_v47, %v1835_v50 }
  0xdc   : > { %7365 = vmatprep.mubr.msk.bf16.mxu1 %vm278_vm1, %v966_v39 }
  0xe2   : > { %7332 = vmatmul.mubr.msk.bf16.gmra.mxu0 %vm278_vm1, %v8384_v1 }
  0xe3   : > { %7366 = vmatmul.mubr.msk.bf16.gmra.mxu1 %vm278_vm1, %v967_v49  ;;  %7335 = vmatprep.mubr.msk.bf16.mxu0 %vm278_vm1, %v8396_v13 }
  0xe4   : > { %7369 = vmatprep.mubr.msk.bf16.mxu1 %vm278_vm1, %v968_v60 }
  0xea   : > { %7336 = vmatmul.mubr.msk.bf16.gmra.mxu0 %vm278_vm1, %v8400_v17 }
  0xeb   : > { %7370 = vmatmul.mubr.msk.bf16.gmra.mxu1 %vm278_vm1, %v969_v61  ;;  %7339 = vmatprep.mubr.msk.bf16.mxu0 %vm278_vm1, %v8412_v26 }
  0xec   : > { %7373 = vmatprep.mubr.msk.bf16.mxu1 %vm278_vm1, %v970_v9 }
  0xf2   : > { %7340 = vmatmul.mubr.msk.bf16.gmra.mxu0 %vm278_vm1, %v8576_v24 }
  0xf3   : > { %7374 = vmatmul.mubr.msk.bf16.gmra.mxu1 %vm278_vm1, %v8578_v32  ;;  %7379 = vmatprep.mubr.msk.bf16.mxu0 %vm278_vm1, %v8271_v45 }
  0xf4   : > { %7413 = vmatprep.mubr.msk.bf16.mxu1 %vm278_vm1, %v8269_v44 }
  0xfa   : > { %v7177_v34 = vpop.f32.mrf.mxu0  ;;  %7380 = vmatmul.mubr.msk.bf16.vlgmr.msra.gmra.mxu0 %vm278_vm1, %v8290_v57 }
  0xfb   : > { %v7211_v35 = vpop.f32.mrf.mxu1  ;;  %7446 = vmatpush3.bf16.msra.mxu0 %v2787_v33  ;;  %7414 = vmatmul.mubr.msk.bf16.vlgmr.msra.gmra.mxu1 %vm278_vm1, %v8288_v56 }
  0xfc   : > { %v8593_v37 = vadd.f32 %v7211_v35, %v7177_v34  ;;  %v584_v39 = vpop.f32.mrf.mxu0  ;;  %7383 = vmatprep.mubr.msk.bf16.mxu0 %vm278_vm1, %v8294_v59  ;;  %7417 = vmatprep.mubr.msk.bf16.mxu1 %vm278_vm1, %v8292_v58 }
  0xfd   : > { %v796_v44 = vpop.f32.mrf.mxu1 }
  0xfe   : > { %v8599_v45 = vadd.f32 %v796_v44, %v584_v39  ;;  %v7178_v49 = vpop.f32.mrf.mxu0 }
  0xff   : > { %v7212_v41 = vpop.f32.mrf.mxu1 }
 0x100   : > { %v8601_v57 = vadd.f32 %v7212_v41, %v7178_v49  ;;  %v587_v51 = vpop.f32.mrf.mxu0 }
 0x101   : > { %v799_v52 = vpop.f32.mrf.mxu1 }
 0x102   : > { %v8603_v53 = vadd.f32 %v799_v52, %v587_v51  ;;  %v7181_v56 = vpop.f32.mrf.mxu0  ;;  %7384 = vmatmul.mubr.msk.bf16.gmra.mxu0 %vm278_vm1, %v8319_v14 }
 0x103   : > { %v7215_v60 = vpop.f32.mrf.mxu1  ;;  %7418 = vmatmul.mubr.msk.bf16.gmra.mxu1 %vm278_vm1, %v8311_v10  ;;  %7387 = vmatprep.mubr.msk.bf16.mxu0 %vm278_vm1, %v8328_v18 }
 0x104   : > { %v8611_v58 = vadd.f32 %v7215_v60, %v7181_v56  ;;  %v600_v59 = vpop.f32.mrf.mxu0  ;;  %7421 = vmatprep.mubr.msk.bf16.mxu1 %vm278_vm1, %v8321_v15 }
 0x105   : > { %v812_v61 = vpop.f32.mrf.mxu1 }
 0x106   : > { %v8615_v62 = vadd.f32 %v812_v61, %v600_v59  ;;  %v7182_v3 = vpop.f32.mrf.mxu0 }
 0x107   : > { %v7216_v7 = vpop.f32.mrf.mxu1 }
 0x108   : > { %v8617_v8 = vadd.f32 %v7216_v7, %v7182_v3  ;;  %v603_v14 = vpop.f32.mrf.mxu0 }
 0x109   : > { %v815_v9 = vpop.f32.mrf.mxu1 }
 0x10a   : > { %v8619_v21 = vadd.f32 %v815_v9, %v603_v14  ;;  %v7185_v10 = vpop.f32.mrf.mxu0  ;;  %7388 = vmatmul.mubr.msk.bf16.gmra.mxu0 %vm278_vm1, %v8342_v28 }
 0x10b   : > { %v7219_v18 = vpop.f32.mrf.mxu1  ;;  %7422 = vmatmul.mubr.msk.bf16.gmra.mxu1 %vm278_vm1, %v8340_v27  ;;  %7391 = vmatprep.mubr.msk.bf16.mxu0 %vm278_vm1, %v8346_v30 }
 0x10c   : > { %v8627_v15 = vadd.f32 %v7219_v18, %v7185_v10  ;;  %v616_v22 = vpop.f32.mrf.mxu0  ;;  %7425 = vmatprep.mubr.msk.bf16.mxu1 %vm278_vm1, %v8344_v29 }
 0x10d   : > { %v828_v23 = vpop.f32.mrf.mxu1 }
 0x10e   : > { %v8631_v36 = vadd.f32 %v828_v23, %v616_v22  ;;  %v7186_v38 = vpop.f32.mrf.mxu0 }
 0x10f   : > { %v7220_v50 = vpop.f32.mrf.mxu1 }
 0x110   : > { %v8633_v47 = vadd.f32 %v7220_v50, %v7186_v38  ;;  %v619_v28 = vpop.f32.mrf.mxu0 }
 0x111   : > { %v831_v33 = vpop.f32.mrf.mxu1 }
 0x112   : > { %v8635_v34 = vadd.f32 %v831_v33, %v619_v28  ;;  %v7189_v27 = vpop.f32.mrf.mxu0  ;;  %7392 = vmatmul.mubr.msk.bf16.gmra.mxu0 %vm278_vm1, %v8358_v42  ;;  %v2131_v33 = vld [vmem:[#allocation2 + $0x1a0] sm:$0xff] }
 0x113   : > { %v7223_v30 = vpop.f32.mrf.mxu1  ;;  %7426 = vmatmul.mubr.msk.bf16.gmra.mxu1 %vm278_vm1, %v8356_v40  ;;  %7395 = vmatprep.mubr.msk.bf16.mxu0 %vm278_vm1, %v8362_v46 }
 0x114   : > { %v8643_v29 = vadd.f32 %v7223_v30, %v7189_v27  ;;  %v632_v35 = vpop.f32.mrf.mxu0  ;;  %7429 = vmatprep.mubr.msk.bf16.mxu1 %vm278_vm1, %v8360_v43 }
 0x115   : > { %v844_v39 = vpop.f32.mrf.mxu1 }
 0x116   : > { %v8647_v44 = vadd.f32 %v844_v39, %v632_v35  ;;  %v7190_v49 = vpop.f32.mrf.mxu0  ;;  %v2424_v35 = vld [vmem:[#allocation2 + $0x199] sm:$0xff]  ;;  %v2425_v39 = vld [vmem:[#allocation2 + $0x1a1] sm:$0xff] }
 0x117   : > { %v7224_v41 = vpop.f32.mrf.mxu1 }
 0x118   : > { %v8649_v51 = vadd.f32 %v7224_v41, %v7190_v49  ;;  %v635_v42 = vpop.f32.mrf.mxu0 }
 0x119   : > { %v847_v52 = vpop.f32.mrf.mxu1 }
 0x11a   : > { %v8651_v56 = vadd.f32 %v847_v52, %v635_v42  ;;  %v7193_v40 = vpop.f32.mrf.mxu0  ;;  %7396 = vmatmul.mubr.msk.bf16.gmra.mxu0 %vm278_vm1, %v8382_v0 }
 0x11b   : > { %v7227_v46 = vpop.f32.mrf.mxu1  ;;  %7430 = vmatmul.mubr.msk.bf16.gmra.mxu1 %vm278_vm1, %v8380_v63  ;;  %7399 = vmatprep.mubr.msk.bf16.mxu0 %vm278_vm1, %v8386_v2 }
 0x11c   : > { %v8659_v43 = vadd.f32 %v7227_v46, %v7193_v40  ;;  %v648_v60 = vpop.f32.mrf.mxu0  ;;  %7433 = vmatprep.mubr.msk.bf16.mxu1 %vm278_vm1, %v8384_v1 }
 0x11d   : > { %v860_v59 = vpop.f32.mrf.mxu1 }
 0x11e   : > { %v8663_v61 = vadd.f32 %v860_v59, %v648_v60  ;;  %v7194_v3 = vpop.f32.mrf.mxu0 }
 0x11f   : > { %v7228_v7 = vpop.f32.mrf.mxu1 }
 0x120   : > { %v8665_v14 = vadd.f32 %v7228_v7, %v7194_v3  ;;  %v8667_v0 = vpop.f32.mrf.mxu0 }
 0x121   : > { %v8669_v9 = vpop.f32.mrf.mxu1 }
 0x122   : > { %v7197_v63 = vpop.f32.mrf.mxu0  ;;  %7400 = vmatmul.mubr.msk.bf16.gmra.mxu0 %vm278_vm1, %v8398_v16 }
 0x123   : > { %v7231_v2 = vpop.f32.mrf.mxu1  ;;  %7434 = vmatmul.mubr.msk.bf16.gmra.mxu1 %vm278_vm1, %v8396_v13  ;;  %7403 = vmatprep.mubr.msk.bf16.mxu0 %vm278_vm1, %v8402_v19 }
 0x124   : > { %v8677_v1 = vadd.f32 %v7231_v2, %v7197_v63  ;;  %v664_v10 = vpop.f32.mrf.mxu0  ;;  %7437 = vmatprep.mubr.msk.bf16.mxu1 %vm278_vm1, %v8400_v17  ;;  %v2130_v17 = vld [vmem:[#allocation2 + $0x198] sm:$0xff] }
 0x125   : > { %v876_v18 = vpop.f32.mrf.mxu1  ;;  %v2147_v42 = vpack.c.bf16 %v2131_v33, %v2130_v17 }
 0x126   : > { %v8681_v22 = vadd.f32 %v876_v18, %v664_v10  ;;  %v7198_v23 = vpop.f32.mrf.mxu0 }
 0x127   : > { %v7232_v38 = vpop.f32.mrf.mxu1 }
 0x128   : > { %v8683_v50 = vadd.f32 %v7232_v38, %v7198_v23  ;;  %v8685_v16 = vpop.f32.mrf.mxu0 }
 0x129   : > { %v8687_v28 = vpop.f32.mrf.mxu1 }
 0x12a   : > { %v7201_v13 = vpop.f32.mrf.mxu0  ;;  %7404 = vmatmul.mubr.msk.bf16.gmra.mxu0 %vm278_vm1, %v8414_v31 }
 0x12b   : > { %v7235_v19 = vpop.f32.mrf.mxu1  ;;  %7438 = vmatmul.mubr.msk.bf16.gmra.mxu1 %vm278_vm1, %v8412_v26  ;;  %7407 = vmatprep.mubr.msk.bf16.mxu0 %vm278_vm1, %v8509_v11  ;;  %v2441_v26 = vpack.c.bf16 %v2425_v39, %v2424_v35 }
 0x12c   : > { %v8695_v27 = vadd.f32 %v7235_v19, %v7201_v13  ;;  %v680_v30 = vpop.f32.mrf.mxu0  ;;  %7441 = vmatprep.mubr.msk.bf16.mxu1 %vm278_vm1, %v8576_v24 }
 0x12d   : > { %v892_v49 = vpop.f32.mrf.mxu1 }
 0x12e   : > { %v8699_v41 = vadd.f32 %v892_v49, %v680_v30  ;;  %v7202_v31 = vpop.f32.mrf.mxu0 }
 0x12f   : > { %v7236_v52 = vpop.f32.mrf.mxu1 }
 0x130   : > { %v8701_v40 = vadd.f32 %v7236_v52, %v7202_v31  ;;  %v8703_v11 = vpop.f32.mrf.mxu0 }
 0x131   : > { %v8705_v46 = vpop.f32.mrf.mxu1 }
 0x132   : > { %v7205_v60 = vpop.f32.mrf.mxu0  ;;  %7408 = vmatmul.mubr.msk.bf16.gmra.mxu0 %vm278_vm1, %v2147_v42 }
 0x133   : > { %v7239_v59 = vpop.f32.mrf.mxu1  ;;  %7442 = vmatmul.mubr.msk.bf16.gmra.mxu1 %vm278_vm1, %v2441_v26  ;;  %7447 = vmatprep.mubr.msk.bf16.mxu0 %vm278_vm1, %v8427_v48 }
 0x134   : > { %v8711_v24 = vadd.f32 %v7239_v59, %v7205_v60  ;;  %v696_v3 = vpop.f32.mrf.mxu0 }
 0x135   : > { %v908_v7 = vpop.f32.mrf.mxu1 }
 0x136   : > { %v8713_v63 = vadd.f32 %v908_v7, %v696_v3  ;;  %v7206_v2 = vpop.f32.mrf.mxu0 }
 0x137   : > { %v7240_v10 = vpop.f32.mrf.mxu1 }
 0x138   : > { %v8715_v18 = vadd.f32 %v7240_v10, %v7206_v2  ;;  %v8717_v23 = vpop.f32.mrf.mxu0 }
 0x139   : > { %v8719_v38 = vpop.f32.mrf.mxu1 }
 0x13a   : > { %v7245_v13 = vpop.f32.mrf.mxu0  ;;  %7448 = vmatmul.mubr.msk.bf16.vlgmr.msra.gmra.mxu0 %vm278_vm1, %v8450_v54 }
 0x13b   : > { %v1187_v48 = vadd.f32 %v7245_v13, %v8593_v37  ;;  %v7279_v19 = vpop.f32.mrf.mxu1  ;;  %7451 = vmatprep.mubr.msk.bf16.mxu0 %vm278_vm1, %v8454_v55 }
 0x13c   : > { %v1058_v17 = vpop.f32.mrf.mxu0 }
 0x13d   : > { %v1185_v33 = vadd.f32 %v1058_v17, %v8599_v45  ;;  %v8727_v30 = vadd.f32 %v7279_v19, %v1187_v48  ;;  %v1352_v35 = vpop.f32.mrf.mxu1 }
 0x13e   : > { %v7246_v39 = vpop.f32.mrf.mxu0 }
 0x13f   : > { %v1188_v49 = vadd.f32 %v7246_v39, %v8601_v57  ;;  %v8730_v31 = vadd.f32 %v1352_v35, %v1185_v33  ;;  %v7280_v42 = vpop.f32.mrf.mxu1  ;;  %v2704_v33 = vld [vmem:[#allocation2 + $0xf2] sm:$0xff]  ;;  %v2705_v35 = vld [vmem:[#allocation2 + $0xfa] sm:$0xff] }
 0x140   : > { %v1061_v52 = vpop.f32.mrf.mxu0 }
 0x141   : > { %v8733_v54 = vadd.f32 %v1061_v52, %v8603_v53  ;;  %v8735_v37 = vadd.f32 %v7280_v42, %v1188_v49  ;;  %v8737_v26 = vpop.f32.mrf.mxu1 }
 0x142   : > { %v7249_v55 = vpop.f32.mrf.mxu0  ;;  %7452 = vmatmul.mubr.msk.bf16.gmra.mxu0 %vm278_vm1, %v8464_v4 }
 0x143   : > { %v1191_v45 = vadd.f32 %v7249_v55, %v8611_v58  ;;  %v7283_v60 = vpop.f32.mrf.mxu1  ;;  %7455 = vmatprep.mubr.msk.bf16.mxu0 %vm278_vm1, %v8466_v6 }
 0x144   : > { %v1074_v57 = vpop.f32.mrf.mxu0 }
 0x145   : > { %v1189_v59 = vadd.f32 %v1074_v57, %v8615_v62  ;;  %v8745_v3 = vadd.f32 %v7283_v60, %v1191_v45  ;;  %v1368_v53 = vpop.f32.mrf.mxu1  ;;  %v2728_v45 = vpack.c.bf16 %v2705_v35, %v2704_v33 }
 0x146   : > { %v7250_v7 = vpop.f32.mrf.mxu0 }
 0x147   : > { %v1192_v2 = vadd.f32 %v7250_v7, %v8617_v8  ;;  %v8748_v10 = vadd.f32 %v1368_v53, %v1189_v59  ;;  %v7284_v13 = vpop.f32.mrf.mxu1  ;;  %v2707_v7 = vld [vmem:[#allocation2 + $0x112] sm:$0xff] }
 0x148   : > { %v1077_v48 = vpop.f32.mrf.mxu0 }
 0x149   : > { %v8751_v4 = vadd.f32 %v1077_v48, %v8619_v21  ;;  %v8753_v58 = vadd.f32 %v7284_v13, %v1192_v2  ;;  %v8755_v19 = vpop.f32.mrf.mxu1  ;;  %v2708_v13 = vld [vmem:[#allocation2 + $0x122] sm:$0xff]  ;;  %v2709_v48 = vld [vmem:[#allocation2 + $0x12a] sm:$0xff] }
 0x14a   : > { %v7253_v6 = vpop.f32.mrf.mxu0  ;;  %7456 = vmatmul.mubr.msk.bf16.gmra.mxu0 %vm278_vm1, %v8476_v12 }
 0x14b   : > { %v1195_v62 = vadd.f32 %v7253_v6, %v8627_v15  ;;  %v7287_v17 = vpop.f32.mrf.mxu1  ;;  %7459 = vmatprep.mubr.msk.bf16.mxu0 %vm278_vm1, %v8478_v20 }
 0x14c   : > { %v1090_v8 = vpop.f32.mrf.mxu0 }
 0x14d   : > { %v1193_v21 = vadd.f32 %v1090_v8, %v8631_v36  ;;  %v8763_v39 = vadd.f32 %v7287_v17, %v1195_v62  ;;  %v1384_v49 = vpop.f32.mrf.mxu1 }
 0x14e   : > { %v7254_v42 = vpop.f32.mrf.mxu0 }
 0x14f   : > { %v1196_v52 = vadd.f32 %v7254_v42, %v8633_v47  ;;  %v8766_v55 = vadd.f32 %v1384_v49, %v1193_v21  ;;  %v7288_v12 = vpop.f32.mrf.mxu1  ;;  %v2706_v47 = vld [vmem:[#allocation2 + $0x10a] sm:$0xff]  ;;  %v2730_v21 = vpack.c.bf16 %v2709_v48, %v2708_v13 }
 0x150   : > { %v1093_v15 = vpop.f32.mrf.mxu0 }
 0x151   : > { %v8769_v60 = vadd.f32 %v1093_v15, %v8635_v34  ;;  %v8771_v20 = vadd.f32 %v7288_v12, %v1196_v52  ;;  %v8773_v57 = vpop.f32.mrf.mxu1  ;;  %v7890_v34 = vld [vmem:[%s10728_s4 + $0x38] sm:$0xff]  }
 0x152   : > { %v7257_v59 = vpop.f32.mrf.mxu0  ;;  %7460 = vmatmul.mubr.msk.bf16.gmra.mxu0 %vm278_vm1, %v8488_v25  ;;  %7479 = vmatprep.subr.bf16.mxu1 %v7890_v34 }
 0x153   : > { %v1199_v36 = vadd.f32 %v7257_v59, %v8643_v29  ;;  %v7291_v53 = vpop.f32.mrf.mxu1  ;;  %7463 = vmatprep.mubr.msk.bf16.mxu0 %vm278_vm1, %v2728_v45  ;;  %v2729_v29 = vpack.c.bf16 %v2707_v7, %v2706_v47  ;;  %7480 = vmatpush3.bf16.msra.mxu1 %v7890_v34  ;;  %v2711_v59 = vld [vmem:[#allocation2 + $0x142] sm:$0xff]  ;;  %v2713_v47 = vld [vmem:[#allocation2 + $0x15a] sm:$0xff] }
 0x154   : > { %v1106_v2 = vpop.f32.mrf.mxu0 }
 0x155   : > { %v1197_v6 = vadd.f32 %v1106_v2, %v8647_v44  ;;  %v8783_v62 = vadd.f32 %v7291_v53, %v1199_v36  ;;  %v1400_v17 = vpop.f32.mrf.mxu1  ;;  %v2712_v53 = vld [vmem:[#allocation2 + $0x152] sm:$0xff] }
 0x156   : > { %v7258_v25 = vpop.f32.mrf.mxu0 }
 0x157   : > { %v1200_v8 = vadd.f32 %v7258_v25, %v8649_v51  ;;  %v8786_v33 = vadd.f32 %v1400_v17, %v1197_v6  ;;  %v7292_v35 = vpop.f32.mrf.mxu1  ;;  %v2710_v51 = vld [vmem:[#allocation2 + $0x13a] sm:$0xff]  ;;  %v2732_v17 = vpack.c.bf16 %v2713_v47, %v2712_v53 }
 0x158   : > { %v1109_v49 = vpop.f32.mrf.mxu0  ;;  %v2731_v13 = vpack.c.bf16 %v2711_v59, %v2710_v51 }
 0x159   : > { %v8789_v42 = vadd.f32 %v1109_v49, %v8651_v56  ;;  %v8791_v52 = vadd.f32 %v7292_v35, %v1200_v8  ;;  %v8793_v44 = vpop.f32.mrf.mxu1  ;;  %v2714_v49 = vld [vmem:[#allocation2 + $0x16a] sm:$0xff] }
 0x15a   : > { %v7261_v12 = vpop.f32.mrf.mxu0  ;;  %7464 = vmatmul.mubr.msk.bf16.gmra.mxu0 %vm278_vm1, %v2729_v29 }
 0x15b   : > { %v1203_v45 = vadd.f32 %v7261_v12, %v8659_v43  ;;  %v7295_v15 = vpop.f32.mrf.mxu1  ;;  %7467 = vmatprep.mubr.msk.bf16.mxu0 %vm278_vm1, %v2730_v21  ;;  %v7891_v12 = vld [vmem:[%s10728_s4 + $0x30] sm:$0xff]  }
 0x15c   : > { %v1122_v36 = vpop.f32.mrf.mxu0  ;;  %7481 = vmatprep.subr.bf16.mxu1 %v7891_v12 }
 0x15d   : > { %v1201_v56 = vadd.f32 %v1122_v36, %v8663_v61  ;;  %v8799_v7 = vadd.f32 %v7295_v15, %v1203_v45  ;;  %v1416_v34 = vpop.f32.mrf.mxu1  ;;  %7482 = vmatpush3.bf16.msra.mxu1 %v7891_v12 }
 0x15e   : > { %v7262_v2 = vpop.f32.mrf.mxu0 }
 0x15f   : > { %v1204_v48 = vadd.f32 %v7262_v2, %v8665_v14  ;;  %v8802_v6 = vadd.f32 %v1416_v34, %v1201_v56  ;;  %v7296_v43 = vpop.f32.mrf.mxu1  ;;  %v2715_v14 = vld [vmem:[#allocation2 + $0x172] sm:$0xff] }
 0x160   : > { %v8804_v25 = vpop.f32.mrf.mxu0  ;;  %v2733_v53 = vpack.c.bf16 %v2715_v14, %v2714_v49 }
 0x161   : > { %v8806_v29 = vadd.f32 %v7296_v43, %v1204_v48  ;;  %v8808_v8 = vpop.f32.mrf.mxu1 }
 0x162   : > { %v7265_v35 = vpop.f32.mrf.mxu0  ;;  %7468 = vmatmul.mubr.msk.bf16.gmra.mxu0 %vm278_vm1, %v2731_v13 }
 0x163   : > { %v1207_v61 = vadd.f32 %v7265_v35, %v8677_v1  ;;  %v7299_v21 = vpop.f32.mrf.mxu1  ;;  %7471 = vmatprep.mubr.msk.bf16.mxu0 %vm278_vm1, %v2732_v17  ;;  %v2718_v17 = vld [vmem:[#allocation2 + $0x19a] sm:$0xff] }
 0x164   : > { %v1138_v45 = vpop.f32.mrf.mxu0 }
 0x165   : > { %v1205_v15 = vadd.f32 %v1138_v45, %v8681_v22  ;;  %v8817_v51 = vadd.f32 %v7299_v21, %v1207_v61  ;;  %v1432_v59 = vpop.f32.mrf.mxu1 }
 0x166   : > { %v7266_v36 = vpop.f32.mrf.mxu0 }
 0x167   : > { %v1208_v1 = vadd.f32 %v7266_v36, %v8683_v50  ;;  %v8820_v47 = vadd.f32 %v1432_v59, %v1205_v15  ;;  %v7300_v56 = vpop.f32.mrf.mxu1  ;;  %v2719_v50 = vld [vmem:[#allocation2 + $0x1a2] sm:$0xff] }
 0x168   : > { %v8822_v34 = vpop.f32.mrf.mxu0  ;;  %v2735_v12 = vpack.c.bf16 %v2719_v50, %v2718_v17 }
 0x169   : > { %v8824_v2 = vadd.f32 %v7300_v56, %v1208_v1  ;;  %v8826_v13 = vpop.f32.mrf.mxu1  ;;  %v7892_v56 = vld [vmem:[%s10728_s4 + $0x28] sm:$0xff]  }
 0x16a   : > { %v7269_v48 = vpop.f32.mrf.mxu0  ;;  %7472 = vmatmul.mubr.msk.bf16.gmra.mxu0 %vm278_vm1, %v2733_v53  ;;  %7483 = vmatprep.subr.bf16.mxu1 %v7892_v56 }
 0x16b   : > { %v1211_v22 = vadd.f32 %v7269_v48, %v8695_v27  ;;  %v7303_v43 = vpop.f32.mrf.mxu1  ;;  %7475 = vmatprep.mubr.msk.bf16.mxu0 %vm278_vm1, %v8578_v32  ;;  %7484 = vmatpush3.bf16.msra.mxu1 %v7892_v56 }
 0x16c   : > { %v1154_v35 = vpop.f32.mrf.mxu0 }
 0x16d   : > { %v1209_v61 = vadd.f32 %v1154_v35, %v8699_v41  ;;  %v8833_v21 = vadd.f32 %v7303_v43, %v1211_v22  ;;  %v1448_v49 = vpop.f32.mrf.mxu1 }
 0x16e   : > { %v7270_v14 = vpop.f32.mrf.mxu0 }
 0x16f   : > { %v1212_v45 = vadd.f32 %v7270_v14, %v8701_v40  ;;  %v8836_v15 = vadd.f32 %v1448_v49, %v1209_v61  ;;  %v7304_v59 = vpop.f32.mrf.mxu1 }
 0x170   : > { %v8838_v27 = vpop.f32.mrf.mxu0 }
 0x171   : > { %v8840_v36 = vadd.f32 %v7304_v59, %v1212_v45  ;;  %v8842_v32 = vpop.f32.mrf.mxu1 }
 0x172   : > { %v7273_v53 = vpop.f32.mrf.mxu0  ;;  %7476 = vmatmul.mubr.msk.bf16.gmra.mxu0 %vm278_vm1, %v2735_v12 }
 0x173   : > { %v1215_v41 = vadd.f32 %v7273_v53, %v8711_v24  ;;  %v7307_v1 = vpop.f32.mrf.mxu1 }
 0x174   : > { %v1170_v40 = vpop.f32.mrf.mxu0 }
 0x175   : > { %v1213_v48 = vadd.f32 %v1170_v40, %v8713_v63  ;;  %v8850_v22 = vadd.f32 %v7307_v1, %v1215_v41  ;;  %v1464_v43 = vpop.f32.mrf.mxu1 }
 0x176   : > { %v7274_v17 = vpop.f32.mrf.mxu0 }
 0x177   : > { %v1216_v50 = vadd.f32 %v7274_v17, %v8715_v18  ;;  %v8853_v35 = vadd.f32 %v1464_v43, %v1213_v48  ;;  %v7308_v61 = vpop.f32.mrf.mxu1 }
 0x178   : > { %v8855_v24 = vpop.f32.mrf.mxu0 }
 0x179   : > { %v8857_v49 = vadd.f32 %v7308_v61, %v1216_v50  ;;  %v8859_v14 = vpop.f32.mrf.mxu1 }
 0x17a   : > { %10736 = vst [vmem:[#allocation7_spill] sm:$0xff] %v8859_v14  ;;  %v7313_v12 = vpop.f32.mrf.mxu0 }
 0x17b   : > { %v8862_v63 = vadd.f32 %v7313_v12, %v8727_v30  ;;  %v8864_v45 = vpop.f32.mrf.mxu1 }
 0x17c   : > { %v1646_v59 = vpop.f32.mrf.mxu0 }
 0x17d   : > { %v8867_v53 = vadd.f32 %v1646_v59, %v8730_v31  ;;  %v8869_v18 = vpop.f32.mrf.mxu1  ;;  %v7894_v31 = vld [vmem:[%s10728_s4 + $0x18] sm:$0xff]  }
 0x17e   : > { %v7314_v41 = vpop.f32.mrf.mxu0  ;;  %7519 = vmatprep.subr.bf16.mxu0 %v7894_v31 }
 0x17f   : > { %v8872_v1 = vadd.f32 %v7314_v41, %v8735_v37  ;;  %v8874_v56 = vpop.f32.mrf.mxu1  ;;  %7520 = vmatpush3.bf16.msra.mxu0 %v7894_v31 }
 0x180   : > { %v8876_v40 = vpop.f32.mrf.mxu0 }
 0x181   : > { %v8878_v48 = vpop.f32.mrf.mxu1 }
 0x182   : > { %v7317_v30 = vpop.f32.mrf.mxu0 }
 0x183   : > { %v8956_v37 = vadd.f32 %v7317_v30, %v8745_v3  ;;  %v8958_v43 = vpop.f32.mrf.mxu1  ;;  %v7895_v3 = vld [vmem:[%s10728_s4 + $0x10] sm:$0xff]  }
 0x184   : > { %v1662_v17 = vpop.f32.mrf.mxu0  ;;  %7521 = vmatprep.subr.bf16.mxu0 %v7895_v3 }
 0x185   : > { %v8961_v50 = vadd.f32 %v1662_v17, %v8748_v10  ;;  %v8963_v61 = vpop.f32.mrf.mxu1  ;;  %7522 = vmatpush3.bf16.msra.mxu0 %v7895_v3 }
 0x186   : > { %10738 = vst [vmem:[#allocation9_spill] sm:$0xff] %v8963_v61  ;;  %v7318_v12 = vpop.f32.mrf.mxu0  ;;  %7523 = vmatprep.subr.bf16.mxu0 %v7896_v5 }
 0x187   : > { %10737 = vst [vmem:[#allocation8_spill] sm:$0xff] %v8961_v50  ;;  %v9005_v10 = vadd.f32 %v7318_v12, %v8753_v58  ;;  %v9007_v59 = vpop.f32.mrf.mxu1  ;;  %v7893_v58 = vld [vmem:[%s10728_s4 + $0x20] sm:$0xff]  }
 0x188   : > { %10740 = vst [vmem:[#allocation11_spill] sm:$0xff] %v9007_v59  ;;  %v9009_v41 = vpop.f32.mrf.mxu0  ;;  %7485 = vmatprep.subr.bf16.mxu1 %v7893_v58 }
 0x189   : > { %10739 = vst [vmem:[#allocation10_spill] sm:$0xff] %v9005_v10  ;;  %v9011_v30 = vpop.f32.mrf.mxu1  ;;  %7524 = vmatpush3.bf16.msra.mxu0 %v7896_v5  ;;  %7486 = vmatpush3.bf16.msra.mxu1 %v7893_v58  ;;  %v3182_v58 = vld [vmem:[#allocation3 + $0x8] sm:$0xff] }
 0x18a   : > { %10741 = vst [vmem:[#allocation12_spill] sm:$0xff] %v9011_v30  ;;  %v7321_v31 = vpop.f32.mrf.mxu0 }
 0x18b   : > { %v9017_v17 = vadd.f32 %v7321_v31, %v8763_v39  ;;  %v9019_v61 = vpop.f32.mrf.mxu1  ;;  %v7897_v39 = vld [vmem:[%s10728_s4] sm:$0xff]  }
 0x18c   : > { %10743 = vst [vmem:[#allocation14_spill] sm:$0xff] %v9019_v61  ;;  %v1678_v12 = vpop.f32.mrf.mxu0  ;;  %7525 = vmatprep.subr.bf16.mxu0 %v7897_v39 }
 0x18d   : > { %10742 = vst [vmem:[#allocation13_spill] sm:$0xff] %v9017_v17  ;;  %v9025_v59 = vadd.f32 %v1678_v12, %v8766_v55  ;;  %v9027_v3 = vpop.f32.mrf.mxu1  ;;  %v3237_v55 = vld [vmem:[#allocation3 + $0x1] sm:$0xff]  ;;  %v3238_v12 = vld [vmem:[#allocation3 + $0x9] sm:$0xff]  ;;  %7526 = vmatpush3.bf16.msra.mxu0 %v7897_v39 }
 0x18e   : > { %10745 = vst [vmem:[#allocation16_spill] sm:$0xff] %v9027_v3  ;;  %v7322_v30 = vpop.f32.mrf.mxu0  ;;  %v3269_v5 = vpack.c.bf16 %v3238_v12, %v3237_v55 }
 0x18f   : > { %10744 = vst [vmem:[#allocation15_spill] sm:$0xff] %v9025_v59  ;;  %v9033_v31 = vadd.f32 %v7322_v30, %v8771_v20  ;;  %v9035_v61 = vpop.f32.mrf.mxu1  ;;  %v3181_v59 = vld [vmem:[#allocation3] sm:$0xff] }
 0x190   : > { %10747 = vst [vmem:[#allocation18_spill] sm:$0xff] %v9035_v61  ;;  %v9037_v17 = vpop.f32.mrf.mxu0  ;;  %v3213_v50 = vpack.c.bf16 %v3182_v58, %v3181_v59  ;;  %7487 = vmatprep.mubr.msk.bf16.mxu1 %vm3092_vm3, %v3269_v5 }
 0x191   : > { %10746 = vst [vmem:[#allocation17_spill] sm:$0xff] %v9033_v31  ;;  %v9039_v3 = vpop.f32.mrf.mxu1 }
 0x192   : > { %v7325_v10 = vpop.f32.mrf.mxu0  ;;  %7527 = vmatprep.mubr.msk.bf16.mxu0 %vm3092_vm3, %v3213_v50 }
 0x193   : > { %v9042_v14 = vadd.f32 %v7325_v10, %v8783_v62  ;;  %v9044_v20 = vpop.f32.mrf.mxu1 }
 0x194   : > { %v1694_v30 = vpop.f32.mrf.mxu0 }
 0x195   : > { %v9049_v61 = vadd.f32 %v1694_v30, %v8786_v33  ;;  %v9051_v31 = vpop.f32.mrf.mxu1  ;;  %v9070_v33 = vld [vmem:[%s10728_s4 + $0x58] sm:$0xff]  }
 0x196   : > { %v7326_v39 = vpop.f32.mrf.mxu0  ;;  %10753 = vst [vmem:[#allocation24_spill] sm:$0xff] %v9070_v33  ;;  %7559 = vmatprep.subr.bf16.mxu1 %v9070_v33 }
 0x197   : > { %v9054_v55 = vadd.f32 %v7326_v39, %v8791_v52  ;;  %v9056_v59 = vpop.f32.mrf.mxu1 }
 0x198   : > { %10749 = vst [vmem:[#allocation20_spill] sm:$0xff] %v9056_v59  ;;  %v9058_v62 = vpop.f32.mrf.mxu0 }
 0x199   : > { %10748 = vst [vmem:[#allocation19_spill] sm:$0xff] %v9054_v55  ;;  %v9060_v10 = vpop.f32.mrf.mxu1 }
 0x19a   : > { %10750 = vst [vmem:[#allocation21_spill] sm:$0xff] %v9060_v10  ;;  %v7329_v12 = vpop.f32.mrf.mxu0 }
 0x19b   : > { %v9063_v5 = vadd.f32 %v7329_v12, %v8799_v7  ;;  %v9065_v50 = vpop.f32.mrf.mxu1 }
 0x19c   : > { %10752 = vst [vmem:[#allocation23_spill] sm:$0xff] %v9065_v50  ;;  %v1710_v58 = vpop.f32.mrf.mxu0 }
 0x19d   : > { %10751 = vst [vmem:[#allocation22_spill] sm:$0xff] %v9063_v5  ;;  %v9073_v52 = vadd.f32 %v1710_v58, %v8802_v6  ;;  %v9075_v30 = vpop.f32.mrf.mxu1 }
 0x19e   : > { %10755 = vst [vmem:[#allocation26_spill] sm:$0xff] %v9075_v30  ;;  %v7330_v39 = vpop.f32.mrf.mxu0 }
 0x19f   : > { %10754 = vst [vmem:[#allocation25_spill] sm:$0xff] %v9073_v52  ;;  %v9079_v10 = vadd.f32 %v7330_v39, %v8806_v29  ;;  %v9081_v7 = vpop.f32.mrf.mxu1 }
 0x1a0   : > { %10757 = vst [vmem:[#allocation28_spill] sm:$0xff] %v9081_v7  ;;  %v9083_v12 = vpop.f32.mrf.mxu0 }
 0x1a1   : > { %10756 = vst [vmem:[#allocation27_spill] sm:$0xff] %v9079_v10  ;;  %10758 = vst [vmem:[#allocation29_spill] sm:$0xff] %v9083_v12  ;;  %v9085_v50 = vpop.f32.mrf.mxu1 }
 0x1a2   : > { %10759 = vst [vmem:[#allocation30_spill] sm:$0xff] %v9085_v50  ;;  %v7333_v5 = vpop.f32.mrf.mxu0 }
 0x1a3   : > { %v9088_v59 = vadd.f32 %v7333_v5, %v8817_v51  ;;  %v9090_v6 = vpop.f32.mrf.mxu1 }
 0x1a4   : > { %10761 = vst [vmem:[#allocation32_spill] sm:$0xff] %v9090_v6  ;;  %v1726_v58 = vpop.f32.mrf.mxu0 }
 0x1a5   : > { %10760 = vst [vmem:[#allocation31_spill] sm:$0xff] %v9088_v59  ;;  %v9093_v30 = vadd.f32 %v1726_v58, %v8820_v47  ;;  %v9095_v33 = vpop.f32.mrf.mxu1 }
 0x1a6   : > { %10763 = vst [vmem:[#allocation34_spill] sm:$0xff] %v9095_v33  ;;  %v7334_v29 = vpop.f32.mrf.mxu0 }
 0x1a7   : > { %10762 = vst [vmem:[#allocation33_spill] sm:$0xff] %v9093_v30  ;;  %v9098_v39 = vadd.f32 %v7334_v29, %v8824_v2  ;;  %v9100_v7 = vpop.f32.mrf.mxu1 }
 0x1a8   : > { %10765 = vst [vmem:[#allocation36_spill] sm:$0xff] %v9100_v7  ;;  %v9102_v10 = vpop.f32.mrf.mxu0 }
 0x1a9   : > { %10764 = vst [vmem:[#allocation35_spill] sm:$0xff] %v9098_v39  ;;  %10766 = vst [vmem:[#allocation37_spill] sm:$0xff] %v9102_v10  ;;  %v9104_v50 = vpop.f32.mrf.mxu1 }
 0x1aa   : > { %10767 = vst [vmem:[#allocation38_spill] sm:$0xff] %v9104_v50  ;;  %v7337_v51 = vpop.f32.mrf.mxu0 }
 0x1ab   : > { %v9107_v5 = vadd.f32 %v7337_v51, %v8833_v21  ;;  %v9109_v6 = vpop.f32.mrf.mxu1 }
 0x1ac   : > { %10769 = vst [vmem:[#allocation40_spill] sm:$0xff] %v9109_v6  ;;  %v1742_v47 = vpop.f32.mrf.mxu0 }
 0x1ad   : > { %10768 = vst [vmem:[#allocation39_spill] sm:$0xff] %v9107_v5  ;;  %v9112_v58 = vadd.f32 %v1742_v47, %v8836_v15  ;;  %v9114_v33 = vpop.f32.mrf.mxu1 }
 0x1ae   : > { %10771 = vst [vmem:[#allocation42_spill] sm:$0xff] %v9114_v33  ;;  %v7338_v2 = vpop.f32.mrf.mxu0 }
 0x1af   : > { %10770 = vst [vmem:[#allocation41_spill] sm:$0xff] %v9112_v58  ;;  %v9117_v29 = vadd.f32 %v7338_v2, %v8840_v36  ;;  %v9119_v7 = vpop.f32.mrf.mxu1 }
 0x1b0   : > { %10773 = vst [vmem:[#allocation44_spill] sm:$0xff] %v9119_v7  ;;  %v9121_v39 = vpop.f32.mrf.mxu0 }
 0x1b1   : > { %10772 = vst [vmem:[#allocation43_spill] sm:$0xff] %v9117_v29  ;;  %10774 = vst [vmem:[#allocation45_spill] sm:$0xff] %v9121_v39  ;;  %v9123_v50 = vpop.f32.mrf.mxu1 }
 0x1b2   : > { %10775 = vst [vmem:[#allocation46_spill] sm:$0xff] %v9123_v50  ;;  %v7341_v21 = vpop.f32.mrf.mxu0 }
 0x1b3   : > { %v9126_v51 = vadd.f32 %v7341_v21, %v8850_v22  ;;  %v9128_v6 = vpop.f32.mrf.mxu1 }
 0x1b4   : > { %10777 = vst [vmem:[#allocation48_spill] sm:$0xff] %v9128_v6  ;;  %v1758_v15 = vpop.f32.mrf.mxu0 }
 0x1b5   : > { %10776 = vst [vmem:[#allocation47_spill] sm:$0xff] %v9126_v51  ;;  %v9131_v47 = vadd.f32 %v1758_v15, %v8853_v35  ;;  %v9133_v33 = vpop.f32.mrf.mxu1 }
 0x1b6   : > { %10779 = vst [vmem:[#allocation50_spill] sm:$0xff] %v9133_v33  ;;  %v7342_v36 = vpop.f32.mrf.mxu0 }
 0x1b7   : > { %10778 = vst [vmem:[#allocation49_spill] sm:$0xff] %v9131_v47  ;;  %v9136_v2 = vadd.f32 %v7342_v36, %v8857_v49  ;;  %v9138_v7 = vpop.f32.mrf.mxu1 }
 0x1b8   : > { %10781 = vst [vmem:[#allocation52_spill] sm:$0xff] %v9138_v7  ;;  %v9140_v29 = vpop.f32.mrf.mxu0 }
 0x1b9   : > { %10780 = vst [vmem:[#allocation51_spill] sm:$0xff] %v9136_v2  ;;  %10782 = vst [vmem:[#allocation53_spill] sm:$0xff] %v9140_v29  ;;  %v9142_v50 = vpop.f32.mrf.mxu1 }
 0x1ba   : > { %10783 = vst [vmem:[#allocation54_spill] sm:$0xff] %v9142_v50  ;;  %v7381_v22 = vpop.f32.mrf.mxu0  ;;  %v9161_v50 = vld [vmem:[%s10728_s4 + $0x78] sm:$0xff]  }
 0x1bb   : > { %v9144_v21 = vpop.f32.mrf.mxu1  ;;  %10784 = vst [vmem:[#allocation55_spill] sm:$0xff] %v9161_v50  ;;  %7599 = vmatprep.subr.bf16.mxu0 %v9161_v50 }
 0x1bc   : > { %v2235_v6 = vpop.f32.mrf.mxu0 }
 0x1bd   : > { %v9146_v51 = vpop.f32.mrf.mxu1 }
 0x1be   : > { %v9148_v35 = vpop.f32.mrf.mxu0 }
 0x1bf   : > { %v9150_v15 = vpop.f32.mrf.mxu1 }
 0x1c0   : > { %v9152_v33 = vpop.f32.mrf.mxu0 }
 0x1c1   : > { %v9156_v36 = vpop.f32.mrf.mxu1 }
 0x1c2   : > { %v9154_v49 = vpop.f32.mrf.mxu0 }
 0x1c3   : > { %v9168_v29 = vpop.f32.mrf.mxu1 }
 0x1c4   : > { %v9163_v7 = vpop.f32.mrf.mxu0 }
 0x1c5   : > { %v9174_v58 = vpop.f32.mrf.mxu1 }
 0x1c6   : > { %v9166_v2 = vpop.f32.mrf.mxu0  ;;  %10787 = vst [vmem:[#allocation58_spill] sm:$0xff] %v9174_v58 }
 0x1c7   : > { %v9180_v10 = vpop.f32.mrf.mxu1 }
 0x1c8   : > { %v9170_v47 = vpop.f32.mrf.mxu0  ;;  %10790 = vst [vmem:[#allocation61_spill] sm:$0xff] %v9180_v10 }
 0x1c9   : > { %10785 = vst [vmem:[#allocation56_spill] sm:$0xff] %v9170_v47  ;;  %v9186_v50 = vpop.f32.mrf.mxu1 }
 0x1ca   : > { %v9172_v39 = vpop.f32.mrf.mxu0  ;;  %10793 = vst [vmem:[#allocation64_spill] sm:$0xff] %v9186_v50 }
 0x1cb   : > { %10786 = vst [vmem:[#allocation57_spill] sm:$0xff] %v9172_v39  ;;  %v9192_v47 = vpop.f32.mrf.mxu1 }
 0x1cc   : > { %v9176_v5 = vpop.f32.mrf.mxu0  ;;  %10796 = vst [vmem:[#allocation67_spill] sm:$0xff] %v9192_v47 }
 0x1cd   : > { %10788 = vst [vmem:[#allocation59_spill] sm:$0xff] %v9176_v5  ;;  %v9198_v5 = vpop.f32.mrf.mxu1 }
 0x1ce   : > { %v9178_v30 = vpop.f32.mrf.mxu0  ;;  %10799 = vst [vmem:[#allocation70_spill] sm:$0xff] %v9198_v5 }
 0x1cf   : > { %10789 = vst [vmem:[#allocation60_spill] sm:$0xff] %v9178_v30 }
 0x1d0   : > { %v9182_v59 = vpop.f32.mrf.mxu0 }
 0x1d1   : > { %10791 = vst [vmem:[#allocation62_spill] sm:$0xff] %v9182_v59  ;;  %v9204_v59 = vpop.f32.mrf.mxu1 }
 0x1d2   : > { %v9184_v52 = vpop.f32.mrf.mxu0  ;;  %10802 = vst [vmem:[#allocation73_spill] sm:$0xff] %v9204_v59 }
 0x1d3   : > { %10792 = vst [vmem:[#allocation63_spill] sm:$0xff] %v9184_v52 }
 0x1d4   : > { %v9188_v12 = vpop.f32.mrf.mxu0 }
 0x1d5   : > { %10794 = vst [vmem:[#allocation65_spill] sm:$0xff] %v9188_v12  ;;  %v9210_v12 = vpop.f32.mrf.mxu1 }
 0x1d6   : > { %v9190_v55 = vpop.f32.mrf.mxu0  ;;  %10805 = vst [vmem:[#allocation76_spill] sm:$0xff] %v9210_v12 }
 0x1d7   : > { %10795 = vst [vmem:[#allocation66_spill] sm:$0xff] %v9190_v55 }
 0x1d8   : > { %v9194_v39 = vpop.f32.mrf.mxu0 }
 0x1d9   : > { %10797 = vst [vmem:[#allocation68_spill] sm:$0xff] %v9194_v39  ;;  %v9216_v39 = vpop.f32.mrf.mxu1 }
 0x1da   : > { %v9196_v58 = vpop.f32.mrf.mxu0 }
 0x1db   : > { %10798 = vst [vmem:[#allocation69_spill] sm:$0xff] %v9196_v58 }
 0x1dc   : > { %v9200_v30 = vpop.f32.mrf.mxu0 }
 0x1dd   : > { %10800 = vst [vmem:[#allocation71_spill] sm:$0xff] %v9200_v30  ;;  %v9222_v30 = vpop.f32.mrf.mxu1 }
 0x1de   : > { %v9202_v10 = vpop.f32.mrf.mxu0 }
 0x1df   : > { %10801 = vst [vmem:[#allocation72_spill] sm:$0xff] %v9202_v10 }
 0x1e0   : > { %v9206_v52 = vpop.f32.mrf.mxu0 }
 0x1e1   : > { %10803 = vst [vmem:[#allocation74_spill] sm:$0xff] %v9206_v52  ;;  %v9228_v52 = vpop.f32.mrf.mxu1 }
 0x1e2   : > { %v9208_v50 = vpop.f32.mrf.mxu0 }
 0x1e3   : > { %10804 = vst [vmem:[#allocation75_spill] sm:$0xff] %v9208_v50 }
 0x1e4   : > { %v9212_v55 = vpop.f32.mrf.mxu0 }
 0x1e5   : > { %10806 = vst [vmem:[#allocation77_spill] sm:$0xff] %v9212_v55  ;;  %v9240_v55 = vpop.f32.mrf.mxu1 }
 0x1e6   : > { %v9214_v47 = vpop.f32.mrf.mxu0 }
 0x1e7   : > { %10807 = vst [vmem:[#allocation78_spill] sm:$0xff] %v9214_v47  ;;  %v864_v47 = vadd.f32 %v8669_v9, %v8667_v0  ;;  %v2067_v9 = vadd.f32 %v8869_v18, %v8867_v53 }
 0x1e8   : > { %v9218_v58 = vpop.f32.mrf.mxu0 }
 0x1e9   : > { %10808 = vst [vmem:[#allocation79_spill] sm:$0xff] %v9218_v58  ;;  %v1480_v58 = vadd.f32 %v8737_v26, %v8733_v54  ;;  %v1202_v0 = vadd.f32 %v8804_v25, %v864_v47  ;;  %v9263_v25 = vpop.f32.mrf.mxu1  ;;  %v9306_v47 = vld [vmem:[%s10727_s3] ss:$0 sm:$0xff] }
 0x1ea   : > { %v9220_v5 = vpop.f32.mrf.mxu0 }
 0x1eb   : > { %10809 = vst [vmem:[#allocation80_spill] sm:$0xff] %v9220_v5  ;;  %v2069_v5 = vadd.f32 %v8864_v45, %v8862_v63  ;;  %v1774_v54 = vadd.f32 %v8876_v40, %v1480_v58  ;;  %v1484_v63 = vadd.f32 %v8755_v19, %v8751_v4  ;;  %v1488_v45 = vadd.f32 %v8773_v57, %v8769_v60 }
 0x1ec   : > { %v9224_v10 = vpop.f32.mrf.mxu0  ;;  %v1492_v4 = vadd.f32 %v8793_v44, %v8789_v42  ;;  %v2073_v57 = vadd.f32 %v8958_v43, %v8956_v37  ;;  %v10816_v37 = vld [vmem:[#allocation9_spill] sm:$0xff] }
 0x1ed   : > { %10810 = vst [vmem:[#allocation81_spill] sm:$0xff] %v9224_v10  ;;  %v896_v10 = vadd.f32 %v8705_v46, %v8703_v11  ;;  %v2364_v26 = vadd.f32 %v7381_v22, %v2069_v5  ;;  %v1778_v19 = vadd.f32 %v9009_v41, %v1484_v63  ;;  %v1782_v42 = vadd.f32 %v9037_v17, %v1488_v45  ;;  %v10817_v17 = vld [vmem:[#allocation10_spill] sm:$0xff] }
 0x1ee   : > { %v9226_v59 = vpop.f32.mrf.mxu0  ;;  %v2368_v58 = vadd.f32 %v9154_v49, %v2073_v57  ;;  %v10821_v22 = vld [vmem:[#allocation14_spill] sm:$0xff]  ;;  %v1786_v57 = vadd.f32 %v9058_v62, %v1492_v4  ;;  %v10829_v4 = vld [vmem:[#allocation56_spill] sm:$0xff] }
 0x1ef   : > { %10811 = vst [vmem:[#allocation82_spill] sm:$0xff] %v9226_v59  ;;  %v880_v59 = vadd.f32 %v8687_v28, %v8685_v16  ;;  %v1210_v28 = vadd.f32 %v8838_v27, %v896_v10  ;;  %v1496_v27 = vadd.f32 %v8808_v8, %v1202_v0  ;;  %v2658_v53 = vadd.f32 %v9144_v21, %v2364_v26  ;;  %v9288_v8 = vld [vmem:[%s10726_s2] ss:$0 sm:$0xff]  ;;  %v10823_v26 = vld [vmem:[#allocation16_spill] sm:$0xff] }
 0x1f0   : > { %v9230_v50 = vpop.f32.mrf.mxu0  ;;  %v10818_v10 = vld [vmem:[#allocation11_spill] sm:$0xff] }
 0x1f1   : > { %10812 = vst [vmem:[#allocation83_spill] sm:$0xff] %v9230_v50  ;;  %v1206_v16 = vadd.f32 %v8822_v34, %v880_v59  ;;  %v9280_v60 = vadd.f32 %v8842_v32, %v1210_v28  ;;  %v9295_v32 = vpop.f32.mrf.mxu1  ;;  %v10815_v59 = vld [vmem:[#allocation8_spill] sm:$0xff]  ;;  %v10825_v28 = vld [vmem:[#allocation18_spill] sm:$0xff] }
 0x1f2   : > { %v9232_v12 = vpop.f32.mrf.mxu0  ;;  %v2071_v43 = vadd.f32 %v10816_v37, %v10815_v59  ;;  %v10827_v59 = vld [vmem:[#allocation20_spill] sm:$0xff] }
 0x1f3   : > { %10813 = vst [vmem:[#allocation84_spill] sm:$0xff] %v9232_v12  ;;  %v912_v12 = vadd.f32 %v8719_v38, %v8717_v23  ;;  %v2070_v23 = vadd.f32 %v8874_v56, %v8872_v1  ;;  %v2362_v38 = vadd.f32 %v2235_v6, %v2067_v9  ;;  %v9277_v1 = vadd.f32 %v8826_v13, %v1206_v16  ;;  %v10814_v56 = vld [vmem:[#allocation7_spill] sm:$0xff]  ;;  %v10819_v6 = vld [vmem:[#allocation12_spill] sm:$0xff]  ;;  %v10824_v16 = vld [vmem:[#allocation17_spill] sm:$0xff] }
 0x1f4   : > { %v9248_v50 = vpop.f32.mrf.mxu0  ;;  %v2072_v5 = vadd.f32 %v10819_v6, %v1778_v19  ;;  %v2078_v49 = vadd.f32 %v10825_v28, %v10824_v16  ;;  %v9319_v19 = vpop.f32.mrf.mxu1  ;;  %v10831_v6 = vld [vmem:[#allocation29_spill] sm:$0xff]  ;;  %v10834_v16 = vld [vmem:[#allocation22_spill] sm:$0xff]  ;;  %v10835_v28 = vld [vmem:[#allocation23_spill] sm:$0xff] }
 0x1f5   : > { %v1214_v46 = vadd.f32 %v8855_v24, %v912_v12  ;;  %v2068_v24 = vadd.f32 %v8878_v48, %v1774_v54  ;;  %v2365_v18 = vadd.f32 %v9148_v35, %v2070_v23  ;;  %v2656_v13 = vadd.f32 %v9146_v51, %v2362_v38  ;;  %v10822_v54 = vld [vmem:[#allocation15_spill] sm:$0xff] }
 0x1f6   : > { %v9258_v11 = vpop.f32.mrf.mxu0  ;;  %v2074_v12 = vadd.f32 %v10818_v10, %v10817_v17  ;;  %v2075_v63 = vadd.f32 %v10823_v26, %v10822_v54  ;;  %v2366_v23 = vadd.f32 %v9163_v7, %v2071_v43 }
 0x1f7   : > { %v9291_v40 = vadd.f32 %v10814_v56, %v1214_v46  ;;  %v2363_v48 = vadd.f32 %v9152_v33, %v2068_v24  ;;  %v10820_v33 = vld [vmem:[#allocation13_spill] sm:$0xff]  ;;  %v2659_v35 = vadd.f32 %v9150_v15, %v2365_v18  ;;  %v2076_v46 = vadd.f32 %v9039_v3, %v1782_v42 }
 0x1f8   : > { %v9270_v34 = vpop.f32.mrf.mxu0  ;;  %v2077_v21 = vadd.f32 %v10821_v22, %v10820_v33  ;;  %v9325_v18 = vadd.f32 %v9044_v20, %v9042_v14  ;;  %v2662_v3 = vadd.f32 %v9168_v29, %v2368_v58  ;;  %v2369_v7 = vadd.f32 %v9166_v2, %v2074_v12  ;;  %v10828_v20 = vld [vmem:[#allocation58_spill] sm:$0xff]  ;;  %v9340_v2 = vpop.f32.mrf.mxu1  ;;  %v10833_v22 = vld [vmem:[#allocation57_spill] sm:$0xff] }
 0x1f9   : > { %v2657_v45 = vadd.f32 %v9156_v36, %v2363_v48  ;;  %v2079_v48 = vadd.f32 %v9051_v31, %v9049_v61  ;;  %v2660_v62 = vadd.f32 %v10828_v20, %v2366_v23  ;;  %v2367_v29 = vadd.f32 %v10829_v4, %v2072_v5  ;;  %v10830_v61 = vld [vmem:[#allocation21_spill] sm:$0xff]  ;;  %v10844_v4 = vld [vmem:[#allocation60_spill] sm:$0xff] }
 0x1fa   : > { %v7449_v44 = vpop.f32.mrf.mxu0  ;;  %v9346_v31 = vadd.f32 %v10830_v61, %v1786_v57  ;;  %v1790_v58 = vadd.f32 %v10831_v6, %v1496_v27  ;;  %v2372_v5 = vadd.f32 %v10833_v22, %v2077_v21  ;;  %v9356_v23 = vadd.f32 %v10835_v28, %v10834_v16  ;;  %v10839_v21 = vld [vmem:[#allocation59_spill] sm:$0xff]  ;;  %v10846_v6 = vld [vmem:[#allocation32_spill] sm:$0xff]  ;;  %v10848_v22 = vld [vmem:[#allocation70_spill] sm:$0xff] }
 0x1fb   : > { %v2952_v41 = vadd.f32 %v7449_v44, %v2658_v53  ;;  %v10845_v61 = vld [vmem:[#allocation31_spill] sm:$0xff] }
 0x1fc   : > { %v2823_v51 = vpop.f32.mrf.mxu0 }
 0x1fd   : > { %v2991_v0 = vmul.f32 %v9288_v8, %v2952_v41  ;;  %v2950_v9 = vadd.f32 %v2823_v51, %v2656_v13  ;;  %v10826_v41 = vld [vmem:[#allocation19_spill] sm:$0xff]  ;;  %v10832_v51 = vld [vmem:[#allocation61_spill] sm:$0xff] }
 0x1fe   : > { %v7450_v38 = vpop.f32.mrf.mxu0  ;;  %v9336_v14 = vadd.f32 %v10827_v59, %v10826_v41  ;;  %v2663_v33 = vadd.f32 %v10832_v51, %v2369_v7  ;;  %v10842_v59 = vld [vmem:[#allocation30_spill] sm:$0xff]  ;;  %v9383_v51 = vadd.f32 %v10846_v6, %v10845_v61 }
 0x1ff   : > { %v3030_v15 = vadd.f32 %v9306_v47, %v2991_v0  ;;  %v2989_v24 = vmul.f32 %v9288_v8, %v2950_v9  ;;  %v2953_v53 = vadd.f32 %v7450_v38, %v2659_v35  ;;  %v10836_v38 = vld [vmem:[#allocation25_spill] sm:$0xff]  ;;  %v9374_v20 = vadd.f32 %v10842_v59, %v1790_v58  ;;  %v10856_v59 = vld [vmem:[#allocation36_spill] sm:$0xff] }
 0x200   : > { %v2826_v42 = vpop.f32.mrf.mxu0  ;;  %v10847_v58 = vld [vmem:[#allocation37_spill] sm:$0xff] }
 0x201   : > { %v3062_v44 = vmax.f32 %v3030_v15, 0.0  ;;  %v3028_v36 = vadd.f32 %v9306_v47, %v2989_v24  ;;  %v2992_v56 = vmul.f32 %v9288_v8, %v2953_v53  ;;  %v2951_v13 = vadd.f32 %v2826_v42, %v2657_v45  ;;  %v10837_v45 = vld [vmem:[#allocation26_spill] sm:$0xff]  ;;  %v10838_v15 = vld [vmem:[#allocation64_spill] sm:$0xff] }
 0x202   : > { %v7453_v37 = vpop.f32.mrf.mxu0  ;;  %v9360_v27 = vadd.f32 %v10837_v45, %v10836_v38  ;;  %v2661_v24 = vadd.f32 %v10838_v15, %v2367_v29  ;;  %v2370_v53 = vadd.f32 %v10839_v21, %v2075_v63  ;;  %v2373_v29 = vadd.f32 %v10844_v4, %v2078_v49  ;;  %v10850_v38 = vld [vmem:[#allocation33_spill] sm:$0xff]  ;;  %v10851_v45 = vld [vmem:[#allocation34_spill] sm:$0xff]  ;;  %v10853_v21 = vld [vmem:[#allocation63_spill] sm:$0xff] }
 0x203   : > { %3151 = vst.msk [vmem:[#allocation3 + $0x31] sm:$0xff] %vm3092_vm3, %v3062_v44  ;;  %v3060_v43 = vmax.f32 %v3028_v36, 0.0  ;;  %v3031_v17 = vadd.f32 %v9306_v47, %v2992_v56  ;;  %v2990_v10 = vmul.f32 %v9288_v8, %v2951_v13  ;;  %v2956_v12 = vadd.f32 %v7453_v37, %v2662_v3  ;;  %v9364_v3 = vpop.f32.mrf.mxu1  ;;  %v10840_v56 = vld [vmem:[#allocation27_spill] sm:$0xff]  ;;  %v10841_v13 = vld [vmem:[#allocation28_spill] sm:$0xff] }
 0x204   : > { %v2839_v35 = vpop.f32.mrf.mxu0  ;;  %v9371_v41 = vadd.f32 %v10841_v13, %v10840_v56  ;;  %v9396_v15 = vadd.f32 %v10851_v45, %v10850_v38  ;;  %v10855_v13 = vld [vmem:[#allocation35_spill] sm:$0xff] }
 0x205   : > { %3149 = vst.msk [vmem:[#allocation3 + $0x19] sm:$0xff] %vm3092_vm3, %v3060_v43  ;;  %v3063_v0 = vmax.f32 %v3031_v17, 0.0  ;;  %v3029_v9 = vadd.f32 %v9306_v47, %v2990_v10  ;;  %v2995_v54 = vmul.f32 %v9288_v8, %v2956_v12  ;;  %v2954_v26 = vadd.f32 %v2839_v35, %v2660_v62  ;;  %v10843_v62 = vld [vmem:[#allocation67_spill] sm:$0xff]  ;;  %v10849_v35 = vld [vmem:[#allocation62_spill] sm:$0xff] }
 0x206   : > { %v7454_v57 = vpop.f32.mrf.mxu0  ;;  %v2666_v63 = vadd.f32 %v10843_v62, %v2372_v5  ;;  %v2664_v5 = vadd.f32 %v10848_v22, %v2370_v53  ;;  %v2371_v49 = vadd.f32 %v10849_v35, %v2076_v46  ;;  %v2376_v46 = vadd.f32 %v10853_v21, %v9325_v18  ;;  %v10854_v53 = vld [vmem:[#allocation65_spill] sm:$0xff]  ;;  %v10860_v22 = vld [vmem:[#allocation39_spill] sm:$0xff] }
 0x207   : > { %3152 = vst.msk [vmem:[#allocation3 + $0x39] sm:$0xff] %vm3092_vm3, %v3063_v0  ;;  %v3061_v7 = vmax.f32 %v3029_v9, 0.0  ;;  %v3034_v42 = vadd.f32 %v9306_v47, %v2995_v54  ;;  %v2993_v44 = vmul.f32 %v9288_v8, %v2954_v26  ;;  %v2957_v36 = vadd.f32 %v7454_v57, %v2663_v33  ;;  %v9389_v9 = vpop.f32.mrf.mxu1 }
 0x208   : > { %v2842_v37 = vpop.f32.mrf.mxu0  ;;  %v1794_v33 = vadd.f32 %v10847_v58, %v9277_v1  ;;  %v10852_v1 = vld [vmem:[#allocation73_spill] sm:$0xff]  ;;  %v2374_v57 = vadd.f32 %v10854_v53, %v2079_v48  ;;  %v9407_v62 = vadd.f32 %v10856_v59, %v10855_v13  ;;  %v10859_v48 = vld [vmem:[#allocation66_spill] sm:$0xff]  ;;  %v2670_v35 = vadd.f32 %v9216_v39, %v2376_v46 }
 0x209   : > { %3150 = vst.msk [vmem:[#allocation3 + $0x21] sm:$0xff] %vm3092_vm3, %v3061_v7  ;;  %v3066_v43 = vmax.f32 %v3034_v42, 0.0  ;;  %v3032_v17 = vadd.f32 %v9306_v47, %v2993_v44  ;;  %v2996_v10 = vmul.f32 %v9288_v8, %v2957_v36  ;;  %v2955_v12 = vadd.f32 %v2842_v37, %v2661_v24 }
 0x20a   : > { %v7457_v0 = vpop.f32.mrf.mxu0  ;;  %v2667_v24 = vadd.f32 %v10852_v1, %v2373_v29  ;;  %v10858_v29 = vld [vmem:[#allocation76_spill] sm:$0xff]  ;;  %v2377_v37 = vadd.f32 %v10859_v48, %v9336_v14  ;;  %v2668_v14 = vadd.f32 %v9222_v30, %v2374_v57  ;;  %v3185_v59 = vld [vmem:[#allocation3 + $0x30] sm:$0xff] }
 0x20b   : > { %3155 = vst.msk [vmem:[#allocation3 + $0x61] sm:$0xff] %vm3092_vm3, %v3066_v43  ;;  %v3064_v54 = vmax.f32 %v3032_v17, 0.0  ;;  %v3035_v26 = vadd.f32 %v9306_v47, %v2996_v10  ;;  %v2994_v16 = vmul.f32 %v9288_v8, %v2955_v12  ;;  %v2960_v28 = vadd.f32 %v7457_v0, %v2666_v63  ;;  %v10857_v63 = vld [vmem:[#allocation38_spill] sm:$0xff]  ;;  %v9415_v17 = vpop.f32.mrf.mxu1 }
 0x20c   : > { %v2855_v7 = vpop.f32.mrf.mxu0  ;;  %v9410_v4 = vadd.f32 %v10857_v63, %v1794_v33  ;;  %v2665_v18 = vadd.f32 %v10858_v29, %v2371_v49  ;;  %v10861_v33 = vld [vmem:[#allocation40_spill] sm:$0xff]  ;;  %v2671_v30 = vadd.f32 %v9228_v52, %v2377_v37  ;;  %v10863_v63 = vld [vmem:[#allocation69_spill] sm:$0xff] }
 0x20d   : > { %3153 = vst.msk [vmem:[#allocation3 + $0x49] sm:$0xff] %vm3092_vm3, %v3064_v54  ;;  %v3067_v42 = vmax.f32 %v3035_v26, 0.0  ;;  %v3033_v44 = vadd.f32 %v9306_v47, %v2994_v16  ;;  %v2999_v36 = vmul.f32 %v9288_v8, %v2960_v28  ;;  %v2958_v56 = vadd.f32 %v2855_v7, %v2664_v5  ;;  %v10862_v49 = vld [vmem:[#allocation68_spill] sm:$0xff] }
 0x20e   : > { %v7458_v43 = vpop.f32.mrf.mxu0  ;;  %v3242_v58 = vld [vmem:[#allocation3 + $0x39] sm:$0xff]  ;;  %v9422_v5 = vadd.f32 %v10861_v33, %v10860_v22  ;;  %v2375_v0 = vadd.f32 %v10862_v49, %v9346_v31  ;;  %v3241_v28 = vld [vmem:[#allocation3 + $0x31] sm:$0xff]  ;;  %v2380_v29 = vadd.f32 %v10863_v63, %v9356_v23  ;;  %v10867_v22 = vld [vmem:[#allocation42_spill] sm:$0xff] }
 0x20f   : > { %3156 = vst.msk [vmem:[#allocation3 + $0x69] sm:$0xff] %vm3092_vm3, %v3067_v42  ;;  %v3065_v10 = vmax.f32 %v3033_v44, 0.0  ;;  %v3038_v12 = vadd.f32 %v9306_v47, %v2999_v36  ;;  %v2997_v61 = vmul.f32 %v9288_v8, %v2958_v56  ;;  %v2961_v6 = vadd.f32 %v7458_v43, %v2667_v24  ;;  %v3239_v21 = vld [vmem:[#allocation3 + $0x19] sm:$0xff]  ;;  %v9441_v44 = vpop.f32.mrf.mxu1 }
 0x210   : > { %v2858_v54 = vpop.f32.mrf.mxu0  ;;  %v3240_v26 = vld [vmem:[#allocation3 + $0x21] sm:$0xff]  ;;  %v3183_v53 = vld [vmem:[#allocation3 + $0x18] sm:$0xff]  ;;  %v9436_v7 = vpack.c.bf16 %v3242_v58, %v3241_v28 }
 0x211   : > { %v3184_v16 = vld [vmem:[#allocation3 + $0x20] sm:$0xff]  ;;  %3154 = vst.msk [vmem:[#allocation3 + $0x51] sm:$0xff] %vm3092_vm3, %v3065_v10  ;;  %v3070_v38 = vmax.f32 %v3038_v12, 0.0  ;;  %v3036_v45 = vadd.f32 %v9306_v47, %v2997_v61  ;;  %v3000_v1 = vmul.f32 %v9288_v8, %v2961_v6  ;;  %v2959_v24 = vadd.f32 %v2858_v54, %v2665_v18  ;;  %v3186_v39 = vld [vmem:[#allocation3 + $0x38] sm:$0xff]  ;;  %v10864_v18 = vld [vmem:[#allocation71_spill] sm:$0xff] }
 0x212   : > { %v7461_v46 = vpop.f32.mrf.mxu0  ;;  %v9432_v57 = vpack.c.bf16 %v3240_v26, %v3239_v21  ;;  %v9434_v31 = vpack.c.bf16 %v3184_v16, %v3183_v53  ;;  %v7899_v42 = vld [vmem:[%s10728_s4 + $0x50] sm:$0xff]   ;;  %v2378_v48 = vadd.f32 %v10864_v18, %v9360_v27  ;;  %v9454_v43 = vpack.c.bf16 %v3186_v39, %v3185_v59  ;;  %v10865_v61 = vld [vmem:[#allocation24_spill] sm:$0xff]  ;;  %v9479_v16 = vpop.f32.mrf.mxu1 }
 0x213   : > { %3159 = vst.msk [vmem:[#allocation3 + $0x91] sm:$0xff] %vm3092_vm3, %v3070_v38  ;;  %v3068_v36 = vmax.f32 %v3036_v45, 0.0  ;;  %v3039_v56 = vadd.f32 %v9306_v47, %v3000_v1  ;;  %v2998_v52 = vmul.f32 %v9288_v8, %v2959_v24  ;;  %v2964_v13 = vadd.f32 %v7461_v46, %v2670_v35  ;;  %v7903_v10 = vld [vmem:[%s10728_s4 + $0x70] sm:$0xff]   ;;  %v10869_v1 = vld [vmem:[#allocation55_spill] sm:$0xff]  ;;  %v10870_v21 = vld [vmem:[#allocation72_spill] sm:$0xff] }
 0x214   : > { %7488 = vmatmul.mubr.msk.bf16.vlgmr.msra.gmra.mxu1 %vm3092_vm3, %v9432_v57  ;;  %7528 = vmatmul.mubr.msk.bf16.vlgmr.msra.gmra.mxu0 %vm3092_vm3, %v9434_v31  ;;  %v2871_v37 = vpop.f32.mrf.mxu0  ;;  %v10866_v58 = vld [vmem:[#allocation41_spill] sm:$0xff]  ;;  %v2669_v54 = vadd.f32 %v9240_v55, %v2375_v0  ;;  %v2674_v24 = vadd.f32 %v9263_v25, %v2380_v29  ;;  %v2381_v53 = vadd.f32 %v10870_v21, %v9371_v41  ;;  %v10871_v46 = vld [vmem:[#allocation74_spill] sm:$0xff] }
 0x215   : > { %3157 = vst.msk [vmem:[#allocation3 + $0x79] sm:$0xff] %vm3092_vm3, %v3068_v36  ;;  %v3071_v12 = vmax.f32 %v3039_v56, 0.0  ;;  %v3037_v23 = vadd.f32 %v9306_v47, %v2998_v52  ;;  %v3003_v27 = vmul.f32 %v9288_v8, %v2964_v13  ;;  %7560 = vmatpush3.bf16.msra.mxu1 %v10865_v61  ;;  %v2962_v6 = vadd.f32 %v2871_v37, %v2668_v14  ;;  %v10868_v35 = vld [vmem:[#allocation45_spill] sm:$0xff]  ;;  %v7900_v14 = vld [vmem:[%s10728_s4 + $0x48] sm:$0xff]   ;;  %v3243_v18 = vld [vmem:[#allocation3 + $0x49] sm:$0xff]  ;;  %v9505_v61 = vpop.f32.mrf.mxu1 }
 0x216   : > { %7491 = vmatprep.mubr.msk.bf16.mxu1 %vm3092_vm3, %v9436_v7  ;;  %v9467_v33 = vadd.f32 %v10867_v22, %v10866_v58  ;;  %v9471_v49 = vadd.f32 %v10868_v35, %v9280_v60  ;;  %7531 = vmatprep.mubr.msk.bf16.mxu0 %vm3092_vm3, %v9454_v43  ;;  %v7462_v26 = vpop.f32.mrf.mxu0  ;;  %v3246_v55 = vld [vmem:[#allocation3 + $0x69] sm:$0xff]  ;;  %v2672_v39 = vadd.f32 %v9295_v32, %v2378_v48  ;;  %v3245_v59 = vld [vmem:[#allocation3 + $0x61] sm:$0xff] }
 0x217   : > { %7561 = vmatprep.subr.bf16.mxu1 %v7899_v42  ;;  %3160 = vst.msk [vmem:[#allocation3 + $0x99] sm:$0xff] %vm3092_vm3, %v3071_v12  ;;  %v3069_v28 = vmax.f32 %v3037_v23, 0.0  ;;  %v3042_v38 = vadd.f32 %v9306_v47, %v3003_v27  ;;  %v3001_v60 = vmul.f32 %v9288_v8, %v2962_v6  ;;  %v2965_v45 = vadd.f32 %v7462_v26, %v2671_v30  ;;  %v3190_v0 = vld [vmem:[#allocation3 + $0x68] sm:$0xff]  ;;  %v3189_v37 = vld [vmem:[#allocation3 + $0x60] sm:$0xff]  ;;  %v7904_v27 = vld [vmem:[%s10728_s4 + $0x68] sm:$0xff]  }
 0x218   : > { %7600 = vmatpush3.bf16.msra.mxu0 %v10869_v1  ;;  %v2379_v36 = vadd.f32 %v10871_v46, %v9374_v20  ;;  %v2874_v56 = vpop.f32.mrf.mxu0  ;;  %v3244_v52 = vld [vmem:[#allocation3 + $0x51] sm:$0xff]  ;;  %v3187_v41 = vld [vmem:[#allocation3 + $0x48] sm:$0xff]  ;;  %v9498_v12 = vpack.c.bf16 %v3246_v55, %v3245_v59  ;;  %v9500_v23 = vpack.c.bf16 %v3190_v0, %v3189_v37 }
 0x219   : > { %v3188_v13 = vld [vmem:[#allocation3 + $0x50] sm:$0xff]  ;;  %7601 = vmatprep.subr.bf16.mxu0 %v7903_v10  ;;  %3158 = vst.msk [vmem:[#allocation3 + $0x81] sm:$0xff] %vm3092_vm3, %v3069_v28  ;;  %v3074_v30 = vmax.f32 %v3042_v38, 0.0  ;;  %v3040_v63 = vadd.f32 %v9306_v47, %v3001_v60  ;;  %v3004_v25 = vmul.f32 %v9288_v8, %v2965_v45  ;;  %v2963_v29 = vadd.f32 %v2874_v56, %v2669_v54  ;;  %v10873_v38 = vld [vmem:[#allocation77_spill] sm:$0xff]  ;;  %v10875_v1 = vld [vmem:[#allocation44_spill] sm:$0xff] }
 0x21a   : > { %7562 = vmatpush3.bf16.msra.mxu1 %v7899_v42  ;;  %v7465_v32 = vpop.f32.mrf.mxu0  ;;  %v9494_v48 = vpack.c.bf16 %v3244_v52, %v3243_v18  ;;  %v9496_v20 = vpack.c.bf16 %v3188_v13, %v3187_v41  ;;  %v7901_v35 = vld [vmem:[%s10728_s4 + $0x40] sm:$0xff]   ;;  %v2675_v54 = vadd.f32 %v9319_v19, %v2381_v53  ;;  %v2382_v60 = vadd.f32 %v10873_v38, %v9396_v15  ;;  %v10876_v21 = vld [vmem:[#allocation46_spill] sm:$0xff] }
 0x21b   : > { %7563 = vmatprep.subr.bf16.mxu1 %v7900_v14  ;;  %3163 = vst.msk [vmem:[#allocation3 + $0xc1] sm:$0xff] %vm3092_vm3, %v3074_v30  ;;  %v3072_v6 = vmax.f32 %v3040_v63, 0.0  ;;  %v3043_v42 = vadd.f32 %v9306_v47, %v3004_v25  ;;  %v3002_v58 = vmul.f32 %v9288_v8, %v2963_v29  ;;  %v2968_v22 = vadd.f32 %v7465_v32, %v2674_v24  ;;  %v10872_v26 = vld [vmem:[#allocation75_spill] sm:$0xff] }
 0x21c   : > { %7602 = vmatpush3.bf16.msra.mxu0 %v7903_v10  ;;  %v2384_v28 = vadd.f32 %v10872_v26, %v9383_v51  ;;  %7492 = vmatmul.mubr.msk.bf16.gmra.mxu1 %vm3092_vm3, %v9494_v48  ;;  %v2887_v45 = vpop.f32.mrf.mxu0  ;;  %v7905_v55 = vld [vmem:[%s10728_s4 + $0x60] sm:$0xff]   ;;  %v9538_v53 = vadd.f32 %v10876_v21, %v9471_v49  ;;  %v2673_v46 = vadd.f32 %v9340_v2, %v2379_v36  ;;  %v9549_v2 = vld [vmem:[%s10728_s4 + $0x98] sm:$0xff]  }
 0x21d   : > { %7532 = vmatmul.mubr.msk.bf16.gmra.mxu0 %vm3092_vm3, %v9496_v20  ;;  %3161 = vst.msk [vmem:[#allocation3 + $0xa9] sm:$0xff] %vm3092_vm3, %v3072_v6  ;;  %v3075_v19 = vmax.f32 %v3043_v42, 0.0  ;;  %v3041_v10 = vadd.f32 %v9306_v47, %v3002_v58  ;;  %v3007_v51 = vmul.f32 %v9288_v8, %v2968_v22  ;;  %v2966_v0 = vadd.f32 %v2887_v45, %v2672_v39  ;;  %v10874_v15 = vld [vmem:[#allocation43_spill] sm:$0xff]  ;;  %v9541_v39 = vpop.f32.mrf.mxu1  ;;  %v9571_v45 = vld [vmem:[%s10728_s4 + $0xb8] sm:$0xff]  }
 0x21e   : > { %7495 = vmatprep.mubr.msk.bf16.mxu1 %vm3092_vm3, %v9498_v12  ;;  %7535 = vmatprep.mubr.msk.bf16.mxu0 %vm3092_vm3, %v9500_v23  ;;  %v9534_v24 = vadd.f32 %v10875_v1, %v10874_v15  ;;  %v7466_v56 = vpop.f32.mrf.mxu0  ;;  %v3250_v63 = vld [vmem:[#allocation3 + $0x99] sm:$0xff]  ;;  %v2678_v49 = vadd.f32 %v9364_v3, %v2384_v28  ;;  %v2676_v29 = vadd.f32 %v9389_v9, %v2382_v60  ;;  %v10878_v18 = vld [vmem:[#allocation79_spill] sm:$0xff] }
 0x21f   : > { %7564 = vmatpush3.bf16.msra.mxu1 %v7900_v14  ;;  %7603 = vmatprep.subr.bf16.mxu0 %v7904_v27  ;;  %3164 = vst.msk [vmem:[#allocation3 + $0xc9] sm:$0xff] %vm3092_vm3, %v3075_v19  ;;  %v3073_v52 = vmax.f32 %v3041_v10, 0.0  ;;  %v3046_v13 = vadd.f32 %v9306_v47, %v3007_v51  ;;  %v3005_v59 = vmul.f32 %v9288_v8, %v2966_v0  ;;  %v3194_v25 = vld [vmem:[#allocation3 + $0x98] sm:$0xff]  ;;  %v10877_v14 = vld [vmem:[#allocation78_spill] sm:$0xff]  ;;  %v3193_v26 = vld [vmem:[#allocation3 + $0x90] sm:$0xff]  ;;  %v9573_v19 = vpop.f32.mrf.mxu1 }
 0x220   : > { %v2969_v30 = vadd.f32 %v7466_v56, %v2675_v54  ;;  %7565 = vmatprep.subr.bf16.mxu1 %v7901_v35  ;;  %7604 = vmatpush3.bf16.msra.mxu0 %v7904_v27  ;;  %v2385_v36 = vadd.f32 %v10877_v14, %v9407_v62  ;;  %v2383_v41 = vadd.f32 %v10878_v18, %v9410_v4  ;;  %v2890_v37 = vpop.f32.mrf.mxu0  ;;  %v3248_v32 = vld [vmem:[#allocation3 + $0x81] sm:$0xff]  ;;  %v3249_v42 = vld [vmem:[#allocation3 + $0x91] sm:$0xff]  ;;  %v3247_v54 = vld [vmem:[#allocation3 + $0x79] sm:$0xff] }
 0x221   : > { %v3192_v6 = vld [vmem:[#allocation3 + $0x80] sm:$0xff]  ;;  %7605 = vmatprep.subr.bf16.mxu0 %v7905_v55  ;;  %3162 = vst.msk [vmem:[#allocation3 + $0xb1] sm:$0xff] %vm3092_vm3, %v3073_v52  ;;  %v3078_v27 = vmax.f32 %v3046_v13, 0.0  ;;  %v3044_v58 = vadd.f32 %v9306_v47, %v3005_v59  ;;  %v2967_v22 = vadd.f32 %v2890_v37, %v2673_v46  ;;  %v3191_v62 = vld [vmem:[#allocation3 + $0x78] sm:$0xff]  ;;  %v9560_v28 = vpack.c.bf16 %v3248_v32, %v3247_v54 }
 0x222   : > { %v3008_v3 = vmul.f32 %v9288_v8, %v2969_v30  ;;  %v7469_v9 = vpop.f32.mrf.mxu0  ;;  %v9562_v4 = vpack.c.bf16 %v3192_v6, %v3191_v62  ;;  %v9564_v38 = vpack.c.bf16 %v3250_v63, %v3249_v42  ;;  %v9566_v60 = vpack.c.bf16 %v3194_v25, %v3193_v26  ;;  %v10879_v1 = vld [vmem:[#allocation80_spill] sm:$0xff]  ;;  %v10880_v46 = vld [vmem:[#allocation81_spill] sm:$0xff]  ;;  %v10884_v25 = vld [vmem:[#allocation50_spill] sm:$0xff] }
 0x223   : > { %7566 = vmatpush3.bf16.msra.mxu1 %v7901_v35  ;;  %3167 = vst.msk [vmem:[#allocation3 + $0xf1] sm:$0xff] %vm3092_vm3, %v3078_v27  ;;  %v3076_v10 = vmax.f32 %v3044_v58, 0.0  ;;  %v3006_v0 = vmul.f32 %v9288_v8, %v2967_v22  ;;  %v2972_v15 = vadd.f32 %v7469_v9, %v2678_v49  ;;  %v2679_v35 = vadd.f32 %v9415_v17, %v2385_v36  ;;  %v10883_v63 = vld [vmem:[#allocation49_spill] sm:$0xff] }
 0x224   : > { %v3047_v51 = vadd.f32 %v9306_v47, %v3008_v3  ;;  %7606 = vmatpush3.bf16.msra.mxu0 %v7905_v55  ;;  %7639 = vmatprep.subr.bf16.mxu1 %v9549_v2  ;;  %v2388_v21 = vadd.f32 %v10879_v1, %v9422_v5  ;;  %v2386_v56 = vadd.f32 %v10880_v46, %v9467_v33  ;;  %v2903_v52 = vpop.f32.mrf.mxu0  ;;  %v10881_v5 = vld [vmem:[#allocation47_spill] sm:$0xff]  ;;  %v10882_v33 = vld [vmem:[#allocation48_spill] sm:$0xff]  ;;  %v10885_v14 = vld [vmem:[#allocation53_spill] sm:$0xff] }
 0x225   : > { %7496 = vmatmul.mubr.msk.bf16.gmra.mxu1 %vm3092_vm3, %v9560_v28  ;;  %7536 = vmatmul.mubr.msk.bf16.gmra.mxu0 %vm3092_vm3, %v9562_v4  ;;  %3165 = vst.msk [vmem:[#allocation3 + $0xd9] sm:$0xff] %vm3092_vm3, %v3076_v10  ;;  %v3045_v13 = vadd.f32 %v9306_v47, %v3006_v0  ;;  %v3011_v17 = vmul.f32 %v9288_v8, %v2972_v15  ;;  %v3251_v1 = vld [vmem:[#allocation3 + $0xa9] sm:$0xff] }
 0x226   : > { %v3079_v55 = vmax.f32 %v3047_v51, 0.0  ;;  %v2970_v59 = vadd.f32 %v2903_v52, %v2676_v29  ;;  %7499 = vmatprep.mubr.msk.bf16.mxu1 %vm3092_vm3, %v9564_v38  ;;  %7539 = vmatprep.mubr.msk.bf16.mxu0 %vm3092_vm3, %v9566_v60  ;;  %v2097_v30 = vadd.f32 %v10882_v33, %v10881_v5  ;;  %v2095_v49 = vadd.f32 %v10884_v25, %v10883_v63  ;;  %v7470_v37 = vpop.f32.mrf.mxu0  ;;  %v7443_v29 = vpop.f32.mrf.mxu1  ;;  %v3254_v58 = vld [vmem:[#allocation3 + $0xc9] sm:$0xff]  ;;  %v3253_v51 = vld [vmem:[#allocation3 + $0xc1] sm:$0xff]  ;;  %v10888_v63 = vld [vmem:[#allocation84_spill] sm:$0xff] }
 0x227   : > { %v1802_v36 = vadd.f32 %v10885_v14, %v9291_v40  ;;  %v2677_v18 = vadd.f32 %v9441_v44, %v2383_v41  ;;  %7679 = vmatprep.subr.bf16.mxu0 %v9571_v45  ;;  %v3077_v32 = vmax.f32 %v3045_v13, 0.0  ;;  %v3050_v6 = vadd.f32 %v9306_v47, %v3011_v17  ;;  %v3198_v3 = vld [vmem:[#allocation3 + $0xc8] sm:$0xff]  ;;  %v10887_v41 = vld [vmem:[#allocation83_spill] sm:$0xff] }
 0x228   : > { %3168 = vst.msk [vmem:[#allocation3 + $0xf9] sm:$0xff] %vm3092_vm3, %v3079_v55  ;;  %v3009_v42 = vmul.f32 %v9288_v8, %v2970_v59  ;;  %v2973_v27 = vadd.f32 %v7470_v37, %v2679_v35  ;;  %v2682_v22 = vadd.f32 %v9479_v16, %v2388_v21  ;;  %v10886_v40 = vld [vmem:[#allocation82_spill] sm:$0xff]  ;;  %v2680_v44 = vadd.f32 %v9505_v61, %v2386_v56  ;;  %v2906_v26 = vpop.f32.mrf.mxu0  ;;  %v3252_v9 = vld [vmem:[#allocation3 + $0xb1] sm:$0xff]  ;;  %v2641_v55 = vpop.f32.mrf.mxu1 }
 0x229   : > { %v2389_v54 = vadd.f32 %v10886_v40, %v9534_v24  ;;  %v2387_v62 = vadd.f32 %v10887_v41, %v9538_v53  ;;  %v3196_v10 = vld [vmem:[#allocation3 + $0xb0] sm:$0xff]  ;;  %3166 = vst.msk [vmem:[#allocation3 + $0xe1] sm:$0xff] %vm3092_vm3, %v3077_v32  ;;  %v3082_v0 = vmax.f32 %v3050_v6, 0.0  ;;  %v2971_v16 = vadd.f32 %v2906_v26, %v2677_v18  ;;  %v3195_v21 = vld [vmem:[#allocation3 + $0xa8] sm:$0xff]  ;;  %v3197_v24 = vld [vmem:[#allocation3 + $0xc0] sm:$0xff] }
 0x22a   : > { %v3048_v15 = vadd.f32 %v9306_v47, %v3009_v42  ;;  %v3012_v35 = vmul.f32 %v9288_v8, %v2973_v27  ;;  %v7473_v46 = vpop.f32.mrf.mxu0  ;;  %v9615_v61 = vpack.c.bf16 %v3252_v9, %v3251_v1  ;;  %v9617_v56 = vpack.c.bf16 %v3196_v10, %v3195_v21 }
 0x22b   : > { %v9619_v53 = vpack.c.bf16 %v3254_v58, %v3253_v51  ;;  %v9621_v52 = vpack.c.bf16 %v3198_v3, %v3197_v24  ;;  %3171 = vst.msk [vmem:[#allocation3 + $0x121] sm:$0xff] %vm3092_vm3, %v3082_v0  ;;  %v3010_v59 = vmul.f32 %v9288_v8, %v2971_v16  ;;  %v2976_v5 = vadd.f32 %v7473_v46, %v2682_v22  ;;  %v7444_v22 = vpop.f32.mrf.mxu1 }
 0x22c   : > { %v3080_v13 = vmax.f32 %v3048_v15, 0.0  ;;  %v3051_v17 = vadd.f32 %v9306_v47, %v3012_v35  ;;  %v2683_v33 = vadd.f32 %v9541_v39, %v2389_v54  ;;  %v2392_v25 = vadd.f32 %v10888_v63, %v2097_v30  ;;  %v2919_v18 = vpop.f32.mrf.mxu0  ;;  %v10890_v39 = vld [vmem:[#allocation52_spill] sm:$0xff] }
 0x22d   : > { %v2390_v14 = vadd.f32 %v9248_v50, %v2095_v49  ;;  %7500 = vmatmul.mubr.msk.bf16.gmra.mxu1 %vm3092_vm3, %v9615_v61  ;;  %7540 = vmatmul.mubr.msk.bf16.gmra.mxu0 %vm3092_vm3, %v9617_v56  ;;  %v3049_v32 = vadd.f32 %v9306_v47, %v3010_v59  ;;  %v3015_v6 = vmul.f32 %v9288_v8, %v2976_v5  ;;  %v10889_v50 = vld [vmem:[#allocation51_spill] sm:$0xff]  ;;  %v10891_v49 = vld [vmem:[#allocation54_spill] sm:$0xff]  ;;  %v3255_v46 = vld [vmem:[#allocation3 + $0xd9] sm:$0xff]  ;;  %v2644_v5 = vpop.f32.mrf.mxu1 }
 0x22e   : > { %3169 = vst.msk [vmem:[#allocation3 + $0x109] sm:$0xff] %vm3092_vm3, %v3080_v13  ;;  %v3083_v37 = vmax.f32 %v3051_v17, 0.0  ;;  %v2974_v42 = vadd.f32 %v2919_v18, %v2680_v44  ;;  %7503 = vmatprep.mubr.msk.bf16.mxu1 %vm3092_vm3, %v9619_v53  ;;  %7543 = vmatprep.mubr.msk.bf16.mxu0 %vm3092_vm3, %v9621_v52  ;;  %v2098_v30 = vadd.f32 %v10890_v39, %v10889_v50  ;;  %v7474_v3 = vpop.f32.mrf.mxu0  ;;  %v3257_v35 = vld [vmem:[#allocation3 + $0xf1] sm:$0xff] }
 0x22f   : > { %v2096_v27 = vadd.f32 %v10891_v49, %v1802_v36  ;;  %v2681_v58 = vadd.f32 %v9573_v19, %v2387_v62  ;;  %v3081_v40 = vmax.f32 %v3049_v32, 0.0  ;;  %v3054_v54 = vadd.f32 %v9306_v47, %v3015_v6  ;;  %v3258_v26 = vld [vmem:[#allocation3 + $0xf9] sm:$0xff] }
 0x230   : > { %3172 = vst.msk [vmem:[#allocation3 + $0x129] sm:$0xff] %vm3092_vm3, %v3083_v37  ;;  %v3013_v44 = vmul.f32 %v9288_v8, %v2974_v42  ;;  %v2977_v41 = vadd.f32 %v7474_v3, %v2683_v33  ;;  %v3202_v9 = vld [vmem:[#allocation3 + $0xf8] sm:$0xff]  ;;  %v2686_v10 = vadd.f32 %v7443_v29, %v2392_v25  ;;  %v2393_v51 = vadd.f32 %v9258_v11, %v2098_v30  ;;  %v2922_v15 = vpop.f32.mrf.mxu0  ;;  %v3256_v19 = vld [vmem:[#allocation3 + $0xe1] sm:$0xff]  ;;  %v3201_v29 = vld [vmem:[#allocation3 + $0xf0] sm:$0xff] }
 0x231   : > { %v2684_v0 = vadd.f32 %v2641_v55, %v2390_v14  ;;  %v2391_v36 = vadd.f32 %v9270_v34, %v2096_v27  ;;  %v3200_v62 = vld [vmem:[#allocation3 + $0xe0] sm:$0xff]  ;;  %3170 = vst.msk [vmem:[#allocation3 + $0x111] sm:$0xff] %vm3092_vm3, %v3081_v40  ;;  %v3086_v16 = vmax.f32 %v3054_v54, 0.0  ;;  %v2975_v24 = vadd.f32 %v2922_v15, %v2681_v58  ;;  %v3199_v13 = vld [vmem:[#allocation3 + $0xd8] sm:$0xff] }
 0x232   : > { %v3052_v1 = vadd.f32 %v9306_v47, %v3013_v44  ;;  %v3016_v21 = vmul.f32 %v9288_v8, %v2977_v41  ;;  %v7477_v17 = vpop.f32.mrf.mxu0  ;;  %v9652_v11 = vpack.c.bf16 %v3256_v19, %v3255_v46  ;;  %v9654_v55 = vpack.c.bf16 %v3200_v62, %v3199_v13  ;;  %v3261_v15 = vld [vmem:[#allocation3 + $0x121] sm:$0xff] }
 0x233   : > { %v9656_v34 = vpack.c.bf16 %v3258_v26, %v3257_v35  ;;  %v9658_v59 = vpack.c.bf16 %v3202_v9, %v3201_v29  ;;  %3175 = vst.msk [vmem:[#allocation3 + $0x151] sm:$0xff] %vm3092_vm3, %v3086_v16  ;;  %v3014_v25 = vmul.f32 %v9288_v8, %v2975_v24  ;;  %v2980_v14 = vadd.f32 %v7477_v17, %v2686_v10  ;;  %v3205_v16 = vld [vmem:[#allocation3 + $0x120] sm:$0xff] }
 0x234   : > { %v3084_v33 = vmax.f32 %v3052_v1, 0.0  ;;  %v3055_v63 = vadd.f32 %v9306_v47, %v3016_v21  ;;  %v2687_v18 = vadd.f32 %v7444_v22, %v2393_v51  ;;  %v2935_v37 = vpop.f32.mrf.mxu0  ;;  %v2685_v39 = vadd.f32 %v2644_v5, %v2391_v36 }
 0x235   : > { %7504 = vmatmul.mubr.msk.bf16.gmra.mxu1 %vm3092_vm3, %v9652_v11  ;;  %7544 = vmatmul.mubr.msk.bf16.gmra.mxu0 %vm3092_vm3, %v9654_v55  ;;  %v3053_v6 = vadd.f32 %v9306_v47, %v3014_v25  ;;  %v3019_v42 = vmul.f32 %v9288_v8, %v2980_v14  ;;  %v2978_v50 = vadd.f32 %v2935_v37, %v2684_v0  ;;  %v3259_v0 = vld [vmem:[#allocation3 + $0x109] sm:$0xff] }
 0x236   : > { %3173 = vst.msk [vmem:[#allocation3 + $0x139] sm:$0xff] %vm3092_vm3, %v3084_v33  ;;  %v3087_v32 = vmax.f32 %v3055_v63, 0.0  ;;  %7507 = vmatprep.mubr.msk.bf16.mxu1 %vm3092_vm3, %v9656_v34  ;;  %7547 = vmatprep.mubr.msk.bf16.mxu0 %vm3092_vm3, %v9658_v59  ;;  %v7478_v30 = vpop.f32.mrf.mxu0  ;;  %v3203_v36 = vld [vmem:[#allocation3 + $0x108] sm:$0xff] }
 0x237   : > { %v3085_v49 = vmax.f32 %v3053_v6, 0.0  ;;  %v3058_v27 = vadd.f32 %v9306_v47, %v3019_v42  ;;  %v3017_v58 = vmul.f32 %v9288_v8, %v2978_v50  ;;  %v2981_v3 = vadd.f32 %v7478_v30, %v2687_v18  ;;  %v3262_v22 = vld [vmem:[#allocation3 + $0x129] sm:$0xff] }
 0x238   : > { %3176 = vst.msk [vmem:[#allocation3 + $0x159] sm:$0xff] %vm3092_vm3, %v3087_v32  ;;  %v2938_v40 = vpop.f32.mrf.mxu0  ;;  %v3260_v54 = vld [vmem:[#allocation3 + $0x111] sm:$0xff]  ;;  %v3206_v41 = vld [vmem:[#allocation3 + $0x128] sm:$0xff]  ;;  %v9684_v35 = vpack.c.bf16 %v3262_v22, %v3261_v15 }
 0x239   : > { %v3204_v44 = vld [vmem:[#allocation3 + $0x110] sm:$0xff]  ;;  %3174 = vst.msk [vmem:[#allocation3 + $0x141] sm:$0xff] %vm3092_vm3, %v3085_v49  ;;  %v3090_v26 = vmax.f32 %v3058_v27, 0.0  ;;  %v3056_v9 = vadd.f32 %v9306_v47, %v3017_v58  ;;  %v3020_v10 = vmul.f32 %v9288_v8, %v2981_v3  ;;  %v2979_v51 = vadd.f32 %v2938_v40, %v2685_v39  ;;  %v3760_v50 = vld [vmem:[#allocation3 + $0x2] sm:$0xff] }
 0x23a   : > { %v9680_v19 = vpack.c.bf16 %v3260_v54, %v3259_v0  ;;  %v9682_v62 = vpack.c.bf16 %v3204_v44, %v3203_v36  ;;  %v9689_v46 = vpack.c.bf16 %v3206_v41, %v3205_v16  ;;  %v3265_v37 = vld [vmem:[#allocation3 + $0x151] sm:$0xff]  ;;  %v3762_v54 = vld [vmem:[#allocation3 + $0x1a] sm:$0xff]  ;;  %v3763_v44 = vld [vmem:[#allocation3 + $0x22] sm:$0xff] }
 0x23b   : > { %3179 = vst.msk [vmem:[#allocation3 + $0x181] sm:$0xff] %vm3092_vm3, %v3090_v26  ;;  %v3088_v1 = vmax.f32 %v3056_v9, 0.0  ;;  %v3059_v21 = vadd.f32 %v9306_v47, %v3020_v10  ;;  %v3018_v24 = vmul.f32 %v9288_v8, %v2979_v51  ;;  %v3209_v32 = vld [vmem:[#allocation3 + $0x150] sm:$0xff]  ;;  %v3765_v26 = vld [vmem:[#allocation3 + $0x3a] sm:$0xff]  ;;  %v9730_v9 = vpack.c.bf16 %v3763_v44, %v3762_v54 }
 0x23c   : > { %v3761_v39 = vld [vmem:[#allocation3 + $0xa] sm:$0xff]  ;;  %v3764_v41 = vld [vmem:[#allocation3 + $0x32] sm:$0xff]  ;;  %v7907_v10 = vld [vmem:[%s10728_s4 + $0x90] sm:$0xff]  }
 0x23d   : > { %7508 = vmatmul.mubr.msk.bf16.gmra.mxu1 %vm3092_vm3, %v9680_v19  ;;  %7548 = vmatmul.mubr.msk.bf16.gmra.mxu0 %vm3092_vm3, %v9682_v62  ;;  %3177 = vst.msk [vmem:[#allocation3 + $0x169] sm:$0xff] %vm3092_vm3, %v3088_v1  ;;  %v3091_v13 = vmax.f32 %v3059_v21, 0.0  ;;  %v3057_v29 = vadd.f32 %v9306_v47, %v3018_v24  ;;  %v3263_v17 = vld [vmem:[#allocation3 + $0x139] sm:$0xff]  ;;  %v3792_v40 = vpack.c.bf16 %v3761_v39, %v3760_v50  ;;  %v3766_v36 = vld [vmem:[#allocation3 + $0x4a] sm:$0xff] }
 0x23e   : > { %7511 = vmatprep.mubr.msk.bf16.mxu1 %vm3092_vm3, %v9684_v35  ;;  %7551 = vmatprep.mubr.msk.bf16.mxu0 %vm3092_vm3, %v9689_v46  ;;  %v3207_v5 = vld [vmem:[#allocation3 + $0x138] sm:$0xff]  ;;  %v9735_v51 = vpack.c.bf16 %v3765_v26, %v3764_v41  ;;  %v3769_v16 = vld [vmem:[#allocation3 + $0x6a] sm:$0xff] }
 0x23f   : > { %3180 = vst.msk [vmem:[#allocation3 + $0x189] sm:$0xff] %vm3092_vm3, %v3091_v13  ;;  %v3089_v8 = vmax.f32 %v3057_v29, 0.0  ;;  %v3266_v33 = vld [vmem:[#allocation3 + $0x159] sm:$0xff]  ;;  %v7909_v21 = vld [vmem:[%s10728_s4 + $0x80] sm:$0xff]   ;;  %v3771_v13 = vld [vmem:[#allocation3 + $0x82] sm:$0xff] }
 0x240   : > { %v3264_v63 = vld [vmem:[#allocation3 + $0x141] sm:$0xff]  ;;  %v3210_v14 = vld [vmem:[#allocation3 + $0x158] sm:$0xff]  ;;  %v9707_v6 = vpack.c.bf16 %v3266_v33, %v3265_v37  ;;  %v3774_v33 = vld [vmem:[#allocation3 + $0xaa] sm:$0xff] }
 0x241   : > { %v3208_v25 = vld [vmem:[#allocation3 + $0x140] sm:$0xff]  ;;  %3178 = vst.msk [vmem:[#allocation3 + $0x171] sm:$0xff] %vm3092_vm3, %v3089_v8  ;;  %v9703_v18 = vpack.c.bf16 %v3264_v63, %v3263_v17  ;;  %v9709_v42 = vpack.c.bf16 %v3210_v14, %v3209_v32  ;;  %v7908_v0 = vld [vmem:[%s10728_s4 + $0x88] sm:$0xff]   ;;  %v3777_v14 = vld [vmem:[#allocation3 + $0xca] sm:$0xff] }
 0x242   : > { %v9705_v47 = vpack.c.bf16 %v3208_v25, %v3207_v5  ;;  %v3767_v15 = vld [vmem:[#allocation3 + $0x52] sm:$0xff]  ;;  %v3770_v24 = vld [vmem:[#allocation3 + $0x7a] sm:$0xff]  ;;  %v3776_v25 = vld [vmem:[#allocation3 + $0xc2] sm:$0xff] }
 0x243   : > { %v3772_v29 = vld [vmem:[#allocation3 + $0x92] sm:$0xff]  ;;  %v3773_v8 = vld [vmem:[#allocation3 + $0x9a] sm:$0xff]  ;;  %v9779_v17 = vpack.c.bf16 %v3771_v13, %v3770_v24  ;;  %v9800_v32 = vpack.c.bf16 %v3777_v14, %v3776_v25 }
 0x244   : > { %v3267_v30 = vld [vmem:[#allocation3 + $0x169] sm:$0xff]  ;;  %v9786_v5 = vpack.c.bf16 %v3773_v8, %v3772_v29  ;;  %v3775_v63 = vld [vmem:[#allocation3 + $0xb2] sm:$0xff]  ;;  %v3781_v39 = vld [vmem:[#allocation3 + $0xfa] sm:$0xff] }
 0x245   : > { %7512 = vmatmul.mubr.msk.bf16.gmra.mxu1 %vm3092_vm3, %v9703_v18  ;;  %7552 = vmatmul.mubr.msk.bf16.gmra.mxu0 %vm3092_vm3, %v9705_v47  ;;  %v3211_v27 = vld [vmem:[#allocation3 + $0x168] sm:$0xff]  ;;  %v9798_v37 = vpack.c.bf16 %v3775_v63, %v3774_v33  ;;  %v3780_v50 = vld [vmem:[#allocation3 + $0xf2] sm:$0xff]  ;;  %v3789_v41 = vld [vmem:[#allocation3 + $0x15a] sm:$0xff] }
 0x246   : > { %7515 = vmatprep.mubr.msk.bf16.mxu1 %vm3092_vm3, %v9707_v6  ;;  %7555 = vmatprep.mubr.msk.bf16.mxu0 %vm3092_vm3, %v9709_v42  ;;  %v3788_v44 = vld [vmem:[#allocation3 + $0x152] sm:$0xff]  ;;  %v5053_v13 = vld [vmem:[#allocation3 + $0x60] sm:$0xff] }
 0x247   : > { %v5375_v8 = vld [vmem:[#allocation3 + $0x61] sm:$0xff]  ;;  %v7924_v14 = vld [vmem:[%s10728_s4 + $0x108] sm:$0xff]  }
 0x248   : > { %v3268_v49 = vld [vmem:[#allocation3 + $0x171] sm:$0xff] }
 0x249   : > { %v3212_v58 = vld [vmem:[#allocation3 + $0x170] sm:$0xff]  ;;  %v9719_v3 = vpack.c.bf16 %v3268_v49, %v3267_v30  ;;  %v9812_v49 = vpack.c.bf16 %v3781_v39, %v3780_v50  ;;  %v5058_v39 = vld [vmem:[#allocation3 + $0x98] sm:$0xff] }
 0x24a   : > { %v9721_v22 = vpack.c.bf16 %v3212_v58, %v3211_v27  ;;  %v3784_v27 = vld [vmem:[#allocation3 + $0x122] sm:$0xff]  ;;  %v3785_v58 = vld [vmem:[#allocation3 + $0x12a] sm:$0xff] }
 0x24b   : > { %v9824_v54 = vpack.c.bf16 %v3785_v58, %v3784_v27 }
 0x24d   : > { %7516 = vmatmul.mubr.msk.bf16.gmra.mxu1 %vm3092_vm3, %v9719_v3  ;;  %7556 = vmatmul.mubr.msk.bf16.gmra.mxu0 %vm3092_vm3, %v9721_v22 }
 0x24e   : > { %7607 = vmatprep.mubr.msk.bf16.mxu0 %vm3092_vm3, %v9434_v31  ;;  %7567 = vmatprep.mubr.msk.bf16.mxu1 %vm3092_vm3, %v3792_v40  ;;  %v7911_v31 = vld [vmem:[%s10728_s4 + $0xb0] sm:$0xff]  }
 0x255   : > { %7568 = vmatmul.mubr.msk.bf16.vlgmr.msra.gmra.mxu1 %vm3092_vm3, %v9730_v9  ;;  %7608 = vmatmul.mubr.msk.bf16.vlgmr.msra.gmra.mxu0 %vm3092_vm3, %v9454_v43  ;;  %v3768_v43 = vld [vmem:[#allocation3 + $0x62] sm:$0xff] }
 0x256   : > { %7640 = vmatpush3.bf16.msra.mxu1 %v9549_v2  ;;  %7571 = vmatprep.mubr.msk.bf16.mxu1 %vm3092_vm3, %v9735_v51  ;;  %v9753_v2 = vpack.c.bf16 %v3767_v15, %v3766_v36  ;;  %v9758_v1 = vpack.c.bf16 %v3769_v16, %v3768_v43  ;;  %v5374_v16 = vld [vmem:[#allocation3 + $0x51] sm:$0xff] }
 0x257   : > { %7611 = vmatprep.mubr.msk.bf16.mxu0 %vm3092_vm3, %v9496_v20  ;;  %7641 = vmatprep.subr.bf16.mxu1 %v7907_v10  ;;  %v7912_v20 = vld [vmem:[%s10728_s4 + $0xa8] sm:$0xff]  }
 0x258   : > { %7680 = vmatpush3.bf16.msra.mxu0 %v9571_v45  ;;  %v7913_v45 = vld [vmem:[%s10728_s4 + $0xa0] sm:$0xff]  }
 0x259   : > { %7681 = vmatprep.subr.bf16.mxu0 %v7911_v31 }
 0x25a   : > { %7642 = vmatpush3.bf16.msra.mxu1 %v7907_v10  ;;  %v3806_v10 = vpack.c.bf16 %v3789_v41, %v3788_v44 }
 0x25b   : > { %7643 = vmatprep.subr.bf16.mxu1 %v7908_v0 }
 0x25c   : > { %7682 = vmatpush3.bf16.msra.mxu0 %v7911_v31  ;;  %v3791_v31 = vld [vmem:[#allocation3 + $0x172] sm:$0xff] }
 0x25d   : > { %7572 = vmatmul.mubr.msk.bf16.gmra.mxu1 %vm3092_vm3, %v9753_v2  ;;  %7612 = vmatmul.mubr.msk.bf16.gmra.mxu0 %vm3092_vm3, %v9500_v23  ;;  %v9777_v23 = vld [vmem:[%s10728_s4 + $0xd8] sm:$0xff]  }
 0x25e   : > { %7575 = vmatprep.mubr.msk.bf16.mxu1 %vm3092_vm3, %v9758_v1  ;;  %7615 = vmatprep.mubr.msk.bf16.mxu0 %vm3092_vm3, %v9562_v4  ;;  %v9784_v4 = vld [vmem:[%s10728_s4 + $0xf8] sm:$0xff]  }
 0x25f   : > { %7644 = vmatpush3.bf16.msra.mxu1 %v7908_v0  ;;  %7683 = vmatprep.subr.bf16.mxu0 %v7912_v20  ;;  %v4113_v0 = vld [vmem:[#allocation3 + $0x188] sm:$0xff] }
 0x260   : > { %7645 = vmatprep.subr.bf16.mxu1 %v7909_v21  ;;  %7684 = vmatpush3.bf16.msra.mxu0 %v7912_v20  ;;  %v5051_v20 = vld [vmem:[#allocation3 + $0x48] sm:$0xff] }
 0x261   : > { %7685 = vmatprep.subr.bf16.mxu0 %v7913_v45 }
 0x263   : > { %7646 = vmatpush3.bf16.msra.mxu1 %v7909_v21  ;;  %v5376_v21 = vld [vmem:[#allocation3 + $0x69] sm:$0xff] }
 0x264   : > { %7686 = vmatpush3.bf16.msra.mxu0 %v7913_v45  ;;  %7719 = vmatprep.subr.bf16.mxu1 %v9777_v23 }
 0x265   : > { %7576 = vmatmul.mubr.msk.bf16.gmra.mxu1 %vm3092_vm3, %v9779_v17  ;;  %7616 = vmatmul.mubr.msk.bf16.gmra.mxu0 %vm3092_vm3, %v9566_v60  ;;  %v3778_v60 = vld [vmem:[#allocation3 + $0xda] sm:$0xff] }
 0x266   : > { %7579 = vmatprep.mubr.msk.bf16.mxu1 %vm3092_vm3, %v9786_v5  ;;  %7619 = vmatprep.mubr.msk.bf16.mxu0 %vm3092_vm3, %v9617_v56  ;;  %v3779_v56 = vld [vmem:[#allocation3 + $0xe2] sm:$0xff] }
 0x267   : > { %7759 = vmatprep.subr.bf16.mxu0 %v9784_v4  ;;  %v9810_v30 = vpack.c.bf16 %v3779_v56, %v3778_v60  ;;  %v5378_v60 = vld [vmem:[#allocation3 + $0x81] sm:$0xff] }
 0x26d   : > { %7580 = vmatmul.mubr.msk.bf16.gmra.mxu1 %vm3092_vm3, %v9798_v37  ;;  %7620 = vmatmul.mubr.msk.bf16.gmra.mxu0 %vm3092_vm3, %v9621_v52  ;;  %v3782_v52 = vld [vmem:[#allocation3 + $0x10a] sm:$0xff] }
 0x26e   : > { %7583 = vmatprep.mubr.msk.bf16.mxu1 %vm3092_vm3, %v9800_v32  ;;  %7623 = vmatprep.mubr.msk.bf16.mxu0 %vm3092_vm3, %v9654_v55  ;;  %v3783_v55 = vld [vmem:[#allocation3 + $0x112] sm:$0xff] }
 0x26f   : > { %v9822_v40 = vpack.c.bf16 %v3783_v55, %v3782_v52  ;;  %v5055_v52 = vld [vmem:[#allocation3 + $0x78] sm:$0xff] }
 0x270   : > { %v5377_v55 = vld [vmem:[#allocation3 + $0x79] sm:$0xff] }
 0x275   : > { %7584 = vmatmul.mubr.msk.bf16.gmra.mxu1 %vm3092_vm3, %v9810_v30  ;;  %7624 = vmatmul.mubr.msk.bf16.gmra.mxu0 %vm3092_vm3, %v9658_v59  ;;  %v3786_v59 = vld [vmem:[#allocation3 + $0x13a] sm:$0xff] }
 0x276   : > { %7587 = vmatprep.mubr.msk.bf16.mxu1 %vm3092_vm3, %v9812_v49  ;;  %7627 = vmatprep.mubr.msk.bf16.mxu0 %vm3092_vm3, %v9682_v62  ;;  %v3787_v62 = vld [vmem:[#allocation3 + $0x142] sm:$0xff] }
 0x277   : > { %v3805_v26 = vpack.c.bf16 %v3787_v62, %v3786_v59  ;;  %v5057_v59 = vld [vmem:[#allocation3 + $0x90] sm:$0xff] }
 0x278   : > { %v5379_v62 = vld [vmem:[#allocation3 + $0x91] sm:$0xff]  ;;  %v5085_v41 = vpack.c.bf16 %v5058_v39, %v5057_v59 }
 0x279   : > { %v5387_v39 = vld [vmem:[#allocation3 + $0xf1] sm:$0xff] }
 0x27d   : > { %7588 = vmatmul.mubr.msk.bf16.gmra.mxu1 %vm3092_vm3, %v9822_v40  ;;  %7628 = vmatmul.mubr.msk.bf16.gmra.mxu0 %vm3092_vm3, %v9689_v46  ;;  %v3790_v46 = vld [vmem:[#allocation3 + $0x16a] sm:$0xff] }
 0x27e   : > { %7591 = vmatprep.mubr.msk.bf16.mxu1 %vm3092_vm3, %v9824_v54  ;;  %7631 = vmatprep.mubr.msk.bf16.mxu0 %vm3092_vm3, %v9705_v47  ;;  %v4112_v47 = vld [vmem:[#allocation3 + $0x180] sm:$0xff]  ;;  %v3807_v36 = vpack.c.bf16 %v3791_v31, %v3790_v46 }
 0x27f   : > { %v9840_v15 = vpack.c.bf16 %v4113_v0, %v4112_v47 }
 0x285   : > { %7592 = vmatmul.mubr.msk.bf16.gmra.mxu1 %vm3092_vm3, %v3805_v26  ;;  %7632 = vmatmul.mubr.msk.bf16.gmra.mxu0 %vm3092_vm3, %v9709_v42  ;;  %v7915_v42 = vld [vmem:[%s10728_s4 + $0xd0] sm:$0xff]  }
 0x286   : > { %7595 = vmatprep.mubr.msk.bf16.mxu1 %vm3092_vm3, %v3806_v10  ;;  %7635 = vmatprep.mubr.msk.bf16.mxu0 %vm3092_vm3, %v9721_v22  ;;  %v7919_v22 = vld [vmem:[%s10728_s4 + $0xf0] sm:$0xff]  }
 0x28d   : > { %7596 = vmatmul.mubr.msk.bf16.gmra.mxu1 %vm3092_vm3, %v3807_v36  ;;  %7636 = vmatmul.mubr.msk.bf16.gmra.mxu0 %vm3092_vm3, %v9840_v15 }
 0x28e   : > { %7647 = vmatprep.mubr.msk.bf16.mxu1 %vm3092_vm3, %v9432_v57  ;;  %7687 = vmatprep.mubr.msk.bf16.mxu0 %vm3092_vm3, %v9730_v9  ;;  %v7916_v57 = vld [vmem:[%s10728_s4 + $0xc8] sm:$0xff]   ;;  %v7921_v9 = vld [vmem:[%s10728_s4 + $0xe0] sm:$0xff]  }
 0x295   : > { %7648 = vmatmul.mubr.msk.bf16.vlgmr.msra.gmra.mxu1 %vm3092_vm3, %v9436_v7  ;;  %7688 = vmatmul.mubr.msk.bf16.vlgmr.msra.gmra.mxu0 %vm3092_vm3, %v9735_v51  ;;  %v7920_v7 = vld [vmem:[%s10728_s4 + $0xe8] sm:$0xff]  }
 0x296   : > { %7720 = vmatpush3.bf16.msra.mxu1 %v9777_v23  ;;  %7651 = vmatprep.mubr.msk.bf16.mxu1 %vm3092_vm3, %v9494_v48  ;;  %v7917_v48 = vld [vmem:[%s10728_s4 + $0xc0] sm:$0xff]   ;;  %v7923_v23 = vld [vmem:[%s10728_s4 + $0x110] sm:$0xff]  }
 0x297   : > { %7691 = vmatprep.mubr.msk.bf16.mxu0 %vm3092_vm3, %v9753_v2  ;;  %7721 = vmatprep.subr.bf16.mxu1 %v7915_v42  ;;  %v5371_v51 = vld [vmem:[#allocation3 + $0x31] sm:$0xff]  ;;  %v5054_v2 = vld [vmem:[#allocation3 + $0x68] sm:$0xff] }
 0x298   : > { %7760 = vmatpush3.bf16.msra.mxu0 %v9784_v4  ;;  %v5083_v29 = vpack.c.bf16 %v5054_v2, %v5053_v13  ;;  %v5064_v13 = vld [vmem:[#allocation3 + $0xe0] sm:$0xff] }
 0x299   : > { %7761 = vmatprep.subr.bf16.mxu0 %v7919_v22 }
 0x29a   : > { %7722 = vmatpush3.bf16.msra.mxu1 %v7915_v42 }
 0x29b   : > { %7723 = vmatprep.subr.bf16.mxu1 %v7916_v57 }
 0x29c   : > { %7762 = vmatpush3.bf16.msra.mxu0 %v7919_v22  ;;  %v5060_v22 = vld [vmem:[#allocation3 + $0xb0] sm:$0xff] }
 0x29d   : > { %7652 = vmatmul.mubr.msk.bf16.gmra.mxu1 %vm3092_vm3, %v9498_v12  ;;  %7692 = vmatmul.mubr.msk.bf16.gmra.mxu0 %vm3092_vm3, %v9758_v1  ;;  %v7922_v12 = vld [vmem:[%s10728_s4 + $0x118] sm:$0xff]  }
 0x29e   : > { %7655 = vmatprep.mubr.msk.bf16.mxu1 %vm3092_vm3, %v9560_v28  ;;  %7695 = vmatprep.mubr.msk.bf16.mxu0 %vm3092_vm3, %v9779_v17  ;;  %v4435_v28 = vld [vmem:[#allocation3 + $0x189] sm:$0xff] }
 0x29f   : > { %7724 = vmatpush3.bf16.msra.mxu1 %v7916_v57  ;;  %7763 = vmatprep.subr.bf16.mxu0 %v7920_v7  ;;  %v5373_v1 = vld [vmem:[#allocation3 + $0x49] sm:$0xff]  ;;  %v5382_v57 = vld [vmem:[#allocation3 + $0xb1] sm:$0xff] }
 0x2a0   : > { %7725 = vmatprep.subr.bf16.mxu1 %v7917_v48  ;;  %7764 = vmatpush3.bf16.msra.mxu0 %v7920_v7  ;;  %v5404_v24 = vpack.c.bf16 %v5374_v16, %v5373_v1 }
 0x2a1   : > { %7765 = vmatprep.subr.bf16.mxu0 %v7921_v9 }
 0x2a3   : > { %7726 = vmatpush3.bf16.msra.mxu1 %v7917_v48 }
 0x2a4   : > { %7766 = vmatpush3.bf16.msra.mxu0 %v7921_v9  ;;  %7799 = vmatprep.subr.bf16.mxu1 %v7922_v12  ;;  %v5062_v9 = vld [vmem:[#allocation3 + $0xc8] sm:$0xff] }
 0x2a5   : > { %7656 = vmatmul.mubr.msk.bf16.gmra.mxu1 %vm3092_vm3, %v9564_v38  ;;  %7696 = vmatmul.mubr.msk.bf16.gmra.mxu0 %vm3092_vm3, %v9786_v5  ;;  %v4756_v38 = vld [vmem:[#allocation3 + $0x182] sm:$0xff]  ;;  %v5405_v5 = vpack.c.bf16 %v5376_v21, %v5375_v8 }
 0x2a6   : > { %7659 = vmatprep.mubr.msk.bf16.mxu1 %vm3092_vm3, %v9615_v61  ;;  %7699 = vmatprep.mubr.msk.bf16.mxu0 %vm3092_vm3, %v9798_v37  ;;  %v4757_v61 = vld [vmem:[#allocation3 + $0x18a] sm:$0xff] }
 0x2ad   : > { %7660 = vmatmul.mubr.msk.bf16.gmra.mxu1 %vm3092_vm3, %v9619_v53  ;;  %7700 = vmatmul.mubr.msk.bf16.gmra.mxu0 %vm3092_vm3, %v9800_v32  ;;  %v5050_v53 = vld [vmem:[#allocation3 + $0x38] sm:$0xff]  ;;  %v5056_v32 = vld [vmem:[#allocation3 + $0x80] sm:$0xff] }
 0x2ae   : > { %7663 = vmatprep.mubr.msk.bf16.mxu1 %vm3092_vm3, %v9652_v11  ;;  %7703 = vmatprep.mubr.msk.bf16.mxu0 %vm3092_vm3, %v9810_v30  ;;  %v5372_v11 = vld [vmem:[#allocation3 + $0x39] sm:$0xff] }
 0x2af   : > { %v5403_v43 = vpack.c.bf16 %v5372_v11, %v5371_v51  ;;  %v5380_v30 = vld [vmem:[#allocation3 + $0x99] sm:$0xff] }
 0x2b0   : > { %v5061_v51 = vld [vmem:[#allocation3 + $0xc0] sm:$0xff] }
 0x2b5   : > { %7664 = vmatmul.mubr.msk.bf16.gmra.mxu1 %vm3092_vm3, %v9656_v34  ;;  %7704 = vmatmul.mubr.msk.bf16.gmra.mxu0 %vm3092_vm3, %v9812_v49  ;;  %v4434_v34 = vld [vmem:[#allocation3 + $0x181] sm:$0xff] }
 0x2b6   : > { %7667 = vmatprep.mubr.msk.bf16.mxu1 %vm3092_vm3, %v9680_v19  ;;  %7707 = vmatprep.mubr.msk.bf16.mxu0 %vm3092_vm3, %v9822_v40  ;;  %v9925_v19 = vpack.c.bf16 %v4435_v28, %v4434_v34  ;;  %v5084_v40 = vpack.c.bf16 %v5056_v32, %v5055_v52 }
 0x2bd   : > { %7668 = vmatmul.mubr.msk.bf16.gmra.mxu1 %vm3092_vm3, %v9684_v35  ;;  %7708 = vmatmul.mubr.msk.bf16.gmra.mxu0 %vm3092_vm3, %v9824_v54  ;;  %v9927_v35 = vpack.c.bf16 %v4757_v61, %v4756_v38  ;;  %v5406_v54 = vpack.c.bf16 %v5378_v60, %v5377_v55  ;;  %v5059_v38 = vld [vmem:[#allocation3 + $0xa8] sm:$0xff] }
 0x2be   : > { %7671 = vmatprep.mubr.msk.bf16.mxu1 %vm3092_vm3, %v9703_v18  ;;  %7711 = vmatprep.mubr.msk.bf16.mxu0 %vm3092_vm3, %v3805_v26  ;;  %v5049_v18 = vld [vmem:[#allocation3 + $0x30] sm:$0xff]  ;;  %v5407_v26 = vpack.c.bf16 %v5380_v30, %v5379_v62  ;;  %v5086_v34 = vpack.c.bf16 %v5060_v22, %v5059_v38  ;;  %v5067_v22 = vld [vmem:[#allocation3 + $0x108] sm:$0xff]  ;;  %v5069_v38 = vld [vmem:[#allocation3 + $0x120] sm:$0xff] }
 0x2bf   : > { %v5381_v61 = vld [vmem:[#allocation3 + $0xa9] sm:$0xff] }
 0x2c5   : > { %7672 = vmatmul.mubr.msk.bf16.gmra.mxu1 %vm3092_vm3, %v9707_v6  ;;  %7712 = vmatmul.mubr.msk.bf16.gmra.mxu0 %vm3092_vm3, %v3806_v10  ;;  %v5081_v6 = vpack.c.bf16 %v5050_v53, %v5049_v18  ;;  %v7925_v10 = vld [vmem:[%s10728_s4 + $0x100] sm:$0xff]   ;;  %v5408_v18 = vpack.c.bf16 %v5382_v57, %v5381_v61  ;;  %v5391_v61 = vld [vmem:[#allocation3 + $0x121] sm:$0xff] }
 0x2c6   : > { %7675 = vmatprep.mubr.msk.bf16.mxu1 %vm3092_vm3, %v9719_v3  ;;  %7715 = vmatprep.mubr.msk.bf16.mxu0 %vm3092_vm3, %v3807_v36  ;;  %v5052_v3 = vld [vmem:[#allocation3 + $0x50] sm:$0xff] }
 0x2c7   : > { %v5082_v45 = vpack.c.bf16 %v5052_v3, %v5051_v20  ;;  %v5087_v3 = vpack.c.bf16 %v5062_v9, %v5061_v51  ;;  %v5389_v57 = vld [vmem:[#allocation3 + $0x109] sm:$0xff] }
 0x2cd   : > { %7676 = vmatmul.mubr.msk.bf16.gmra.mxu1 %vm3092_vm3, %v9925_v19  ;;  %7716 = vmatmul.mubr.msk.bf16.gmra.mxu0 %vm3092_vm3, %v9927_v35 }
 0x2ce   : > { %7727 = vmatprep.mubr.msk.bf16.mxu1 %vm3092_vm3, %v5081_v6  ;;  %7767 = vmatprep.mubr.msk.bf16.mxu0 %vm3092_vm3, %v5403_v43  ;;  %v5383_v6 = vld [vmem:[#allocation3 + $0xc1] sm:$0xff] }
 0x2d4   : > { %v7489_v17 = vpop.f32.mrf.mxu1  ;;  %v7529_v4 = vpop.f32.mrf.mxu0 }
 0x2d5   : > { %7728 = vmatmul.mubr.msk.bf16.vlgmr.msra.gmra.mxu1 %vm3092_vm3, %v5082_v45  ;;  %7768 = vmatmul.mubr.msk.bf16.vlgmr.msra.gmra.mxu0 %vm3092_vm3, %v5404_v24  ;;  %v9940_v33 = vadd.f32 %v7529_v4, %v7489_v17  ;;  %v5066_v17 = vld [vmem:[#allocation3 + $0xf8] sm:$0xff] }
 0x2d6   : > { %7800 = vmatpush3.bf16.msra.mxu1 %v7922_v12  ;;  %7731 = vmatprep.mubr.msk.bf16.mxu1 %vm3092_vm3, %v5083_v29  ;;  %v3400_v63 = vpop.f32.mrf.mxu1  ;;  %v3633_v25 = vpop.f32.mrf.mxu0  ;;  %v5384_v12 = vld [vmem:[#allocation3 + $0xc9] sm:$0xff]  ;;  %v5388_v4 = vld [vmem:[#allocation3 + $0xf9] sm:$0xff] }
 0x2d7   : > { %7771 = vmatprep.mubr.msk.bf16.mxu0 %vm3092_vm3, %v5405_v5  ;;  %7801 = vmatprep.subr.bf16.mxu1 %v7923_v23  ;;  %v9947_v37 = vadd.f32 %v3633_v25, %v3400_v63  ;;  %v5409_v16 = vpack.c.bf16 %v5384_v12, %v5383_v6  ;;  %v5063_v63 = vld [vmem:[#allocation3 + $0xd8] sm:$0xff]  ;;  %v5411_v55 = vpack.c.bf16 %v5388_v4, %v5387_v39 }
 0x2d8   : > { %v7490_v56 = vpop.f32.mrf.mxu1  ;;  %v7530_v50 = vpop.f32.mrf.mxu0  ;;  %v5385_v25 = vld [vmem:[#allocation3 + $0xd9] sm:$0xff]  ;;  %v5088_v60 = vpack.c.bf16 %v5064_v13, %v5063_v63 }
 0x2d9   : > { %v9949_v49 = vadd.f32 %v7530_v50, %v7490_v56  ;;  %v5065_v50 = vld [vmem:[#allocation3 + $0xf0] sm:$0xff]  ;;  %v5393_v4 = vld [vmem:[#allocation3 + $0x139] sm:$0xff] }
 0x2da   : > { %7802 = vmatpush3.bf16.msra.mxu1 %v7923_v23  ;;  %v3403_v27 = vpop.f32.mrf.mxu1  ;;  %v3636_v58 = vpop.f32.mrf.mxu0  ;;  %v5386_v23 = vld [vmem:[#allocation3 + $0xe1] sm:$0xff]  ;;  %v5089_v52 = vpack.c.bf16 %v5066_v17, %v5065_v50  ;;  %v5071_v17 = vld [vmem:[#allocation3 + $0x138] sm:$0xff] }
 0x2db   : > { %7803 = vmatprep.subr.bf16.mxu1 %v7924_v14  ;;  %v9951_v44 = vadd.f32 %v3636_v58, %v3403_v27  ;;  %v5410_v56 = vpack.c.bf16 %v5386_v23, %v5385_v25  ;;  %v5074_v23 = vld [vmem:[#allocation3 + $0x158] sm:$0xff] }
 0x2dc   : > { %v7493_v46 = vpop.f32.mrf.mxu1 }
 0x2dd   : > { %v7533_v31 = vpop.f32.mrf.mxu0  ;;  %7732 = vmatmul.mubr.msk.bf16.gmra.mxu1 %vm3092_vm3, %v5084_v40  ;;  %7772 = vmatmul.mubr.msk.bf16.gmra.mxu0 %vm3092_vm3, %v5406_v54 }
 0x2de   : > { %v9958_v0 = vadd.f32 %v7533_v31, %v7493_v46  ;;  %7735 = vmatprep.mubr.msk.bf16.mxu1 %vm3092_vm3, %v5085_v41  ;;  %7775 = vmatprep.mubr.msk.bf16.mxu0 %vm3092_vm3, %v5407_v26  ;;  %v3416_v47 = vpop.f32.mrf.mxu1  ;;  %v5068_v41 = vld [vmem:[#allocation3 + $0x110] sm:$0xff]  ;;  %v5070_v31 = vld [vmem:[#allocation3 + $0x128] sm:$0xff] }
 0x2df   : > { %v3649_v36 = vpop.f32.mrf.mxu0  ;;  %7804 = vmatpush3.bf16.msra.mxu1 %v7924_v14  ;;  %v5390_v26 = vld [vmem:[#allocation3 + $0x111] sm:$0xff]  ;;  %v5090_v9 = vpack.c.bf16 %v5068_v41, %v5067_v22  ;;  %v5075_v22 = vld [vmem:[#allocation3 + $0x168] sm:$0xff] }
 0x2e0   : > { %v9962_v42 = vadd.f32 %v3649_v36, %v3416_v47  ;;  %7805 = vmatprep.subr.bf16.mxu1 %v7925_v10  ;;  %v7494_v7 = vpop.f32.mrf.mxu1  ;;  %v5392_v47 = vld [vmem:[#allocation3 + $0x129] sm:$0xff]  ;;  %v5412_v12 = vpack.c.bf16 %v5390_v26, %v5389_v57 }
 0x2e1   : > { %v7534_v48 = vpop.f32.mrf.mxu0  ;;  %v5076_v26 = vld [vmem:[#allocation3 + $0x170] sm:$0xff] }
 0x2e2   : > { %v9964_v28 = vadd.f32 %v7534_v48, %v7494_v7  ;;  %v3419_v53 = vpop.f32.mrf.mxu1  ;;  %v5397_v57 = vld [vmem:[#allocation3 + $0x169] sm:$0xff] }
 0x2e3   : > { %v3652_v11 = vpop.f32.mrf.mxu0  ;;  %7806 = vmatpush3.bf16.msra.mxu1 %v7925_v10 }
 0x2e4   : > { %v9966_v43 = vadd.f32 %v3652_v11, %v3419_v53  ;;  %v5091_v11 = vpack.c.bf16 %v5070_v31, %v5069_v38 }
 0x2e5   : > { %v7497_v2 = vpop.f32.mrf.mxu1  ;;  %v7537_v20 = vpop.f32.mrf.mxu0  ;;  %7736 = vmatmul.mubr.msk.bf16.gmra.mxu1 %vm3092_vm3, %v5086_v34  ;;  %7776 = vmatmul.mubr.msk.bf16.gmra.mxu0 %vm3092_vm3, %v5408_v18  ;;  %v5413_v34 = vpack.c.bf16 %v5392_v47, %v5391_v61 }
 0x2e6   : > { %v9970_v1 = vadd.f32 %v7537_v20, %v7497_v2  ;;  %7739 = vmatprep.mubr.msk.bf16.mxu1 %vm3092_vm3, %v5087_v3  ;;  %7779 = vmatprep.mubr.msk.bf16.mxu0 %vm3092_vm3, %v5409_v16  ;;  %v5072_v20 = vld [vmem:[#allocation3 + $0x140] sm:$0xff] }
 0x2e7   : > { %v3432_v21 = vpop.f32.mrf.mxu1  ;;  %v3665_v45 = vpop.f32.mrf.mxu0 }
 0x2e8   : > { %v9974_v24 = vadd.f32 %v3665_v45, %v3432_v21  ;;  %v5394_v21 = vld [vmem:[#allocation3 + $0x141] sm:$0xff] }
 0x2e9   : > { %v7498_v29 = vpop.f32.mrf.mxu1  ;;  %v7538_v8 = vpop.f32.mrf.mxu0 }
 0x2ea   : > { %v9976_v5 = vadd.f32 %v7538_v8, %v7498_v29  ;;  %v5396_v29 = vld [vmem:[#allocation3 + $0x159] sm:$0xff] }
 0x2eb   : > { %v3435_v14 = vpop.f32.mrf.mxu1  ;;  %v3668_v32 = vpop.f32.mrf.mxu0 }
 0x2ec   : > { %v9978_v30 = vadd.f32 %v3668_v32, %v3435_v14  ;;  %v5092_v14 = vpack.c.bf16 %v5072_v20, %v5071_v17  ;;  %v5414_v32 = vpack.c.bf16 %v5394_v21, %v5393_v4  ;;  %v5693_v17 = vld [vmem:[#allocation3 + $0x32] sm:$0xff]  ;;  %v5694_v4 = vld [vmem:[#allocation3 + $0x3a] sm:$0xff] }
 0x2ed   : > { %v7501_v27 = vpop.f32.mrf.mxu1  ;;  %v7541_v58 = vpop.f32.mrf.mxu0  ;;  %7740 = vmatmul.mubr.msk.bf16.gmra.mxu1 %vm3092_vm3, %v5088_v60  ;;  %7780 = vmatmul.mubr.msk.bf16.gmra.mxu0 %vm3092_vm3, %v5410_v56  ;;  %v5073_v60 = vld [vmem:[#allocation3 + $0x150] sm:$0xff] }
 0x2ee   : > { %v9982_v40 = vadd.f32 %v7541_v58, %v7501_v27  ;;  %7743 = vmatprep.mubr.msk.bf16.mxu1 %vm3092_vm3, %v5089_v52  ;;  %7783 = vmatprep.mubr.msk.bf16.mxu0 %vm3092_vm3, %v5411_v55  ;;  %v5395_v56 = vld [vmem:[#allocation3 + $0x151] sm:$0xff]  ;;  %v5093_v39 = vpack.c.bf16 %v5074_v23, %v5073_v60 }
 0x2ef   : > { %v3448_v54 = vpop.f32.mrf.mxu1  ;;  %v3681_v59 = vpop.f32.mrf.mxu0  ;;  %v5415_v52 = vpack.c.bf16 %v5396_v29, %v5395_v56 }
 0x2f0   : > { %v9986_v62 = vadd.f32 %v3681_v59, %v3448_v54 }
 0x2f1   : > { %v7502_v10 = vpop.f32.mrf.mxu1  ;;  %v7542_v46 = vpop.f32.mrf.mxu0 }
 0x2f2   : > { %v9988_v36 = vadd.f32 %v7542_v46, %v7502_v10  ;;  %v5398_v10 = vld [vmem:[#allocation3 + $0x171] sm:$0xff] }
 0x2f3   : > { %v3451_v7 = vpop.f32.mrf.mxu1  ;;  %v3684_v48 = vpop.f32.mrf.mxu0 }
 0x2f4   : > { %v9990_v53 = vadd.f32 %v3684_v48, %v3451_v7 }
 0x2f5   : > { %v7505_v18 = vpop.f32.mrf.mxu1  ;;  %v7545_v51 = vpop.f32.mrf.mxu0  ;;  %7744 = vmatmul.mubr.msk.bf16.gmra.mxu1 %vm3092_vm3, %v5090_v9  ;;  %7784 = vmatmul.mubr.msk.bf16.gmra.mxu0 %vm3092_vm3, %v5412_v12  ;;  %v5094_v9 = vpack.c.bf16 %v5076_v26, %v5075_v22  ;;  %v5416_v12 = vpack.c.bf16 %v5398_v10, %v5397_v57 }
 0x2f6   : > { %v9994_v6 = vadd.f32 %v7545_v51, %v7505_v18  ;;  %7747 = vmatprep.mubr.msk.bf16.mxu1 %vm3092_vm3, %v5091_v11  ;;  %7787 = vmatprep.mubr.msk.bf16.mxu0 %vm3092_vm3, %v5413_v34  ;;  %v5079_v34 = vld [vmem:[#allocation3 + $0x198] sm:$0xff]  ;;  %v5080_v51 = vld [vmem:[#allocation3 + $0x1a0] sm:$0xff] }
 0x2f7   : > { %v3464_v3 = vpop.f32.mrf.mxu1  ;;  %v3697_v16 = vpop.f32.mrf.mxu0  ;;  %v5096_v29 = vpack.c.bf16 %v5080_v51, %v5079_v34 }
 0x2f8   : > { %v9998_v2 = vadd.f32 %v3697_v16, %v3464_v3  ;;  %v5401_v3 = vld [vmem:[#allocation3 + $0x199] sm:$0xff]  ;;  %v5402_v16 = vld [vmem:[#allocation3 + $0x1a1] sm:$0xff] }
 0x2f9   : > { %v7506_v45 = vpop.f32.mrf.mxu1  ;;  %v7546_v13 = vpop.f32.mrf.mxu0 }
 0x2fa   : > { %v10000_v8 = vadd.f32 %v7546_v13, %v7506_v45 }
 0x2fb   : > { %v3467_v63 = vpop.f32.mrf.mxu1  ;;  %v3700_v25 = vpop.f32.mrf.mxu0 }
 0x2fc   : > { %v10002_v50 = vadd.f32 %v3700_v25, %v3467_v63  ;;  %v5418_v63 = vpack.c.bf16 %v5402_v16, %v5401_v3 }
 0x2fd   : > { %v7509_v55 = vpop.f32.mrf.mxu1  ;;  %v7549_v27 = vpop.f32.mrf.mxu0  ;;  %7748 = vmatmul.mubr.msk.bf16.gmra.mxu1 %vm3092_vm3, %v5092_v14  ;;  %7788 = vmatmul.mubr.msk.bf16.gmra.mxu0 %vm3092_vm3, %v5414_v32 }
 0x2fe   : > { %v10006_v58 = vadd.f32 %v7549_v27, %v7509_v55  ;;  %7751 = vmatprep.mubr.msk.bf16.mxu1 %vm3092_vm3, %v5093_v39  ;;  %7791 = vmatprep.mubr.msk.bf16.mxu0 %vm3092_vm3, %v5415_v52 }
 0x2ff   : > { %v3480_v54 = vpop.f32.mrf.mxu1  ;;  %v3713_v59 = vpop.f32.mrf.mxu0 }
 0x300   : > { %v10010_v41 = vadd.f32 %v3713_v59, %v3480_v54  ;;  %v5695_v54 = vld [vmem:[#allocation3 + $0x4a] sm:$0xff]  ;;  %v5696_v59 = vld [vmem:[#allocation3 + $0x52] sm:$0xff] }
 0x301   : > { %v7510_v46 = vpop.f32.mrf.mxu1  ;;  %v7550_v31 = vpop.f32.mrf.mxu0 }
 0x302   : > { %v10012_v47 = vadd.f32 %v7550_v31, %v7510_v46  ;;  %v5697_v46 = vld [vmem:[#allocation3 + $0x62] sm:$0xff]  ;;  %v5698_v31 = vld [vmem:[#allocation3 + $0x6a] sm:$0xff] }
 0x303   : > { %v3483_v7 = vpop.f32.mrf.mxu1  ;;  %v3716_v48 = vpop.f32.mrf.mxu0 }
 0x304   : > { %v10014_v38 = vadd.f32 %v3716_v48, %v3483_v7  ;;  %v5726_v48 = vpack.c.bf16 %v5696_v59, %v5695_v54 }
 0x305   : > { %v7513_v61 = vpop.f32.mrf.mxu1  ;;  %v7553_v11 = vpop.f32.mrf.mxu0  ;;  %7752 = vmatmul.mubr.msk.bf16.gmra.mxu1 %vm3092_vm3, %v5094_v9  ;;  %7792 = vmatmul.mubr.msk.bf16.gmra.mxu0 %vm3092_vm3, %v5416_v12  ;;  %v5727_v12 = vpack.c.bf16 %v5698_v31, %v5697_v46  ;;  %v5703_v31 = vld [vmem:[#allocation3 + $0xaa] sm:$0xff] }
 0x306   : > { %v10018_v18 = vadd.f32 %v7553_v11, %v7513_v61  ;;  %7755 = vmatprep.mubr.msk.bf16.mxu1 %vm3092_vm3, %v9840_v15  ;;  %7795 = vmatprep.mubr.msk.bf16.mxu0 %vm3092_vm3, %v9925_v19  ;;  %v5725_v19 = vpack.c.bf16 %v5694_v4, %v5693_v17  ;;  %v5701_v17 = vld [vmem:[#allocation3 + $0x92] sm:$0xff]  ;;  %v5702_v4 = vld [vmem:[#allocation3 + $0x9a] sm:$0xff] }
 0x307   : > { %v3496_v20 = vpop.f32.mrf.mxu1  ;;  %v3729_v21 = vpop.f32.mrf.mxu0 }
 0x308   : > { %v10024_v45 = vadd.f32 %v3729_v21, %v3496_v20  ;;  %v5699_v21 = vld [vmem:[#allocation3 + $0x7a] sm:$0xff] }
 0x309   : > { %v7514_v13 = vpop.f32.mrf.mxu1  ;;  %v7554_v23 = vpop.f32.mrf.mxu0 }
 0x30a   : > { %v10026_v25 = vadd.f32 %v7554_v23, %v7514_v13  ;;  %v5700_v13 = vld [vmem:[#allocation3 + $0x82] sm:$0xff] }
 0x30b   : > { %v3499_v14 = vpop.f32.mrf.mxu1  ;;  %v3732_v15 = vpop.f32.mrf.mxu0 }
 0x30c   : > { %v10028_v32 = vadd.f32 %v3732_v15, %v3499_v14 }
 0x30d   : > { %v7517_v60 = vpop.f32.mrf.mxu1  ;;  %v7557_v56 = vpop.f32.mrf.mxu0  ;;  %7756 = vmatmul.mubr.msk.bf16.gmra.mxu1 %vm3092_vm3, %v5096_v29  ;;  %7796 = vmatmul.mubr.msk.bf16.gmra.mxu0 %vm3092_vm3, %v5418_v63 }
 0x30e   : > { %v10032_v39 = vadd.f32 %v7557_v56, %v7517_v60  ;;  %7807 = vmatprep.mubr.msk.bf16.mxu1 %vm3092_vm3, %v5725_v19  ;;  %v5728_v19 = vpack.c.bf16 %v5700_v13, %v5699_v21 }
 0x30f   : > { %v3512_v52 = vpop.f32.mrf.mxu1  ;;  %v3745_v55 = vpop.f32.mrf.mxu0 }
 0x310   : > { %v10035_v27 = vadd.f32 %v3745_v55, %v3512_v52  ;;  %v5729_v52 = vpack.c.bf16 %v5702_v4, %v5701_v17 }
 0x311   : > { %v7518_v26 = vpop.f32.mrf.mxu1  ;;  %v7558_v10 = vpop.f32.mrf.mxu0 }
 0x312   : > { %v10037_v22 = vadd.f32 %v7558_v10, %v7518_v26 }
 0x313   : > { %v3515_v57 = vpop.f32.mrf.mxu1  ;;  %v3748_v7 = vpop.f32.mrf.mxu0 }
 0x314   : > { %v10039_v9 = vadd.f32 %v3748_v7, %v3515_v57  ;;  %v5704_v57 = vld [vmem:[#allocation3 + $0xb2] sm:$0xff] }
 0x315   : > { %v7569_v61 = vpop.f32.mrf.mxu1  ;;  %v7609_v11 = vpop.f32.mrf.mxu0  ;;  %7808 = vmatmul.mubr.msk.bf16.vlgmr.msra.gmra.mxu1 %vm3092_vm3, %v5726_v48  ;;  %v5705_v48 = vld [vmem:[#allocation3 + $0xc2] sm:$0xff] }
 0x316   : > { %v4052_v34 = vadd.f32 %v7569_v61, %v9940_v33  ;;  %7811 = vmatprep.mubr.msk.bf16.mxu1 %vm3092_vm3, %v5727_v12  ;;  %v5706_v12 = vld [vmem:[#allocation3 + $0xca] sm:$0xff] }
 0x317   : > { %v3923_v51 = vpop.f32.mrf.mxu1  ;;  %v4245_v3 = vpop.f32.mrf.mxu0  ;;  %v5731_v21 = vpack.c.bf16 %v5706_v12, %v5705_v48 }
 0x318   : > { %v10044_v16 = vadd.f32 %v7609_v11, %v4052_v34  ;;  %v4050_v20 = vadd.f32 %v3923_v51, %v9947_v37  ;;  %v5730_v51 = vpack.c.bf16 %v5704_v57, %v5703_v31 }
 0x319   : > { %v7570_v23 = vpop.f32.mrf.mxu1  ;;  %v7610_v29 = vpop.f32.mrf.mxu0 }
 0x31a   : > { %v10047_v63 = vadd.f32 %v4245_v3, %v4050_v20  ;;  %v4053_v14 = vadd.f32 %v7570_v23, %v9949_v49 }
 0x31b   : > { %v3926_v15 = vpop.f32.mrf.mxu1  ;;  %v4248_v33 = vpop.f32.mrf.mxu0 }
 0x31c   : > { %v10050_v60 = vadd.f32 %v7610_v29, %v4053_v14  ;;  %v4051_v56 = vadd.f32 %v3926_v15, %v9951_v44  ;;  %v5707_v15 = vld [vmem:[#allocation3 + $0xda] sm:$0xff] }
 0x31d   : > { %v7573_v55 = vpop.f32.mrf.mxu1  ;;  %v7613_v37 = vpop.f32.mrf.mxu0  ;;  %7812 = vmatmul.mubr.msk.bf16.gmra.mxu1 %vm3092_vm3, %v5728_v19 }
 0x31e   : > { %v10054_v54 = vadd.f32 %v4248_v33, %v4051_v56  ;;  %v4056_v59 = vadd.f32 %v7573_v55, %v9958_v0  ;;  %7815 = vmatprep.mubr.msk.bf16.mxu1 %vm3092_vm3, %v5729_v52  ;;  %v5708_v33 = vld [vmem:[#allocation3 + $0xe2] sm:$0xff]  ;;  %v5709_v56 = vld [vmem:[#allocation3 + $0xf2] sm:$0xff]  ;;  %v5710_v52 = vld [vmem:[#allocation3 + $0xfa] sm:$0xff] }
 0x31f   : > { %v3939_v26 = vpop.f32.mrf.mxu1  ;;  %v4261_v49 = vpop.f32.mrf.mxu0  ;;  %v5733_v31 = vpack.c.bf16 %v5710_v52, %v5709_v56 }
 0x320   : > { %v10058_v10 = vadd.f32 %v7613_v37, %v4056_v59  ;;  %v4054_v46 = vadd.f32 %v3939_v26, %v9962_v42  ;;  %v5732_v26 = vpack.c.bf16 %v5708_v33, %v5707_v15 }
 0x321   : > { %v7574_v44 = vpop.f32.mrf.mxu1  ;;  %v7614_v7 = vpop.f32.mrf.mxu0 }
 0x322   : > { %v10061_v61 = vadd.f32 %v4261_v49, %v4054_v46  ;;  %v4057_v11 = vadd.f32 %v7574_v44, %v9964_v28 }
 0x323   : > { %v3942_v34 = vpop.f32.mrf.mxu1  ;;  %v4264_v0 = vpop.f32.mrf.mxu0 }
 0x324   : > { %v10064_v3 = vadd.f32 %v7614_v7, %v4057_v11  ;;  %v4055_v20 = vadd.f32 %v3942_v34, %v9966_v43  ;;  %v5711_v34 = vld [vmem:[#allocation3 + $0x10a] sm:$0xff] }
 0x325   : > { %v7577_v13 = vpop.f32.mrf.mxu1  ;;  %v7617_v42 = vpop.f32.mrf.mxu0  ;;  %7816 = vmatmul.mubr.msk.bf16.gmra.mxu1 %vm3092_vm3, %v5730_v51 }
 0x326   : > { %v10068_v23 = vadd.f32 %v4264_v0, %v4055_v20  ;;  %v4060_v29 = vadd.f32 %v7577_v13, %v9970_v1  ;;  %7819 = vmatprep.mubr.msk.bf16.mxu1 %vm3092_vm3, %v5731_v21  ;;  %v5712_v0 = vld [vmem:[#allocation3 + $0x112] sm:$0xff]  ;;  %v5713_v20 = vld [vmem:[#allocation3 + $0x122] sm:$0xff]  ;;  %v5714_v21 = vld [vmem:[#allocation3 + $0x12a] sm:$0xff] }
 0x327   : > { %v3955_v17 = vpop.f32.mrf.mxu1  ;;  %v4277_v28 = vpop.f32.mrf.mxu0  ;;  %v5735_v15 = vpack.c.bf16 %v5714_v21, %v5713_v20 }
 0x328   : > { %v10072_v4 = vadd.f32 %v7617_v42, %v4060_v29  ;;  %v4058_v14 = vadd.f32 %v3955_v17, %v9974_v24  ;;  %v5734_v17 = vpack.c.bf16 %v5712_v0, %v5711_v34 }
 0x329   : > { %v7578_v43 = vpop.f32.mrf.mxu1  ;;  %v7618_v19 = vpop.f32.mrf.mxu0 }
 0x32a   : > { %v10075_v55 = vadd.f32 %v4277_v28, %v4058_v14  ;;  %v4061_v37 = vadd.f32 %v7578_v43, %v9976_v5 }
 0x32b   : > { %v3958_v59 = vpop.f32.mrf.mxu1  ;;  %v4280_v1 = vpop.f32.mrf.mxu0 }
 0x32c   : > { %v10078_v49 = vadd.f32 %v7618_v19, %v4061_v37  ;;  %v4059_v46 = vadd.f32 %v3958_v59, %v9978_v30  ;;  %v5715_v59 = vld [vmem:[#allocation3 + $0x13a] sm:$0xff] }
 0x32d   : > { %v7581_v57 = vpop.f32.mrf.mxu1  ;;  %v7621_v24 = vpop.f32.mrf.mxu0  ;;  %7820 = vmatmul.mubr.msk.bf16.gmra.mxu1 %vm3092_vm3, %v5732_v26 }
 0x32e   : > { %v10082_v44 = vadd.f32 %v4280_v1, %v4059_v46  ;;  %v4064_v7 = vadd.f32 %v7581_v57, %v9982_v40  ;;  %7823 = vmatprep.mubr.msk.bf16.mxu1 %vm3092_vm3, %v5733_v31  ;;  %v5716_v1 = vld [vmem:[#allocation3 + $0x142] sm:$0xff]  ;;  %v5717_v46 = vld [vmem:[#allocation3 + $0x152] sm:$0xff]  ;;  %v5718_v31 = vld [vmem:[#allocation3 + $0x15a] sm:$0xff] }
 0x32f   : > { %v3971_v48 = vpop.f32.mrf.mxu1  ;;  %v4293_v5 = vpop.f32.mrf.mxu0  ;;  %v5737_v34 = vpack.c.bf16 %v5718_v31, %v5717_v46 }
 0x330   : > { %v10086_v12 = vadd.f32 %v7621_v24, %v4064_v7  ;;  %v4062_v11 = vadd.f32 %v3971_v48, %v9986_v62  ;;  %v5736_v48 = vpack.c.bf16 %v5716_v1, %v5715_v59  ;;  %v5723_v1 = vld [vmem:[#allocation3 + $0x19a] sm:$0xff] }
 0x331   : > { %v7582_v30 = vpop.f32.mrf.mxu1  ;;  %v7622_v51 = vpop.f32.mrf.mxu0 }
 0x332   : > { %v10089_v13 = vadd.f32 %v4293_v5, %v4062_v11  ;;  %v4065_v42 = vadd.f32 %v7582_v30, %v9988_v36 }
 0x333   : > { %v3974_v29 = vpop.f32.mrf.mxu1  ;;  %v4296_v40 = vpop.f32.mrf.mxu0 }
 0x334   : > { %v10092_v28 = vadd.f32 %v7622_v51, %v4065_v42  ;;  %v4063_v14 = vadd.f32 %v3974_v29, %v9990_v53  ;;  %v5719_v29 = vld [vmem:[#allocation3 + $0x16a] sm:$0xff] }
 0x335   : > { %v7585_v33 = vpop.f32.mrf.mxu1  ;;  %v7625_v62 = vpop.f32.mrf.mxu0  ;;  %7824 = vmatmul.mubr.msk.bf16.gmra.mxu1 %vm3092_vm3, %v5734_v17 }
 0x336   : > { %v10096_v43 = vadd.f32 %v4296_v40, %v4063_v14  ;;  %v4068_v19 = vadd.f32 %v7585_v33, %v9994_v6  ;;  %7827 = vmatprep.mubr.msk.bf16.mxu1 %vm3092_vm3, %v5735_v15  ;;  %v5720_v40 = vld [vmem:[#allocation3 + $0x172] sm:$0xff] }
 0x337   : > { %v3987_v56 = vpop.f32.mrf.mxu1  ;;  %v4309_v36 = vpop.f32.mrf.mxu0 }
 0x338   : > { %v10100_v52 = vadd.f32 %v7625_v62, %v4068_v19  ;;  %v4066_v37 = vadd.f32 %v3987_v56, %v9998_v2  ;;  %v5738_v19 = vpack.c.bf16 %v5720_v40, %v5719_v29 }
 0x339   : > { %v7586_v53 = vpop.f32.mrf.mxu1  ;;  %v7626_v26 = vpop.f32.mrf.mxu0 }
 0x33a   : > { %v10103_v57 = vadd.f32 %v4309_v36, %v4066_v37  ;;  %v4069_v24 = vadd.f32 %v7586_v53, %v10000_v8 }
 0x33b   : > { %v3990_v7 = vpop.f32.mrf.mxu1  ;;  %v4312_v6 = vpop.f32.mrf.mxu0 }
 0x33c   : > { %v10106_v5 = vadd.f32 %v7626_v26, %v4069_v24  ;;  %v4067_v11 = vadd.f32 %v3990_v7, %v10002_v50 }
 0x33d   : > { %v7589_v0 = vpop.f32.mrf.mxu1  ;;  %v7629_v2 = vpop.f32.mrf.mxu0  ;;  %7828 = vmatmul.mubr.msk.bf16.gmra.mxu1 %vm3092_vm3, %v5736_v48 }
 0x33e   : > { %v10110_v30 = vadd.f32 %v4312_v6, %v4067_v11  ;;  %v4072_v51 = vadd.f32 %v7589_v0, %v10006_v58  ;;  %7831 = vmatprep.mubr.msk.bf16.mxu1 %vm3092_vm3, %v5737_v34 }
 0x33f   : > { %v4003_v20 = vpop.f32.mrf.mxu1  ;;  %v4325_v8 = vpop.f32.mrf.mxu0 }
 0x340   : > { %v10114_v21 = vadd.f32 %v7629_v2, %v4072_v51  ;;  %v4070_v42 = vadd.f32 %v4003_v20, %v10010_v41 }
 0x341   : > { %v7590_v50 = vpop.f32.mrf.mxu1  ;;  %v7630_v17 = vpop.f32.mrf.mxu0 }
 0x342   : > { %v10117_v14 = vadd.f32 %v4325_v8, %v4070_v42  ;;  %v4073_v15 = vadd.f32 %v7590_v50, %v10012_v47  ;;  %v5724_v47 = vld [vmem:[#allocation3 + $0x1a2] sm:$0xff] }
 0x343   : > { %v4006_v33 = vpop.f32.mrf.mxu1  ;;  %v4328_v62 = vpop.f32.mrf.mxu0  ;;  %v5740_v7 = vpack.c.bf16 %v5724_v47, %v5723_v1 }
 0x344   : > { %v10120_v58 = vadd.f32 %v7630_v17, %v4073_v15  ;;  %v4071_v56 = vadd.f32 %v4006_v33, %v10014_v38 }
 0x345   : > { %v7593_v36 = vpop.f32.mrf.mxu1  ;;  %v7633_v37 = vpop.f32.mrf.mxu0  ;;  %7832 = vmatmul.mubr.msk.bf16.gmra.mxu1 %vm3092_vm3, %v5738_v19 }
 0x346   : > { %v10124_v41 = vadd.f32 %v4328_v62, %v4071_v56  ;;  %v4076_v59 = vadd.f32 %v7593_v36, %v10018_v18  ;;  %7835 = vmatprep.mubr.msk.bf16.mxu1 %vm3092_vm3, %v9927_v35 }
 0x347   : > { %v4019_v53 = vpop.f32.mrf.mxu1  ;;  %v4341_v26 = vpop.f32.mrf.mxu0 }
 0x348   : > { %v10129_v46 = vadd.f32 %v7633_v37, %v4076_v59  ;;  %v4074_v31 = vadd.f32 %v4019_v53, %v10024_v45 }
 0x349   : > { %v7594_v38 = vpop.f32.mrf.mxu1  ;;  %v7634_v24 = vpop.f32.mrf.mxu0 }
 0x34a   : > { %v10132_v6 = vadd.f32 %v4341_v26, %v4074_v31  ;;  %v4077_v48 = vadd.f32 %v7594_v38, %v10026_v25 }
 0x34b   : > { %v4022_v11 = vpop.f32.mrf.mxu1  ;;  %v4344_v18 = vpop.f32.mrf.mxu0 }
 0x34c   : > { %v10135_v34 = vadd.f32 %v7634_v24, %v4077_v48  ;;  %v4075_v35 = vadd.f32 %v4022_v11, %v10028_v32 }
 0x34d   : > { %v7597_v0 = vpop.f32.mrf.mxu1  ;;  %v7637_v2 = vpop.f32.mrf.mxu0  ;;  %7836 = vmatmul.mubr.msk.bf16.gmra.mxu1 %vm3092_vm3, %v5740_v7 }
 0x34e   : > { %v10139_v51 = vadd.f32 %v4344_v18, %v4075_v35  ;;  %v4080_v45 = vadd.f32 %v7597_v0, %v10032_v39 }
 0x34f   : > { %v4035_v20 = vpop.f32.mrf.mxu1  ;;  %v4357_v8 = vpop.f32.mrf.mxu0 }
 0x350   : > { %v10142_v42 = vadd.f32 %v7637_v2, %v4080_v45  ;;  %v4078_v25 = vadd.f32 %v4035_v20, %v10035_v27 }
 0x351   : > { %v7598_v29 = vpop.f32.mrf.mxu1  ;;  %v7638_v40 = vpop.f32.mrf.mxu0 }
 0x352   : > { %v10145_v50 = vadd.f32 %v4357_v8, %v4078_v25  ;;  %v4081_v32 = vadd.f32 %v7598_v29, %v10037_v22 }
 0x353   : > { %v4038_v17 = vpop.f32.mrf.mxu1  ;;  %v4360_v15 = vpop.f32.mrf.mxu0 }
 0x354   : > { %v10148_v33 = vadd.f32 %v7638_v40, %v4081_v32  ;;  %v4079_v62 = vadd.f32 %v4038_v17, %v10039_v9 }
 0x355   : > { %v7649_v19 = vpop.f32.mrf.mxu1  ;;  %v10151_v39 = vpop.f32.mrf.mxu0 }
 0x356   : > { %v10153_v56 = vadd.f32 %v4360_v15, %v4079_v62  ;;  %v10156_v36 = vadd.f32 %v7649_v19, %v10044_v16 }
 0x357   : > { %v4567_v27 = vpop.f32.mrf.mxu1  ;;  %v10158_v37 = vpop.f32.mrf.mxu0 }
 0x358   : > { %v10161_v59 = vadd.f32 %v4567_v27, %v10047_v63 }
 0x359   : > { %v7650_v22 = vpop.f32.mrf.mxu1  ;;  %v10163_v1 = vpop.f32.mrf.mxu0 }
 0x35a   : > { %v10166_v47 = vadd.f32 %v7650_v22, %v10050_v60 }
 0x35b   : > { %v4570_v9 = vpop.f32.mrf.mxu1  ;;  %v10168_v53 = vpop.f32.mrf.mxu0 }
 0x35c   : > { %v10171_v26 = vadd.f32 %v4570_v9, %v10054_v54 }
 0x35d   : > { %v7653_v16 = vpop.f32.mrf.mxu1  ;;  %v10173_v31 = vpop.f32.mrf.mxu0 }
 0x35e   : > { %v10176_v38 = vadd.f32 %v7653_v16, %v10058_v10 }
 0x35f   : > { %v4583_v63 = vpop.f32.mrf.mxu1  ;;  %v10178_v24 = vpop.f32.mrf.mxu0 }
 0x360   : > { %v10181_v7 = vadd.f32 %v4583_v63, %v10061_v61 }
 0x361   : > { %v7654_v60 = vpop.f32.mrf.mxu1  ;;  %v10183_v48 = vpop.f32.mrf.mxu0 }
 0x362   : > { %v10186_v11 = vadd.f32 %v7654_v60, %v10064_v3 }
 0x363   : > { %v4586_v54 = vpop.f32.mrf.mxu1  ;;  %v10188_v18 = vpop.f32.mrf.mxu0 }
 0x364   : > { %v10191_v35 = vadd.f32 %v4586_v54, %v10068_v23 }
 0x365   : > { %v7657_v10 = vpop.f32.mrf.mxu1  ;;  %v10193_v0 = vpop.f32.mrf.mxu0 }
 0x366   : > { %v10196_v2 = vadd.f32 %v7657_v10, %v10072_v4 }
 0x367   : > { %v4599_v61 = vpop.f32.mrf.mxu1  ;;  %v10198_v45 = vpop.f32.mrf.mxu0 }
 0x368   : > { %v10201_v20 = vadd.f32 %v4599_v61, %v10075_v55 }
 0x369   : > { %v7658_v3 = vpop.f32.mrf.mxu1  ;;  %v10203_v8 = vpop.f32.mrf.mxu0 }
 0x36a   : > { %v10206_v25 = vadd.f32 %v7658_v3, %v10078_v49 }
 0x36b   : > { %v4602_v23 = vpop.f32.mrf.mxu1  ;;  %v10208_v29 = vpop.f32.mrf.mxu0 }
 0x36c   : > { %v10211_v40 = vadd.f32 %v4602_v23, %v10082_v44 }
 0x36d   : > { %v7661_v4 = vpop.f32.mrf.mxu1  ;;  %v10213_v32 = vpop.f32.mrf.mxu0 }
 0x36e   : > { %v10216_v17 = vadd.f32 %v7661_v4, %v10086_v12 }
 0x36f   : > { %v4615_v55 = vpop.f32.mrf.mxu1  ;;  %v10218_v15 = vpop.f32.mrf.mxu0 }
 0x370   : > { %v10221_v62 = vadd.f32 %v4615_v55, %v10089_v13 }
 0x371   : > { %v7662_v49 = vpop.f32.mrf.mxu1  ;;  %v10223_v19 = vpop.f32.mrf.mxu0 }
 0x372   : > { %10892 = vst [vmem:[#allocation7_spill] sm:$0xff] %v10223_v19  ;;  %v10226_v27 = vadd.f32 %v7662_v49, %v10092_v28 }
 0x373   : > { %v4618_v44 = vpop.f32.mrf.mxu1  ;;  %v10228_v22 = vpop.f32.mrf.mxu0 }
 0x374   : > { %10893 = vst [vmem:[#allocation8_spill] sm:$0xff] %v10228_v22  ;;  %v10231_v9 = vadd.f32 %v4618_v44, %v10096_v43 }
 0x375   : > { %v7665_v12 = vpop.f32.mrf.mxu1  ;;  %v10233_v16 = vpop.f32.mrf.mxu0 }
 0x376   : > { %10894 = vst [vmem:[#allocation9_spill] sm:$0xff] %v10231_v9  ;;  %10895 = vst [vmem:[#allocation10_spill] sm:$0xff] %v10233_v16  ;;  %v10236_v63 = vadd.f32 %v7665_v12, %v10100_v52 }
 0x377   : > { %v4631_v13 = vpop.f32.mrf.mxu1  ;;  %v10238_v60 = vpop.f32.mrf.mxu0 }
 0x378   : > { %10896 = vst [vmem:[#allocation11_spill] sm:$0xff] %v10236_v63  ;;  %10897 = vst [vmem:[#allocation12_spill] sm:$0xff] %v10238_v60  ;;  %v10241_v54 = vadd.f32 %v4631_v13, %v10103_v57 }
 0x379   : > { %v7666_v28 = vpop.f32.mrf.mxu1  ;;  %v10243_v10 = vpop.f32.mrf.mxu0 }
 0x37a   : > { %10898 = vst [vmem:[#allocation13_spill] sm:$0xff] %v10241_v54  ;;  %10899 = vst [vmem:[#allocation14_spill] sm:$0xff] %v10243_v10  ;;  %v10246_v61 = vadd.f32 %v7666_v28, %v10106_v5 }
 0x37b   : > { %v4634_v43 = vpop.f32.mrf.mxu1  ;;  %v10248_v3 = vpop.f32.mrf.mxu0 }
 0x37c   : > { %10900 = vst [vmem:[#allocation15_spill] sm:$0xff] %v10246_v61  ;;  %10901 = vst [vmem:[#allocation16_spill] sm:$0xff] %v10248_v3  ;;  %v10251_v23 = vadd.f32 %v4634_v43, %v10110_v30 }
 0x37d   : > { %v7669_v52 = vpop.f32.mrf.mxu1  ;;  %v10253_v4 = vpop.f32.mrf.mxu0 }
 0x37e   : > { %10902 = vst [vmem:[#allocation17_spill] sm:$0xff] %v10251_v23  ;;  %10903 = vst [vmem:[#allocation18_spill] sm:$0xff] %v10253_v4  ;;  %v10256_v55 = vadd.f32 %v7669_v52, %v10114_v21 }
 0x37f   : > { %v4647_v57 = vpop.f32.mrf.mxu1  ;;  %v10258_v49 = vpop.f32.mrf.mxu0 }
 0x380   : > { %10904 = vst [vmem:[#allocation19_spill] sm:$0xff] %v10256_v55  ;;  %10905 = vst [vmem:[#allocation20_spill] sm:$0xff] %v10258_v49  ;;  %v10261_v44 = vadd.f32 %v4647_v57, %v10117_v14 }
 0x381   : > { %v7670_v5 = vpop.f32.mrf.mxu1  ;;  %v10263_v12 = vpop.f32.mrf.mxu0 }
 0x382   : > { %10906 = vst [vmem:[#allocation58_spill] sm:$0xff] %v10261_v44  ;;  %10907 = vst [vmem:[#allocation56_spill] sm:$0xff] %v10263_v12  ;;  %v10266_v13 = vadd.f32 %v7670_v5, %v10120_v58 }
 0x383   : > { %v4650_v30 = vpop.f32.mrf.mxu1  ;;  %v10268_v28 = vpop.f32.mrf.mxu0 }
 0x384   : > { %10908 = vst [vmem:[#allocation21_spill] sm:$0xff] %v10266_v13  ;;  %10909 = vst [vmem:[#allocation29_spill] sm:$0xff] %v10268_v28  ;;  %v10271_v43 = vadd.f32 %v4650_v30, %v10124_v41 }
 0x385   : > { %v7673_v21 = vpop.f32.mrf.mxu1  ;;  %v10273_v52 = vpop.f32.mrf.mxu0 }
 0x386   : > { %10910 = vst [vmem:[#allocation61_spill] sm:$0xff] %v10271_v43  ;;  %10911 = vst [vmem:[#allocation57_spill] sm:$0xff] %v10273_v52  ;;  %v10276_v49 = vadd.f32 %v7673_v21, %v10129_v46 }
 0x387   : > { %v4663_v14 = vpop.f32.mrf.mxu1  ;;  %v10278_v57 = vpop.f32.mrf.mxu0 }
 0x388   : > { %10912 = vst [vmem:[#allocation22_spill] sm:$0xff] %v10276_v49  ;;  %10913 = vst [vmem:[#allocation23_spill] sm:$0xff] %v10278_v57  ;;  %v10281_v12 = vadd.f32 %v4663_v14, %v10132_v6 }
 0x389   : > { %v7674_v58 = vpop.f32.mrf.mxu1  ;;  %v10283_v5 = vpop.f32.mrf.mxu0 }
 0x38a   : > { %10914 = vst [vmem:[#allocation25_spill] sm:$0xff] %v10281_v12  ;;  %10915 = vst [vmem:[#allocation26_spill] sm:$0xff] %v10283_v5  ;;  %v10286_v28 = vadd.f32 %v7674_v58, %v10135_v34 }
 0x38b   : > { %v4666_v41 = vpop.f32.mrf.mxu1  ;;  %v10288_v30 = vpop.f32.mrf.mxu0 }
 0x38c   : > { %10916 = vst [vmem:[#allocation64_spill] sm:$0xff] %v10286_v28  ;;  %10917 = vst [vmem:[#allocation59_spill] sm:$0xff] %v10288_v30  ;;  %v10291_v52 = vadd.f32 %v4666_v41, %v10139_v51 }
 0x38d   : > { %v7677_v46 = vpop.f32.mrf.mxu1  ;;  %v10293_v21 = vpop.f32.mrf.mxu0 }
 0x38e   : > { %10918 = vst [vmem:[#allocation27_spill] sm:$0xff] %v10291_v52  ;;  %10919 = vst [vmem:[#allocation28_spill] sm:$0xff] %v10293_v21  ;;  %v10296_v57 = vadd.f32 %v7677_v46, %v10142_v42 }
 0x38f   : > { %v4679_v6 = vpop.f32.mrf.mxu1  ;;  %v10298_v14 = vpop.f32.mrf.mxu0 }
 0x390   : > { %10920 = vst [vmem:[#allocation30_spill] sm:$0xff] %v10296_v57  ;;  %10921 = vst [vmem:[#allocation67_spill] sm:$0xff] %v10298_v14  ;;  %v10301_v5 = vadd.f32 %v4679_v6, %v10145_v50 }
 0x391   : > { %v7678_v34 = vpop.f32.mrf.mxu1  ;;  %v10303_v58 = vpop.f32.mrf.mxu0 }
 0x392   : > { %10922 = vst [vmem:[#allocation60_spill] sm:$0xff] %v10301_v5  ;;  %10923 = vst [vmem:[#allocation31_spill] sm:$0xff] %v10303_v58  ;;  %v10306_v30 = vadd.f32 %v7678_v34, %v10148_v33 }
 0x393   : > { %v4682_v51 = vpop.f32.mrf.mxu1  ;;  %v10308_v41 = vpop.f32.mrf.mxu0 }
 0x394   : > { %10924 = vst [vmem:[#allocation32_spill] sm:$0xff] %v10306_v30  ;;  %10925 = vst [vmem:[#allocation37_spill] sm:$0xff] %v10308_v41  ;;  %v10311_v21 = vadd.f32 %v4682_v51, %v10153_v56 }
 0x395   : > { %v7729_v42 = vpop.f32.mrf.mxu1  ;;  %v7769_v46 = vpop.f32.mrf.mxu0 }
 0x396   : > { %10926 = vst [vmem:[#allocation70_spill] sm:$0xff] %v10311_v21 }
 0x397   : > { %v5212_v57 = vpop.f32.mrf.mxu1  ;;  %v5534_v52 = vpop.f32.mrf.mxu0 }
 0x399   : > { %v7730_v14 = vpop.f32.mrf.mxu1  ;;  %v7770_v50 = vpop.f32.mrf.mxu0 }
 0x39b   : > { %v5215_v28 = vpop.f32.mrf.mxu1  ;;  %v10317_v58 = vpop.f32.mrf.mxu0 }
 0x39d   : > { %v10313_v6 = vpop.f32.mrf.mxu1  ;;  %v10323_v41 = vpop.f32.mrf.mxu0 }
 0x39f   : > { %v10315_v5 = vpop.f32.mrf.mxu1  ;;  %v10329_v21 = vpop.f32.mrf.mxu0 }
 0x3a1   : > { %v10319_v33 = vpop.f32.mrf.mxu1  ;;  %v10335_v49 = vpop.f32.mrf.mxu0 }
 0x3a3   : > { %v10321_v34 = vpop.f32.mrf.mxu1  ;;  %v10341_v44 = vpop.f32.mrf.mxu0 }
 0x3a5   : > { %v10325_v56 = vpop.f32.mrf.mxu1  ;;  %v10347_v3 = vpop.f32.mrf.mxu0 }
 0x3a7   : > { %v10327_v51 = vpop.f32.mrf.mxu1  ;;  %v10353_v61 = vpop.f32.mrf.mxu0 }
 0x3a9   : > { %v10331_v30 = vpop.f32.mrf.mxu1  ;;  %v10359_v16 = vpop.f32.mrf.mxu0 }
 0x3ab   : > { %v10333_v12 = vpop.f32.mrf.mxu1 }
 0x3ad   : > { %v10337_v43 = vpop.f32.mrf.mxu1 }
 0x3af   : > { %v10339_v13 = vpop.f32.mrf.mxu1 }
 0x3b0   : > { %10927 = vst [vmem:[#allocation62_spill] sm:$0xff] %v10339_v13 }
 0x3b1   : > { %v10343_v4 = vpop.f32.mrf.mxu1 }
 0x3b2   : > { %10928 = vst [vmem:[#allocation33_spill] sm:$0xff] %v10343_v4  ;;  %v10365_v4 = vpop.f32.mrf.mxu0 }
 0x3b3   : > { %v10345_v55 = vpop.f32.mrf.mxu1 }
 0x3b4   : > { %10929 = vst [vmem:[#allocation34_spill] sm:$0xff] %v10345_v55 }
 0x3b5   : > { %v10349_v23 = vpop.f32.mrf.mxu1 }
 0x3b6   : > { %10930 = vst [vmem:[#allocation73_spill] sm:$0xff] %v10349_v23  ;;  %v10371_v23 = vpop.f32.mrf.mxu0 }
 0x3b7   : > { %v10351_v10 = vpop.f32.mrf.mxu1  ;;  %10938 = vst [vmem:[#allocation39_spill] sm:$0xff] %v10371_v23 }
 0x3b8   : > { %10931 = vst [vmem:[#allocation63_spill] sm:$0xff] %v10351_v10 }
 0x3b9   : > { %v10355_v60 = vpop.f32.mrf.mxu1 }
 0x3ba   : > { %10932 = vst [vmem:[#allocation65_spill] sm:$0xff] %v10355_v60  ;;  %v10377_v60 = vpop.f32.mrf.mxu0 }
 0x3bb   : > { %v10357_v54 = vpop.f32.mrf.mxu1  ;;  %10941 = vst [vmem:[#allocation69_spill] sm:$0xff] %v10377_v60 }
 0x3bc   : > { %10933 = vst [vmem:[#allocation35_spill] sm:$0xff] %v10357_v54 }
 0x3bd   : > { %v10361_v63 = vpop.f32.mrf.mxu1 }
 0x3be   : > { %10934 = vst [vmem:[#allocation36_spill] sm:$0xff] %v10361_v63  ;;  %v10383_v63 = vpop.f32.mrf.mxu0 }
 0x3bf   : > { %v10363_v22 = vpop.f32.mrf.mxu1  ;;  %10944 = vst [vmem:[#allocation41_spill] sm:$0xff] %v10383_v63 }
 0x3c0   : > { %10935 = vst [vmem:[#allocation38_spill] sm:$0xff] %v10363_v22 }
 0x3c1   : > { %v10367_v55 = vpop.f32.mrf.mxu1 }
 0x3c2   : > { %10936 = vst [vmem:[#allocation76_spill] sm:$0xff] %v10367_v55  ;;  %v5018_v55 = vadd.f32 %v10151_v39, %v10156_v36  ;;  %v5017_v39 = vadd.f32 %v10168_v53, %v10171_v26  ;;  %v5020_v53 = vadd.f32 %v10178_v24, %v10181_v7  ;;  %v10418_v26 = vld [vmem:[%s10730_s6] ss:$0 sm:$0xff] }
 0x3c3   : > { %v10369_v9 = vpop.f32.mrf.mxu1 }
 0x3c4   : > { %10937 = vst [vmem:[#allocation66_spill] sm:$0xff] %v10369_v9  ;;  %v5341_v23 = vadd.f32 %v7729_v42, %v5018_v55  ;;  %v5340_v42 = vadd.f32 %v5215_v28, %v5017_v39 }
 0x3c5   : > { %v10373_v10 = vpop.f32.mrf.mxu1 }
 0x3c6   : > { %10939 = vst [vmem:[#allocation40_spill] sm:$0xff] %v10373_v10  ;;  %v5016_v10 = vadd.f32 %v10158_v37, %v10161_v59  ;;  %v5663_v36 = vadd.f32 %v7769_v46, %v5341_v23  ;;  %v10408_v59 = vld [vmem:[%s10729_s5] ss:$0 sm:$0xff]  ;;  %v5662_v7 = vadd.f32 %v10317_v58, %v5340_v42  ;;  %v5021_v46 = vadd.f32 %v10188_v18, %v10191_v35 }
 0x3c7   : > { %v10375_v13 = vpop.f32.mrf.mxu1 }
 0x3c8   : > { %10940 = vst [vmem:[#allocation68_spill] sm:$0xff] %v10375_v13  ;;  %v10393_v13 = vpop.f32.mrf.mxu0  ;;  %v5344_v18 = vadd.f32 %v10321_v34, %v5021_v46 }
 0x3c9   : > { %v10379_v54 = vpop.f32.mrf.mxu1 }
 0x3ca   : > { %10942 = vst [vmem:[#allocation71_spill] sm:$0xff] %v10379_v54  ;;  %v5339_v54 = vadd.f32 %v5212_v57, %v5016_v10 }
 0x3cb   : > { %v10381_v19 = vpop.f32.mrf.mxu1 }
 0x3cc   : > { %10943 = vst [vmem:[#allocation24_spill] sm:$0xff] %v10381_v19  ;;  %v5019_v19 = vadd.f32 %v10163_v1, %v10166_v47  ;;  %v5661_v55 = vadd.f32 %v5534_v52, %v5339_v54  ;;  %v5022_v47 = vadd.f32 %v10173_v31, %v10176_v38  ;;  %v5023_v52 = vadd.f32 %v10183_v48, %v10186_v11 }
 0x3cd   : > { %v10385_v22 = vpop.f32.mrf.mxu1  ;;  %v5343_v38 = vadd.f32 %v10315_v5, %v5020_v53  ;;  %v5024_v53 = vadd.f32 %v10198_v45, %v10201_v20  ;;  %v5027_v45 = vadd.f32 %v10203_v8, %v10206_v25  ;;  %v5025_v20 = vadd.f32 %v10208_v29, %v10211_v40 }
 0x3ce   : > { %10945 = vst [vmem:[#allocation42_spill] sm:$0xff] %v10385_v22  ;;  %v10403_v22 = vpop.f32.mrf.mxu0  ;;  %v5345_v31 = vadd.f32 %v10313_v6, %v5022_v47 }
 0x3cf   : > { %v10389_v9 = vpop.f32.mrf.mxu1  ;;  %v5347_v8 = vadd.f32 %v10327_v51, %v5024_v53  ;;  %v5350_v25 = vadd.f32 %v10331_v30, %v5027_v45  ;;  %v5028_v51 = vadd.f32 %v10218_v15, %v10221_v62  ;;  %v5348_v30 = vadd.f32 %v10333_v12, %v5025_v20  ;;  %v10953_v45 = vld [vmem:[#allocation39_spill] sm:$0xff] }
 0x3d0   : > { %10946 = vst [vmem:[#allocation45_spill] sm:$0xff] %v10389_v9  ;;  %v5342_v9 = vadd.f32 %v7730_v14, %v5019_v19  ;;  %v10420_v23 = vpop.f32.mrf.mxu0 }
 0x3d1   : > { %v10395_v60 = vpop.f32.mrf.mxu1 }
 0x3d2   : > { %v5664_v10 = vadd.f32 %v7770_v50, %v5342_v9  ;;  %v5346_v50 = vadd.f32 %v10319_v33, %v5023_v52  ;;  %v10435_v11 = vpop.f32.mrf.mxu0 }
 0x3d3   : > { %v10399_v63 = vpop.f32.mrf.mxu1 }
 0x3d5   : > { %v7809_v37 = vpop.f32.mrf.mxu1 }
 0x3d6   : > { %v5985_v1 = vadd.f32 %v7809_v37, %v5663_v36  ;;  %v5026_v36 = vadd.f32 %v10193_v0, %v10196_v2  ;;  %v5667_v37 = vadd.f32 %v10323_v41, %v5345_v31 }
 0x3d7   : > { %v5856_v19 = vpop.f32.mrf.mxu1 }
 0x3d8   : > { %v6024_v54 = vmul.f32 %v10408_v59, %v5985_v1  ;;  %v5983_v28 = vadd.f32 %v5856_v19, %v5661_v55  ;;  %v5665_v55 = vadd.f32 %v10329_v21, %v5343_v38  ;;  %v5668_v19 = vadd.f32 %v10335_v49, %v5346_v50 }
 0x3d9   : > { %v7810_v24 = vpop.f32.mrf.mxu1  ;;  %v5349_v0 = vadd.f32 %v10325_v56, %v5026_v36  ;;  %v5666_v49 = vadd.f32 %v10341_v44, %v5344_v18 }
 0x3da   : > { %v6063_v57 = vadd.f32 %v10418_v26, %v6024_v54  ;;  %v6022_v9 = vmul.f32 %v10408_v59, %v5983_v28  ;;  %v5986_v14 = vadd.f32 %v7810_v24, %v5664_v10  ;;  %v10450_v10 = vpop.f32.mrf.mxu0 }
 0x3db   : > { %v5859_v48 = vpop.f32.mrf.mxu1 }
 0x3dc   : > { %v6095_v5 = vmax.f32 %v6063_v57, 0.0  ;;  %v6061_v6 = vadd.f32 %v10418_v26, %v6022_v9  ;;  %v6025_v58 = vmul.f32 %v10408_v59, %v5986_v14  ;;  %v5984_v39 = vadd.f32 %v5859_v48, %v5662_v7  ;;  %v10470_v44 = vpop.f32.mrf.mxu0 }
 0x3dd   : > { %v7813_v35 = vpop.f32.mrf.mxu1  ;;  %v5671_v57 = vadd.f32 %v10347_v3, %v5349_v0  ;;  %v5030_v3 = vadd.f32 %v10213_v32, %v10216_v17  ;;  %v5672_v32 = vadd.f32 %v10359_v16, %v5350_v25  ;;  %v10955_v25 = vld [vmem:[#allocation33_spill] sm:$0xff] }
 0x3de   : > { %v6809_v33 = vpack.c.bf16 %v6095_v5, %v6095_v5  ;;  %v6093_v42 = vmax.f32 %v6061_v6, 0.0  ;;  %v6064_v1 = vadd.f32 %v10418_v26, %v6025_v58  ;;  %v6023_v47 = vmul.f32 %v10408_v59, %v5984_v39  ;;  %v10488_v12 = vpop.f32.mrf.mxu0 }
 0x3df   : > { %v5989_v2 = vadd.f32 %v7813_v35, %v5667_v37  ;;  %v5872_v41 = vpop.f32.mrf.mxu1  ;;  %v5669_v37 = vadd.f32 %v10353_v61, %v5347_v8  ;;  %v5353_v17 = vadd.f32 %v10337_v43, %v5030_v3  ;;  %v5670_v61 = vadd.f32 %v10365_v4, %v5348_v30 }
 0x3e0   : > { %6256 = vst.msk [vmem:[%s10452_s20 + $0x8] sm:$0xf] %vm6253_vm5, %v6809_v33  ;;  %v6807_v21 = vpack.c.bf16 %v6093_v42, %v6093_v42  ;;  %v6096_v34 = vmax.f32 %v6064_v1, 0.0  ;;  %v6062_v54 = vadd.f32 %v10418_v26, %v6023_v47  ;;  %v5987_v28 = vadd.f32 %v5872_v41, %v5665_v55  ;;  %v10947_v42 = vld [vmem:[#allocation7_spill] sm:$0xff]  ;;  %v10948_v47 = vld [vmem:[#allocation62_spill] sm:$0xff] }
 0x3e1   : > { %v6028_v56 = vmul.f32 %v10408_v59, %v5989_v2  ;;  %v7814_v52 = vpop.f32.mrf.mxu1  ;;  %v5031_v1 = vadd.f32 %v10947_v42, %v10226_v27  ;;  %v5351_v16 = vadd.f32 %v10948_v47, %v5028_v51  ;;  %v10951_v27 = vld [vmem:[#allocation11_spill] sm:$0xff]  ;;  %v5675_v20 = vadd.f32 %v10953_v45, %v5353_v17  ;;  %v10962_v42 = vld [vmem:[#allocation41_spill] sm:$0xff] }
 0x3e2   : > { %6254 = vst.msk [vmem:[%s10452_s20] sm:$0xf] %vm6253_vm5, %v6807_v21  ;;  %v6810_v31 = vpack.c.bf16 %v6096_v34, %v6096_v34  ;;  %v6094_v38 = vmax.f32 %v6062_v54, 0.0  ;;  %v6026_v24 = vmul.f32 %v10408_v59, %v5987_v28  ;;  %v5990_v7 = vadd.f32 %v7814_v52, %v5668_v19  ;;  %v10949_v21 = vld [vmem:[#allocation9_spill] sm:$0xff]  ;;  %v10950_v34 = vld [vmem:[#allocation8_spill] sm:$0xff]  ;;  %v10952_v28 = vld [vmem:[#allocation10_spill] sm:$0xff]  ;;  %v10507_v52 = vpop.f32.mrf.mxu0 }
 0x3e3   : > { %v6067_v29 = vadd.f32 %v10418_v26, %v6028_v56  ;;  %v5875_v40 = vpop.f32.mrf.mxu1  ;;  %v5029_v54 = vadd.f32 %v10950_v34, %v10949_v21  ;;  %v5034_v4 = vadd.f32 %v10952_v28, %v10951_v27  ;;  %v10963_v47 = vld [vmem:[#allocation63_spill] sm:$0xff]  ;;  %v10964_v21 = vld [vmem:[#allocation17_spill] sm:$0xff]  ;;  %v10965_v34 = vld [vmem:[#allocation16_spill] sm:$0xff] }
 0x3e4   : > { %6257 = vst.msk [vmem:[%s10452_s20 + $0xc] sm:$0xf] %vm6253_vm5, %v6810_v31  ;;  %v6808_v9 = vpack.c.bf16 %v6094_v38, %v6094_v38  ;;  %v6065_v14 = vadd.f32 %v10418_v26, %v6026_v24  ;;  %v6029_v46 = vmul.f32 %v10408_v59, %v5990_v7  ;;  %v5988_v50 = vadd.f32 %v5875_v40, %v5666_v49  ;;  %v10956_v40 = vld [vmem:[#allocation34_spill] sm:$0xff]  ;;  %v10966_v28 = vld [vmem:[#allocation65_spill] sm:$0xff] }
 0x3e5   : > { %v6099_v48 = vmax.f32 %v6067_v29, 0.0  ;;  %v7817_v5 = vpop.f32.mrf.mxu1  ;;  %v5354_v29 = vadd.f32 %v10955_v25, %v5031_v1 }
 0x3e6   : > { %6255 = vst.msk [vmem:[%s10452_s20 + $0x4] sm:$0xf] %vm6253_vm5, %v6808_v9  ;;  %v6097_v6 = vmax.f32 %v6065_v14, 0.0  ;;  %v6068_v58 = vadd.f32 %v10418_v26, %v6029_v46  ;;  %v6027_v39 = vmul.f32 %v10408_v59, %v5988_v50  ;;  %v5993_v36 = vadd.f32 %v7817_v5, %v5671_v57  ;;  %v10954_v57 = vld [vmem:[#allocation69_spill] sm:$0xff]  ;;  %v10958_v5 = vld [vmem:[#allocation12_spill] sm:$0xff] }
 0x3e7   : > { %v6813_v15 = vpack.c.bf16 %v6099_v48, %v6099_v48  ;;  %v5888_v62 = vpop.f32.mrf.mxu1  ;;  %v5673_v8 = vadd.f32 %v10954_v57, %v5351_v16  ;;  %v5352_v9 = vadd.f32 %v10956_v40, %v5029_v54  ;;  %v10957_v48 = vld [vmem:[#allocation13_spill] sm:$0xff]  ;;  %v5676_v1 = vadd.f32 %v10962_v42, %v5354_v29  ;;  %v10977_v42 = vld [vmem:[#allocation38_spill] sm:$0xff] }
 0x3e8   : > { %v6811_v55 = vpack.c.bf16 %v6097_v6, %v6097_v6  ;;  %v6100_v18 = vmax.f32 %v6068_v58, 0.0  ;;  %v6066_v35 = vadd.f32 %v10418_v26, %v6027_v39  ;;  %v6032_v33 = vmul.f32 %v10408_v59, %v5993_v36  ;;  %v10959_v58 = vld [vmem:[#allocation15_spill] sm:$0xff]  ;;  %v10960_v39 = vld [vmem:[#allocation14_spill] sm:$0xff] }
 0x3e9   : > { %6260 = vst.msk [vmem:[%s10452_s20 + $0x18] sm:$0xf] %vm6253_vm5, %v6813_v15  ;;  %v5991_v43 = vadd.f32 %v5888_v62, %v5669_v37  ;;  %v7818_v53 = vpop.f32.mrf.mxu1  ;;  %v5032_v6 = vadd.f32 %v10958_v5, %v10957_v48  ;;  %v5035_v36 = vadd.f32 %v10960_v39, %v10959_v58  ;;  %v10961_v37 = vld [vmem:[#allocation73_spill] sm:$0xff]  ;;  %v10525_v62 = vpop.f32.mrf.mxu0  ;;  %v5033_v54 = vadd.f32 %v10965_v34, %v10964_v21  ;;  %v10972_v5 = vld [vmem:[#allocation36_spill] sm:$0xff] }
 0x3ea   : > { %6258 = vst.msk [vmem:[%s10452_s20 + $0x10] sm:$0xf] %vm6253_vm5, %v6811_v55  ;;  %v6814_v19 = vpack.c.bf16 %v6100_v18, %v6100_v18  ;;  %v6098_v0 = vmax.f32 %v6066_v35, 0.0  ;;  %v6071_v2 = vadd.f32 %v10418_v26, %v6032_v33  ;;  %v5994_v41 = vadd.f32 %v7818_v53, %v5672_v32 }
 0x3eb   : > { %v6030_v49 = vmul.f32 %v10408_v59, %v5991_v43  ;;  %v5891_v56 = vpop.f32.mrf.mxu1  ;;  %v5357_v32 = vadd.f32 %v10961_v37, %v5034_v4  ;;  %v5355_v16 = vadd.f32 %v10963_v47, %v5032_v6  ;;  %v5358_v4 = vadd.f32 %v10966_v28, %v5035_v36 }
 0x3ec   : > { %6261 = vst.msk [vmem:[%s10452_s20 + $0x1c] sm:$0xf] %vm6253_vm5, %v6814_v19  ;;  %v6812_v31 = vpack.c.bf16 %v6098_v0, %v6098_v0  ;;  %v6103_v38 = vmax.f32 %v6071_v2, 0.0  ;;  %v6033_v24 = vmul.f32 %v10408_v59, %v5994_v41  ;;  %v5992_v7 = vadd.f32 %v5891_v56, %v5670_v61 }
 0x3ed   : > { %v6069_v14 = vadd.f32 %v10418_v26, %v6030_v49  ;;  %v7821_v46 = vpop.f32.mrf.mxu1  ;;  %v5674_v61 = vadd.f32 %v10393_v13, %v5352_v9  ;;  %v5679_v27 = vadd.f32 %v10403_v22, %v5357_v32  ;;  %v10969_v22 = vld [vmem:[#allocation58_spill] sm:$0xff]  ;;  %v5677_v29 = vadd.f32 %v10420_v23, %v5355_v16 }
 0x3ee   : > { %6259 = vst.msk [vmem:[%s10452_s20 + $0x14] sm:$0xf] %vm6253_vm5, %v6812_v31  ;;  %v6817_v50 = vpack.c.bf16 %v6103_v38, %v6103_v38  ;;  %v6072_v3 = vadd.f32 %v10418_v26, %v6033_v24  ;;  %v6031_v51 = vmul.f32 %v10408_v59, %v5992_v7  ;;  %v5997_v30 = vadd.f32 %v7821_v46, %v5675_v20  ;;  %v10542_v20 = vpop.f32.mrf.mxu0  ;;  %v10967_v24 = vld [vmem:[#allocation19_spill] sm:$0xff]  ;;  %v10968_v7 = vld [vmem:[#allocation18_spill] sm:$0xff] }
 0x3ef   : > { %v6101_v17 = vmax.f32 %v6069_v14, 0.0  ;;  %v5904_v15 = vpop.f32.mrf.mxu1  ;;  %v5038_v57 = vadd.f32 %v10968_v7, %v10967_v24 }
 0x3f0   : > { %6264 = vst.msk [vmem:[%s10452_s20 + $0x28] sm:$0xf] %vm6253_vm5, %v6817_v50  ;;  %v6104_v55 = vmax.f32 %v6072_v3, 0.0  ;;  %v6070_v18 = vadd.f32 %v10418_v26, %v6031_v51  ;;  %v6036_v35 = vmul.f32 %v10408_v59, %v5997_v30  ;;  %v5995_v33 = vadd.f32 %v5904_v15, %v5673_v8  ;;  %v10970_v8 = vld [vmem:[#allocation20_spill] sm:$0xff]  ;;  %v10971_v30 = vld [vmem:[#allocation35_spill] sm:$0xff]  ;;  %v10560_v39 = vpop.f32.mrf.mxu0  ;;  %v10973_v15 = vld [vmem:[#allocation21_spill] sm:$0xff] }
 0x3f1   : > { %v6815_v43 = vpack.c.bf16 %v6101_v17, %v6101_v17  ;;  %v7822_v53 = vpop.f32.mrf.mxu1  ;;  %v5036_v25 = vadd.f32 %v10970_v8, %v10969_v22  ;;  %v5680_v51 = vadd.f32 %v10435_v11, %v5358_v4  ;;  %v5356_v48 = vadd.f32 %v10971_v30, %v5033_v54  ;;  %v10974_v11 = vld [vmem:[#allocation56_spill] sm:$0xff] }
 0x3f2   : > { %v6818_v19 = vpack.c.bf16 %v6104_v55, %v6104_v55  ;;  %v6102_v0 = vmax.f32 %v6070_v18, 0.0  ;;  %v6075_v2 = vadd.f32 %v10418_v26, %v6036_v35  ;;  %v6034_v41 = vmul.f32 %v10408_v59, %v5995_v33  ;;  %v10975_v18 = vld [vmem:[#allocation61_spill] sm:$0xff] }
 0x3f3   : > { %6262 = vst.msk [vmem:[%s10452_s20 + $0x20] sm:$0xf] %vm6253_vm5, %v6815_v43  ;;  %v5998_v13 = vadd.f32 %v7822_v53, %v5676_v1  ;;  %v5907_v45 = vpop.f32.mrf.mxu1  ;;  %v5361_v6 = vadd.f32 %v10972_v5, %v5038_v57  ;;  %v5039_v55 = vadd.f32 %v10974_v11, %v10973_v15  ;;  %v10976_v35 = vld [vmem:[#allocation29_spill] sm:$0xff]  ;;  %v5359_v1 = vadd.f32 %v10977_v42, %v5036_v25  ;;  %v10988_v42 = vld [vmem:[#allocation27_spill] sm:$0xff] }
 0x3f4   : > { %6265 = vst.msk [vmem:[%s10452_s20 + $0x2c] sm:$0xf] %vm6253_vm5, %v6818_v19  ;;  %v6816_v49 = vpack.c.bf16 %v6102_v0, %v6102_v0  ;;  %v6107_v56 = vmax.f32 %v6075_v2, 0.0  ;;  %v6073_v31 = vadd.f32 %v10418_v26, %v6034_v41  ;;  %v5996_v38 = vadd.f32 %v5907_v45, %v5674_v61  ;;  %v10978_v41 = vld [vmem:[#allocation76_spill] sm:$0xff] }
 0x3f5   : > { %v6037_v40 = vmul.f32 %v10408_v59, %v5998_v13  ;;  %v7825_v9 = vpop.f32.mrf.mxu1  ;;  %v5037_v33 = vadd.f32 %v10976_v35, %v10975_v18  ;;  %v5678_v0 = vadd.f32 %v10450_v10, %v5356_v48  ;;  %v5683_v2 = vadd.f32 %v10470_v44, %v5361_v6  ;;  %v10981_v10 = vld [vmem:[#allocation66_spill] sm:$0xff] }
 0x3f6   : > { %6263 = vst.msk [vmem:[%s10452_s20 + $0x24] sm:$0xf] %vm6253_vm5, %v6816_v49  ;;  %v6821_v14 = vpack.c.bf16 %v6107_v56, %v6107_v56  ;;  %v6105_v46 = vmax.f32 %v6073_v31, 0.0  ;;  %v6035_v50 = vmul.f32 %v10408_v59, %v5996_v38  ;;  %v6001_v3 = vadd.f32 %v7825_v9, %v5679_v27  ;;  %v7794_v27 = vpop.f32.mrf.mxu0  ;;  %v10979_v49 = vld [vmem:[#allocation22_spill] sm:$0xff]  ;;  %v10980_v56 = vld [vmem:[#allocation57_spill] sm:$0xff] }
 0x3f7   : > { %v6076_v58 = vadd.f32 %v10418_v26, %v6037_v40  ;;  %v5920_v23 = vpop.f32.mrf.mxu1  ;;  %v5362_v21 = vadd.f32 %v10978_v41, %v5039_v55  ;;  %v5042_v31 = vadd.f32 %v10980_v56, %v10979_v49  ;;  %v5681_v38 = vadd.f32 %v10488_v12, %v5359_v1  ;;  %v10983_v40 = vld [vmem:[#allocation23_spill] sm:$0xff] }
 0x3f8   : > { %6268 = vst.msk [vmem:[%s10452_s20 + $0x38] sm:$0xf] %vm6253_vm5, %v6821_v14  ;;  %v6819_v36 = vpack.c.bf16 %v6105_v46, %v6105_v46  ;;  %v6074_v37 = vadd.f32 %v10418_v26, %v6035_v50  ;;  %v6040_v32 = vmul.f32 %v10408_v59, %v6001_v3  ;;  %v5999_v17 = vadd.f32 %v5920_v23, %v5677_v29  ;;  %v10982_v29 = vld [vmem:[#allocation25_spill] sm:$0xff]  ;;  %v10984_v14 = vld [vmem:[#allocation64_spill] sm:$0xff]  ;;  %v10985_v46 = vld [vmem:[#allocation26_spill] sm:$0xff]  ;;  %v5633_v30 = vpop.f32.mrf.mxu0 }
 0x3f9   : > { %v6108_v61 = vmax.f32 %v6076_v58, 0.0  ;;  %v7826_v47 = vpop.f32.mrf.mxu1  ;;  %v5360_v24 = vadd.f32 %v10981_v10, %v5037_v33  ;;  %v5040_v9 = vadd.f32 %v10983_v40, %v10982_v29  ;;  %v5043_v12 = vadd.f32 %v10985_v46, %v10984_v14  ;;  %v10989_v1 = vld [vmem:[#allocation59_spill] sm:$0xff]  ;;  %v10997_v46 = vld [vmem:[#allocation32_spill] sm:$0xff] }
 0x3fa   : > { %6266 = vst.msk [vmem:[%s10452_s20 + $0x30] sm:$0xf] %vm6253_vm5, %v6819_v36  ;;  %v6106_v16 = vmax.f32 %v6074_v37, 0.0  ;;  %v6079_v43 = vadd.f32 %v10418_v26, %v6040_v32  ;;  %v6038_v53 = vmul.f32 %v10408_v59, %v5999_v17  ;;  %v6002_v19 = vadd.f32 %v7826_v47, %v5680_v51  ;;  %v10986_v36 = vld [vmem:[#allocation40_spill] sm:$0xff]  ;;  %v7797_v11 = vpop.f32.mrf.mxu0 }
 0x3fb   : > { %v6822_v34 = vpack.c.bf16 %v6108_v61, %v6108_v61  ;;  %v5923_v54 = vpop.f32.mrf.mxu1  ;;  %v5684_v50 = vadd.f32 %v10507_v52, %v5362_v21  ;;  %v5682_v23 = vadd.f32 %v10525_v62, %v5360_v24  ;;  %v5365_v37 = vadd.f32 %v10986_v36, %v5042_v31  ;;  %v10987_v32 = vld [vmem:[#allocation68_spill] sm:$0xff]  ;;  %v10990_v61 = vld [vmem:[#allocation30_spill] sm:$0xff] }
 0x3fc   : > { %v6820_v28 = vpack.c.bf16 %v6106_v16, %v6106_v16  ;;  %v6111_v4 = vmax.f32 %v6079_v43, 0.0  ;;  %v6077_v13 = vadd.f32 %v10418_v26, %v6038_v53  ;;  %v6041_v45 = vmul.f32 %v10408_v59, %v6002_v19  ;;  %v10991_v47 = vld [vmem:[#allocation28_spill] sm:$0xff]  ;;  %v10992_v43 = vld [vmem:[#allocation71_spill] sm:$0xff]  ;;  %v5646_v56 = vpop.f32.mrf.mxu0 }
 0x3fd   : > { %6269 = vst.msk [vmem:[%s10452_s20 + $0x3c] sm:$0xf] %vm6253_vm5, %v6822_v34  ;;  %v6000_v44 = vadd.f32 %v5923_v54, %v5678_v0  ;;  %v7829_v7 = vpop.f32.mrf.mxu1  ;;  %v5363_v17 = vadd.f32 %v10987_v32, %v5040_v9  ;;  %v5041_v62 = vadd.f32 %v10989_v1, %v10988_v42  ;;  %v5046_v16 = vadd.f32 %v10991_v47, %v10990_v61 }
 0x3fe   : > { %6267 = vst.msk [vmem:[%s10452_s20 + $0x34] sm:$0xf] %vm6253_vm5, %v6820_v28  ;;  %v6825_v57 = vpack.c.bf16 %v6111_v4, %v6111_v4  ;;  %v6109_v22 = vmax.f32 %v6077_v13, 0.0  ;;  %v6080_v8 = vadd.f32 %v10418_v26, %v6041_v45  ;;  %v6005_v25 = vadd.f32 %v7829_v7, %v5683_v2  ;;  %v10993_v4 = vld [vmem:[#allocation24_spill] sm:$0xff]  ;;  %v10995_v7 = vld [vmem:[#allocation67_spill] sm:$0xff] }
 0x3ff   : > { %v6039_v3 = vmul.f32 %v10408_v59, %v6000_v44  ;;  %v5936_v51 = vpop.f32.mrf.mxu1  ;;  %v5366_v53 = vadd.f32 %v10992_v43, %v5043_v12  ;;  %v5687_v54 = vadd.f32 %v10542_v20, %v5365_v37  ;;  %v5685_v28 = vadd.f32 %v10560_v39, %v5363_v17  ;;  %v10994_v44 = vld [vmem:[#allocation60_spill] sm:$0xff]  ;;  %v10998_v12 = vld [vmem:[#allocation31_spill] sm:$0xff]  ;;  %v11001_v17 = vld [vmem:[#allocation45_spill] sm:$0xff] }
 0x400   : > { %6272 = vst.msk [vmem:[%s10452_s20 + $0x48] sm:$0xf] %vm6253_vm5, %v6825_v57  ;;  %v6823_v48 = vpack.c.bf16 %v6109_v22, %v6109_v22  ;;  %v6112_v5 = vmax.f32 %v6080_v8, 0.0  ;;  %v6044_v6 = vmul.f32 %v10408_v59, %v6005_v25  ;;  %v6003_v58 = vadd.f32 %v5936_v51, %v5681_v38  ;;  %v10996_v8 = vld [vmem:[#allocation42_spill] sm:$0xff]  ;;  %v11000_v51 = vld [vmem:[#allocation37_spill] sm:$0xff] }
 0x401   : > { %v6078_v52 = vadd.f32 %v10418_v26, %v6039_v3  ;;  %v7830_v15 = vpop.f32.mrf.mxu1  ;;  %v5364_v13 = vadd.f32 %v10993_v4, %v5041_v62  ;;  %v5044_v57 = vadd.f32 %v10995_v7, %v10994_v44  ;;  %v5688_v22 = vadd.f32 %v7794_v27, %v5366_v53  ;;  %v10999_v3 = vld [vmem:[#allocation70_spill] sm:$0xff] }
 0x402   : > { %6270 = vst.msk [vmem:[%s10452_s20 + $0x40] sm:$0xf] %vm6253_vm5, %v6823_v48  ;;  %v6826_v55 = vpack.c.bf16 %v6112_v5, %v6112_v5  ;;  %v6083_v18 = vadd.f32 %v10418_v26, %v6044_v6  ;;  %v6042_v35 = vmul.f32 %v10408_v59, %v6003_v58  ;;  %v6006_v33 = vadd.f32 %v7830_v15, %v5684_v50  ;;  %v7798_v58 = vpop.f32.mrf.mxu0 }
 0x403   : > { %v6110_v19 = vmax.f32 %v6078_v52, 0.0  ;;  %v5939_v0 = vpop.f32.mrf.mxu1  ;;  %v5369_v20 = vadd.f32 %v10996_v8, %v5046_v16  ;;  %v5047_v50 = vadd.f32 %v10998_v12, %v10997_v46  ;;  %v5045_v27 = vadd.f32 %v11000_v51, %v10999_v3 }
 0x404   : > { %6273 = vst.msk [vmem:[%s10452_s20 + $0x4c] sm:$0xf] %vm6253_vm5, %v6826_v55  ;;  %v6115_v2 = vmax.f32 %v6083_v18, 0.0  ;;  %v6081_v41 = vadd.f32 %v10418_v26, %v6042_v35  ;;  %v6045_v21 = vmul.f32 %v10408_v59, %v6006_v33  ;;  %v6004_v34 = vadd.f32 %v5939_v0, %v5682_v23  ;;  %v5649_v16 = vpop.f32.mrf.mxu0 }
 0x405   : > { %v6824_v45 = vpack.c.bf16 %v6110_v19, %v6110_v19  ;;  %v7833_v49 = vpop.f32.mrf.mxu1  ;;  %v5686_v48 = vadd.f32 %v5633_v30, %v5364_v13  ;;  %v5367_v52 = vadd.f32 %v11001_v17, %v5044_v57  ;;  %v5691_v15 = vadd.f32 %v7797_v11, %v5369_v20 }
 0x406   : > { %v6829_v31 = vpack.c.bf16 %v6115_v2, %v6115_v2  ;;  %v6113_v38 = vmax.f32 %v6081_v41, 0.0  ;;  %v6084_v10 = vadd.f32 %v10418_v26, %v6045_v21  ;;  %v6043_v24 = vmul.f32 %v10408_v59, %v6004_v34 }
 0x407   : > { %6271 = vst.msk [vmem:[%s10452_s20 + $0x44] sm:$0xf] %vm6253_vm5, %v6824_v45  ;;  %v6009_v39 = vadd.f32 %v7833_v49, %v5687_v54  ;;  %v5952_v25 = vpop.f32.mrf.mxu1  ;;  %v5370_v55 = vadd.f32 %v10395_v60, %v5047_v50  ;;  %v5368_v62 = vadd.f32 %v10399_v63, %v5045_v27  ;;  %v5689_v19 = vadd.f32 %v5646_v56, %v5367_v52 }
 0x408   : > { %6276 = vst.msk [vmem:[%s10452_s20 + $0x58] sm:$0xf] %vm6253_vm5, %v6829_v31  ;;  %v6827_v29 = vpack.c.bf16 %v6113_v38, %v6113_v38  ;;  %v6116_v40 = vmax.f32 %v6084_v10, 0.0  ;;  %v6082_v9 = vadd.f32 %v10418_v26, %v6043_v24  ;;  %v6007_v14 = vadd.f32 %v5952_v25, %v5685_v28 }
 0x409   : > { %v6048_v5 = vmul.f32 %v10408_v59, %v6009_v39  ;;  %v7834_v6 = vpop.f32.mrf.mxu1  ;;  %v5692_v0 = vadd.f32 %v7798_v58, %v5370_v55  ;;  %v5690_v28 = vadd.f32 %v5649_v16, %v5368_v62 }
 0x40a   : > { %6274 = vst.msk [vmem:[%s10452_s20 + $0x50] sm:$0xf] %vm6253_vm5, %v6827_v29  ;;  %v6830_v23 = vpack.c.bf16 %v6116_v40, %v6116_v40  ;;  %v6114_v36 = vmax.f32 %v6082_v9, 0.0  ;;  %v6046_v37 = vmul.f32 %v10408_v59, %v6007_v14  ;;  %v6010_v32 = vadd.f32 %v7834_v6, %v5688_v22 }
 0x40b   : > { %v6087_v18 = vadd.f32 %v10418_v26, %v6048_v5  ;;  %v5955_v30 = vpop.f32.mrf.mxu1 }
 0x40c   : > { %6277 = vst.msk [vmem:[%s10452_s20 + $0x5c] sm:$0xf] %vm6253_vm5, %v6830_v23  ;;  %v6828_v35 = vpack.c.bf16 %v6114_v36, %v6114_v36  ;;  %v6085_v33 = vadd.f32 %v10418_v26, %v6046_v37  ;;  %v6049_v42 = vmul.f32 %v10408_v59, %v6010_v32  ;;  %v6008_v1 = vadd.f32 %v5955_v30, %v5686_v48 }
 0x40d   : > { %v6119_v61 = vmax.f32 %v6087_v18, 0.0  ;;  %v7837_v47 = vpop.f32.mrf.mxu1 }
 0x40e   : > { %6275 = vst.msk [vmem:[%s10452_s20 + $0x54] sm:$0xf] %vm6253_vm5, %v6828_v35  ;;  %v6117_v60 = vmax.f32 %v6085_v33, 0.0  ;;  %v6088_v11 = vadd.f32 %v10418_v26, %v6049_v42  ;;  %v6047_v43 = vmul.f32 %v10408_v59, %v6008_v1  ;;  %v6013_v53 = vadd.f32 %v7837_v47, %v5691_v15 }
 0x40f   : > { %v6833_v2 = vpack.c.bf16 %v6119_v61, %v6119_v61  ;;  %v5968_v41 = vpop.f32.mrf.mxu1 }
 0x410   : > { %v6831_v21 = vpack.c.bf16 %v6117_v60, %v6117_v60  ;;  %v6120_v63 = vmax.f32 %v6088_v11, 0.0  ;;  %v6086_v34 = vadd.f32 %v10418_v26, %v6047_v43  ;;  %v6052_v54 = vmul.f32 %v10408_v59, %v6013_v53 }
 0x411   : > { %6280 = vst.msk [vmem:[%s10452_s20 + $0x68] sm:$0xf] %vm6253_vm5, %v6833_v2  ;;  %v6011_v4 = vadd.f32 %v5968_v41, %v5689_v19  ;;  %v7838_v13 = vpop.f32.mrf.mxu1 }
 0x412   : > { %6278 = vst.msk [vmem:[%s10452_s20 + $0x60] sm:$0xf] %vm6253_vm5, %v6831_v21  ;;  %v6834_v45 = vpack.c.bf16 %v6120_v63, %v6120_v63  ;;  %v6118_v49 = vmax.f32 %v6086_v34, 0.0  ;;  %v6091_v56 = vadd.f32 %v10418_v26, %v6052_v54  ;;  %v6014_v31 = vadd.f32 %v7838_v13, %v5692_v0 }
 0x413   : > { %v6050_v38 = vmul.f32 %v10408_v59, %v6011_v4  ;;  %v5971_v10 = vpop.f32.mrf.mxu1 }
 0x414   : > { %6281 = vst.msk [vmem:[%s10452_s20 + $0x6c] sm:$0xf] %vm6253_vm5, %v6834_v45  ;;  %v6832_v24 = vpack.c.bf16 %v6118_v49, %v6118_v49  ;;  %v6123_v44 = vmax.f32 %v6091_v56, 0.0  ;;  %v6053_v7 = vmul.f32 %v10408_v59, %v6014_v31  ;;  %v6012_v57 = vadd.f32 %v5971_v10, %v5690_v28 }
 0x415   : > { %v6089_v22 = vadd.f32 %v10418_v26, %v6050_v38 }
 0x416   : > { %6279 = vst.msk [vmem:[%s10452_s20 + $0x64] sm:$0xf] %vm6253_vm5, %v6832_v24  ;;  %v6837_v8 = vpack.c.bf16 %v6123_v44, %v6123_v44  ;;  %v6092_v20 = vadd.f32 %v10418_v26, %v6053_v7  ;;  %v6051_v39 = vmul.f32 %v10408_v59, %v6012_v57 }
 0x417   : > { %v6121_v25 = vmax.f32 %v6089_v22, 0.0 }
 0x418   : > { %6284 = vst.msk [vmem:[%s10452_s20 + $0x78] sm:$0xf] %vm6253_vm5, %v6837_v8  ;;  %v6124_v29 = vmax.f32 %v6092_v20, 0.0  ;;  %v6090_v40 = vadd.f32 %v10418_v26, %v6051_v39 }
 0x419   : > { %v6835_v9 = vpack.c.bf16 %v6121_v25, %v6121_v25 }
 0x41a   : > { %v6838_v14 = vpack.c.bf16 %v6124_v29, %v6124_v29  ;;  %v6122_v46 = vmax.f32 %v6090_v40, 0.0 }
 0x41b   : > { %6282 = vst.msk [vmem:[%s10452_s20 + $0x70] sm:$0xf] %vm6253_vm5, %v6835_v9 }
 0x41c   : > { %6285 = vst.msk [vmem:[%s10452_s20 + $0x7c] sm:$0xf] %vm6253_vm5, %v6838_v14  ;;  %v6836_v59 = vpack.c.bf16 %v6122_v46, %v6122_v46 }
 0x41e   : > { %6283 = vst.msk [vmem:[%s10452_s20 + $0x74] sm:$0xf] %vm6253_vm5, %v6836_v59 }
 0x41f   : > { %7939 = shalt.err (!%p7936_p3)
}
 0x420   : > { %s7940_s16 = scalar_lea.hbm %s10674_s8, 2048  ;;  %s7944_s19 = scalar_lea.hbm %s10731_s7, 4096 }
 0x421   : > { %p7941_p4 = scmp.ne.s32.totalorder %s10674_s8, %s7940_s16  ;;  %p7945_p9 = scmp.lt.s32.totalorder %s10674_s8, %s10731_s7 }
 0x422   : > { %p7946_p10 = scmp.lt.s32.totalorder %s7944_s19, %s7940_s16 }
 0x423   : > { %p7942_p7 = pnand %p7941_p4, %p8070_p5 }
 0x424   : > { %p7947_p11 = por %p7946_p10, %p7945_p9 }
 0x425   : > { %p7943_p8 = pneg %p7942_p7 }
 0x427   : > { %p7948_p12 = pnand %p7947_p11, %p7943_p8 }
 0x429   : > { %7951 = shalt.err (!%p7948_p12)
}
 0x42a   : > { %s7990_s23 = smov 64   ;;  %s7991_s29 = smov 4  }
 0x42b   : > { %7848 = dma.vmem_to_hbm [thread:$0]  (%p8070_p5), %s10676_s22, 2048, %s10674_s8, %s10684_s28, %s7990_s23, %s7990_s23, %s7991_s29  }
 0x42c PF: > { %p7854_p13 = scmp.ge.s32.totalorder %s7986_s27, 2  ;;  %s6315_s9 = sand.u32 1, %s7974_s24  }
 0x42d   : > { %s6316_s13 = scalar_lea.sflag [#allocation5], %s6315_s9 }
 0x42e   : > { %p7851_p0 = pnand %p7854_p13, %p8074_p6 }
 0x430   : > { %p7852_p1 = pneg %p7851_p0 }
 0x432   : > { %7969 = dma.done.wait (%p7852_p1), %s6316_s13, 2048  }
 0x433   : > { %7971 = vsyncadd (%p7852_p1), %s6316_s13, 4294965248  ;;  %p17_p2 = scmp.ge.s32.totalorder %s8057_s30, 4   ;;  %s11002_s24 = smov %s7978_s25 }
 0x434   : > { %s11003_s25 = smov %s7982_s26  ;;  %s11004_s26 = smov %s8068_s10 }
 0x435   : > { %s11005_s27 = smov %s8057_s30  ;;  %19 = sbr.rel (!%p17_p2) target bundleno = 3 (0x3), region = 103 }
 0x43a   :  { %6321 = vsyncpa [#allocation5], 1 }
 0x43b   :  { %6323 = vsyncpa [#allocation5 + $0x1], 1 }

</bundles_post_ra>
